<compile_context>
chip_gen: v5e
topology: v5e:2x2
jax: 0.10.0
libtpu: 0.0.40
codegen_flags: <defaults>
</compile_context>

<pallas_src>
import functools

import jax
import jax.numpy as jnp
from jax import lax
from jax.experimental import pallas as pl
from jax.experimental.pallas import tpu as pltpu

_BN_EPS = 1e-5


def _basic_block_kernel(xp_ref, w1_ref, b1_ref, w2_ref, b2_ref, out_ref,
                        p1_ref, p2_ref, *, img_h, img_w):
    """One (batch element, row tile) step of the fused BasicBlock forward.

    xp_ref : (1, H+4, Wp, Cin)  bf16 padded input, resident per batch element
    w*_ref : (9*Cin, Cout)      bf16 conv weights with BN scale folded in
    b*_ref : (1, Cout)          f32 folded BN shift
    out_ref: (1, TH, W, C2)     f32 output row tile
    p1_ref : (H1*W1, 9*Cin)     f32 im2col scratch for conv1
    p2_ref : (TH*W, 9*C1)       f32 im2col scratch for conv2
    """
    TH = out_ref.shape[1]                 # output rows per tile
    W = img_w
    Cin = xp_ref.shape[3]
    C1 = w1_ref.shape[1]
    C2 = w2_ref.shape[1]
    H1 = TH + 2                           # conv1 output rows (1-row halo each side)
    W1 = xp_ref.shape[2] - 2              # conv1 output cols (>= W+2, 8-aligned)

    h = pl.program_id(1)
    r0 = pl.multiple_of(h * TH, TH)       # first output row of this tile

    # Input window for this row tile (2-row / 2-col halo); epilogue math in f32.
    x_tile = xp_ref[0, pl.ds(r0, TH + 4), :, :].astype(jnp.float32)

    # ---- conv1: im2col (K = 9*Cin) + a single MXU matmul, BN1 bias + ReLU ----
    for dh in range(3):
        for dw in range(3):
            tap = x_tile[dh:dh + H1, dw:dw + W1, :].reshape(H1 * W1, Cin)
            t = dh * 3 + dw
            p1_ref[:, t * Cin:(t + 1) * Cin] = tap
    acc1 = jnp.dot(p1_ref[...].astype(jnp.bfloat16), w1_ref[...],
                   preferred_element_type=jnp.float32)            # (H1*W1, C1)
    out1 = jnp.maximum(acc1 + b1_ref[...], 0.0).reshape(H1, W1, C1)

    # Zero halo positions outside the image: this *is* conv2's zero padding
    # (and clears the junk columns of the 8-aligned width halo).
    row_g = r0 - 1 + lax.broadcasted_iota(jnp.int32, (H1, W1, C1), 0)
    col_g = lax.broadcasted_iota(jnp.int32, (H1, W1, C1), 1) - 1
    valid = (row_g >= 0) & (row_g < img_h) & (col_g >= 0) & (col_g < W)
    out1 = jnp.where(valid, out1, 0.0)

    # ---- conv2: im2col (K = 9*C1) + a single MXU matmul, BN2 bias -----------
    for dh in range(3):
        for dw in range(3):
            tap = out1[dh:dh + TH, dw:dw + W, :].reshape(TH * W, C1)
            t = dh * 3 + dw
            p2_ref[:, t * C1:(t + 1) * C1] = tap
    acc2 = jnp.dot(p2_ref[...].astype(jnp.bfloat16), w2_ref[...],
                   preferred_element_type=jnp.float32)            # (TH*W, C2)
    out2 = (acc2 + b2_ref[...]).reshape(TH, W, C2)

    # ---- residual add (interior of the same padded input tile) + ReLU -------
    residual = x_tile[2:2 + TH, 2:2 + W, :]
    out_ref[0] = jnp.maximum(out2 + residual, 0.0)


def _fold_bn_into_conv(w, gamma, beta, mean, var):
    """PyTorch conv weight (Cout,Cin,3,3) + BN -> ((9*Cin,Cout) bf16, (1,Cout) f32)."""
    scale = gamma / jnp.sqrt(var + _BN_EPS)
    shift = beta - mean * scale
    cout, cin = w.shape[0], w.shape[1]
    w_km = jnp.transpose(w, (2, 3, 1, 0)).reshape(9 * cin, cout)   # (dh,dw,cin) -> rows
    w_km = w_km * scale[None, :]                                   # fold BN scale
    return w_km.astype(jnp.bfloat16), shift.reshape(1, cout).astype(jnp.float32)


def basic_block_forward(x_nchw, params, *, row_tile=8):
    """BasicBlock(inplanes=planes, stride=1, dilation=1, downsample=None) forward."""
    x = jnp.transpose(x_nchw, (0, 2, 3, 1)).astype(jnp.float32)    # NCHW -> NHWC
    N, H, W, Cin = x.shape

    w1, b1 = _fold_bn_into_conv(params["w1"], params["g1"], params["b1"],
                                params["m1"], params["v1"])
    w2, b2 = _fold_bn_into_conv(params["w2"], params["g2"], params["b2"],
                                params["m2"], params["v2"])
    C1 = w1.shape[1]
    C2 = w2.shape[1]
    assert C2 == Cin, "identity residual requires inplanes == planes (downsample=None)"

    th = min(row_tile, H)
    assert H % th == 0, "row_tile must divide H"
    num_h = H // th

    # conv1 is evaluated with a 1-pixel halo; round its width up to a multiple
    # of 8 (sublane tile) so every in-kernel reshape stays layout-clean.
    w1_out = (W + 2 + 7) // 8 * 8
    pad_r = (w1_out + 2) - 2 - W
    # TODO(synk): the zero-pad / NHWC transpose still run as XLA ops in HBM; a
    # fully fused version would DMA the halo in-kernel from the raw input.
    xp = jnp.pad(x, ((0, 0), (2, 2), (2, pad_r), (0, 0))).astype(jnp.bfloat16)
    Wp = xp.shape[2]

    kernel = functools.partial(_basic_block_kernel, img_h=H, img_w=W)

    out_nhwc = pl.pallas_call(
        kernel,
        out_shape=jax.ShapeDtypeStruct((N, H, W, C2), jnp.float32),
        grid=(N, num_h),
        in_specs=[
            # padded input: resident per batch element, re-sliced per row tile
            pl.BlockSpec((1, H + 4, Wp, Cin), lambda n, h: (n, 0, 0, 0)),
            pl.BlockSpec((9 * Cin, C1), lambda n, h: (0, 0)),
            pl.BlockSpec((1, C1), lambda n, h: (0, 0)),
            pl.BlockSpec((9 * C1, C2), lambda n, h: (0, 0)),
            pl.BlockSpec((1, C2), lambda n, h: (0, 0)),
        ],
        out_specs=pl.BlockSpec((1, th, W, C2), lambda n, h: (n, h, 0, 0)),
        scratch_shapes=[
            pltpu.VMEM(((th + 2) * w1_out, 9 * Cin), jnp.float32),  # conv1 im2col
            pltpu.VMEM((th * W, 9 * C1), jnp.float32),              # conv2 im2col
        ],
        compiler_params=pltpu.CompilerParams(
            dimension_semantics=("parallel", "parallel"),
            vmem_limit_bytes=32 * 1024 * 1024,
        ),
    )(xp, w1, b1, w2, b2)

    return jnp.transpose(out_nhwc, (0, 3, 1, 2))                   # NHWC -> NCHW


# ----------------------------- reference (pure JAX) -----------------------------
def _ref_forward(x, params):
    def conv(y, w):
        return lax.conv_general_dilated(
            y, w, window_strides=(1, 1), padding=((1, 1), (1, 1)),
            dimension_numbers=("NCHW", "OIHW", "NCHW"))

    def bn(y, g, b, m, v):
        g, b, m, v = (t[None, :, None, None] for t in (g, b, m, v))
        return g * (y - m) / jnp.sqrt(v + _BN_EPS) + b

    out = conv(x, params["w1"])
    out = jax.nn.relu(bn(out, params["g1"], params["b1"], params["m1"], params["v1"]))
    out = conv(out, params["w2"])
    out = bn(out, params["g2"], params["b2"], params["m2"], params["v2"])
    return jax.nn.relu(out + x)


if __name__ == "__main__":
    # BasicBlock(inplanes=4, planes=4, stride=1, dilation=1, downsample=None)
    N, C, H, W = 2, 4, 16, 16
    planes = C * 1  # expansion = 1; identity residual requires inplanes == planes

    key = jax.random.PRNGKey(0)
    ks = jax.random.split(key, 11)
    params = {
        "w1": 0.1 * jax.random.normal(ks[0], (planes, C, 3, 3), jnp.float32),
        "g1": 1.0 + 0.1 * jax.random.normal(ks[1], (planes,), jnp.float32),
        "b1": 0.1 * jax.random.normal(ks[2], (planes,), jnp.float32),
        "m1": 0.1 * jax.random.normal(ks[3], (planes,), jnp.float32),
        "v1": 1.0 + 0.1 * jax.random.uniform(ks[4], (planes,), jnp.float32),
        "w2": 0.1 * jax.random.normal(ks[5], (planes, planes, 3, 3), jnp.float32),
        "g2": 1.0 + 0.1 * jax.random.normal(ks[6], (planes,), jnp.float32),
        "b2": 0.1 * jax.random.normal(ks[7], (planes,), jnp.float32),
        "m2": 0.1 * jax.random.normal(ks[8], (planes,), jnp.float32),
        "v2": 1.0 + 0.1 * jax.random.uniform(ks[9], (planes,), jnp.float32),
    }
    x = jax.random.normal(ks[10], (N, C, H, W), jnp.float32)

    fwd = jax.jit(basic_block_forward)
    out = jax.block_until_ready(fwd(x, params))
    ref = jax.block_until_ready(_ref_forward(x, params))

    assert out.shape == (N, planes, H, W), out.shape
    if not jnp.allclose(out, ref, atol=2e-2, rtol=2e-2):
        max_err = float(jnp.max(jnp.abs(out - ref)))
        raise AssertionError(f"kernel mismatch vs reference, max abs err={max_err}")

    print("KERNEL_OK")
</pallas_src>

<mosaic_0001>
module attributes {stable_mosaic.version = 11 : i64} {
  func.func @_basic_block_kernel(%arg0: i32, %arg1: i32, %arg2: memref<1x20x26x4xbf16, #tpu.memory_space<vmem>>, %arg3: memref<36x4xbf16, #tpu.memory_space<vmem>>, %arg4: memref<1x4xf32, #tpu.memory_space<vmem>>, %arg5: memref<36x4xbf16, #tpu.memory_space<vmem>>, %arg6: memref<1x4xf32, #tpu.memory_space<vmem>>, %arg7: memref<1x8x16x4xf32, #tpu.memory_space<vmem>>, %arg8: memref<240x36xf32, #tpu.memory_space<vmem>>, %arg9: memref<128x36xf32, #tpu.memory_space<vmem>>) attributes {dimension_semantics = [#tpu.dimension_semantics<parallel>, #tpu.dimension_semantics<parallel>], iteration_bounds = array<i64: 2, 2>, scalar_prefetch = 0 : i64, scratch_operands = 2 : i64, tpu.core_type = #tpu.core_type<tc>, window_params = [{transform_indices = @transform_0, window_bounds = array<i64: 1, 20, 26, 4>}, {pipeline_mode = #tpu.pipeline_mode<synchronous>, transform_indices = @transform_1, window_bounds = array<i64: 36, 4>}, {pipeline_mode = #tpu.pipeline_mode<synchronous>, transform_indices = @transform_2, window_bounds = array<i64: 1, 4>}, {pipeline_mode = #tpu.pipeline_mode<synchronous>, transform_indices = @transform_3, window_bounds = array<i64: 36, 4>}, {pipeline_mode = #tpu.pipeline_mode<synchronous>, transform_indices = @transform_4, window_bounds = array<i64: 1, 4>}, {transform_indices = @transform_5, window_bounds = array<i64: 1, 8, 16, 4>}]} {
    %c8_i32 = arith.constant 8 : i32
    %0 = arith.muli %arg1, %c8_i32 : i32
    %1 = tpu.assume_multiple %0, 8 : i32
    %c0 = arith.constant 0 : index
    %2 = arith.index_cast %1 : i32 to index
    %c0_0 = arith.constant 0 : index
    %c0_1 = arith.constant 0 : index
    %3 = vector.load %arg2[%c0, %2, %c0_0, %c0_1] : memref<1x20x26x4xbf16, #tpu.memory_space<vmem>>, vector<1x12x26x4xbf16>
    %4 = vector.shape_cast %3 : vector<1x12x26x4xbf16> to vector<12x26x4xbf16>
    %5 = arith.extf %4 : vector<12x26x4xbf16> to vector<12x26x4xf32>
    %6 = vector.extract_strided_slice %5 {offsets = [0, 0, 0], sizes = [10, 24, 4], strides = [1, 1, 1]} : vector<12x26x4xf32> to vector<10x24x4xf32>
    %7 = vector.shape_cast %6 : vector<10x24x4xf32> to vector<240x4xf32>
    %c0_2 = arith.constant 0 : index
    %c0_3 = arith.constant 0 : index
    %8 = vector.load %arg8[%c0_2, %c0_3] : memref<240x36xf32, #tpu.memory_space<vmem>>, vector<240x4xf32>
    tpu.vector_store %arg8[%c0_2, %c0_3], %7 {strides = array<i32>} : memref<240x36xf32, #tpu.memory_space<vmem>>, vector<240x4xf32>,
    %9 = vector.extract_strided_slice %5 {offsets = [0, 1, 0], sizes = [10, 24, 4], strides = [1, 1, 1]} : vector<12x26x4xf32> to vector<10x24x4xf32>
    %10 = vector.shape_cast %9 : vector<10x24x4xf32> to vector<240x4xf32>
    %c0_4 = arith.constant 0 : index
    %c4 = arith.constant 4 : index
    %11 = vector.load %arg8[%c0_4, %c4] : memref<240x36xf32, #tpu.memory_space<vmem>>, vector<240x4xf32>
    tpu.vector_store %arg8[%c0_4, %c4], %10 {strides = array<i32>} : memref<240x36xf32, #tpu.memory_space<vmem>>, vector<240x4xf32>,
    %12 = vector.extract_strided_slice %5 {offsets = [0, 2, 0], sizes = [10, 24, 4], strides = [1, 1, 1]} : vector<12x26x4xf32> to vector<10x24x4xf32>
    %13 = vector.shape_cast %12 : vector<10x24x4xf32> to vector<240x4xf32>
    %c0_5 = arith.constant 0 : index
    %c8 = arith.constant 8 : index
    %14 = vector.load %arg8[%c0_5, %c8] : memref<240x36xf32, #tpu.memory_space<vmem>>, vector<240x4xf32>
    tpu.vector_store %arg8[%c0_5, %c8], %13 {strides = array<i32>} : memref<240x36xf32, #tpu.memory_space<vmem>>, vector<240x4xf32>,
    %15 = vector.extract_strided_slice %5 {offsets = [1, 0, 0], sizes = [10, 24, 4], strides = [1, 1, 1]} : vector<12x26x4xf32> to vector<10x24x4xf32>
    %16 = vector.shape_cast %15 : vector<10x24x4xf32> to vector<240x4xf32>
    %c0_6 = arith.constant 0 : index
    %c12 = arith.constant 12 : index
    %17 = vector.load %arg8[%c0_6, %c12] : memref<240x36xf32, #tpu.memory_space<vmem>>, vector<240x4xf32>
    tpu.vector_store %arg8[%c0_6, %c12], %16 {strides = array<i32>} : memref<240x36xf32, #tpu.memory_space<vmem>>, vector<240x4xf32>,
    %18 = vector.extract_strided_slice %5 {offsets = [1, 1, 0], sizes = [10, 24, 4], strides = [1, 1, 1]} : vector<12x26x4xf32> to vector<10x24x4xf32>
    %19 = vector.shape_cast %18 : vector<10x24x4xf32> to vector<240x4xf32>
    %c0_7 = arith.constant 0 : index
    %c16 = arith.constant 16 : index
    %20 = vector.load %arg8[%c0_7, %c16] : memref<240x36xf32, #tpu.memory_space<vmem>>, vector<240x4xf32>
    tpu.vector_store %arg8[%c0_7, %c16], %19 {strides = array<i32>} : memref<240x36xf32, #tpu.memory_space<vmem>>, vector<240x4xf32>,
    %21 = vector.extract_strided_slice %5 {offsets = [1, 2, 0], sizes = [10, 24, 4], strides = [1, 1, 1]} : vector<12x26x4xf32> to vector<10x24x4xf32>
    %22 = vector.shape_cast %21 : vector<10x24x4xf32> to vector<240x4xf32>
    %c0_8 = arith.constant 0 : index
    %c20 = arith.constant 20 : index
    %23 = vector.load %arg8[%c0_8, %c20] : memref<240x36xf32, #tpu.memory_space<vmem>>, vector<240x4xf32>
    tpu.vector_store %arg8[%c0_8, %c20], %22 {strides = array<i32>} : memref<240x36xf32, #tpu.memory_space<vmem>>, vector<240x4xf32>,
    %24 = vector.extract_strided_slice %5 {offsets = [2, 0, 0], sizes = [10, 24, 4], strides = [1, 1, 1]} : vector<12x26x4xf32> to vector<10x24x4xf32>
    %25 = vector.shape_cast %24 : vector<10x24x4xf32> to vector<240x4xf32>
    %c0_9 = arith.constant 0 : index
    %c24 = arith.constant 24 : index
    %26 = vector.load %arg8[%c0_9, %c24] : memref<240x36xf32, #tpu.memory_space<vmem>>, vector<240x4xf32>
    tpu.vector_store %arg8[%c0_9, %c24], %25 {strides = array<i32>} : memref<240x36xf32, #tpu.memory_space<vmem>>, vector<240x4xf32>,
    %27 = vector.extract_strided_slice %5 {offsets = [2, 1, 0], sizes = [10, 24, 4], strides = [1, 1, 1]} : vector<12x26x4xf32> to vector<10x24x4xf32>
    %28 = vector.shape_cast %27 : vector<10x24x4xf32> to vector<240x4xf32>
    %c0_10 = arith.constant 0 : index
    %c28 = arith.constant 28 : index
    %29 = vector.load %arg8[%c0_10, %c28] : memref<240x36xf32, #tpu.memory_space<vmem>>, vector<240x4xf32>
    tpu.vector_store %arg8[%c0_10, %c28], %28 {strides = array<i32>} : memref<240x36xf32, #tpu.memory_space<vmem>>, vector<240x4xf32>,
    %30 = vector.extract_strided_slice %5 {offsets = [2, 2, 0], sizes = [10, 24, 4], strides = [1, 1, 1]} : vector<12x26x4xf32> to vector<10x24x4xf32>
    %31 = vector.shape_cast %30 : vector<10x24x4xf32> to vector<240x4xf32>
    %c0_11 = arith.constant 0 : index
    %c32 = arith.constant 32 : index
    %32 = vector.load %arg8[%c0_11, %c32] : memref<240x36xf32, #tpu.memory_space<vmem>>, vector<240x4xf32>
    tpu.vector_store %arg8[%c0_11, %c32], %31 {strides = array<i32>} : memref<240x36xf32, #tpu.memory_space<vmem>>, vector<240x4xf32>,
    %c0_12 = arith.constant 0 : index
    %c0_13 = arith.constant 0 : index
    %33 = vector.load %arg8[%c0_12, %c0_13] : memref<240x36xf32, #tpu.memory_space<vmem>>, vector<240x36xf32>
    %34 = arith.truncf %33 : vector<240x36xf32> to vector<240x36xbf16>
    %c0_14 = arith.constant 0 : index
    %c0_15 = arith.constant 0 : index
    %35 = vector.load %arg3[%c0_14, %c0_15] : memref<36x4xbf16, #tpu.memory_space<vmem>>, vector<36x4xbf16>
    %cst = arith.constant dense<0.000000e+00> : vector<240x4xf32>
    %36 = tpu.matmul %34, %35, %cst {dimension_numbers = #tpu.dot_dimension_numbers<[1], [0], [0], [1], [0, 0, 1, 1], [], []>} : vector<240x36xbf16>, vector<36x4xbf16>, vector<240x4xf32> -> vector<240x4xf32>
    %c0_16 = arith.constant 0 : index
    %c0_17 = arith.constant 0 : index
    %37 = vector.load %arg4[%c0_16, %c0_17] : memref<1x4xf32, #tpu.memory_space<vmem>>, vector<1x4xf32>
    %38 = vector.broadcast %37 : vector<1x4xf32> to vector<240x4xf32>
    %39 = arith.addf %36, %38 : vector<240x4xf32>
    %cst_18 = arith.constant 0.000000e+00 : f32
    %40 = vector.broadcast %cst_18 : f32 to vector<240x4xf32>
    %41 = arith.maximumf %39, %40 : vector<240x4xf32>
    %42 = vector.shape_cast %41 : vector<240x4xf32> to vector<10x24x4xf32>
    %c1_i32 = arith.constant 1 : i32
    %43 = arith.subi %1, %c1_i32 : i32
    %44 = tpu.iota {dimensions = array<i32: 0>} : vector<10x24x4xi32>
    %45 = vector.broadcast %43 : i32 to vector<10x24x4xi32>
    %46 = arith.addi %45, %44 : vector<10x24x4xi32>
    %47 = tpu.iota {dimensions = array<i32: 1>} : vector<10x24x4xi32>
    %c1_i32_19 = arith.constant 1 : i32
    %48 = vector.broadcast %c1_i32_19 : i32 to vector<10x24x4xi32>
    %49 = arith.subi %47, %48 : vector<10x24x4xi32>
    %c0_i32 = arith.constant 0 : i32
    %50 = vector.broadcast %c0_i32 : i32 to vector<10x24x4xi32>
    %51 = arith.cmpi sge, %46, %50 : vector<10x24x4xi32>
    %c16_i32 = arith.constant 16 : i32
    %52 = vector.broadcast %c16_i32 : i32 to vector<10x24x4xi32>
    %53 = arith.cmpi slt, %46, %52 : vector<10x24x4xi32>
    %54 = arith.andi %51, %53 : vector<10x24x4xi1>
    %c0_i32_20 = arith.constant 0 : i32
    %55 = vector.broadcast %c0_i32_20 : i32 to vector<10x24x4xi32>
    %56 = arith.cmpi sge, %49, %55 : vector<10x24x4xi32>
    %57 = arith.andi %54, %56 : vector<10x24x4xi1>
    %c16_i32_21 = arith.constant 16 : i32
    %58 = vector.broadcast %c16_i32_21 : i32 to vector<10x24x4xi32>
    %59 = arith.cmpi slt, %49, %58 : vector<10x24x4xi32>
    %60 = arith.andi %57, %59 : vector<10x24x4xi1>
    %cst_22 = arith.constant 0.000000e+00 : f32
    %61 = vector.broadcast %cst_22 : f32 to vector<10x24x4xf32>
    %62 = arith.select %60, %42, %61 : vector<10x24x4xi1>, vector<10x24x4xf32>
    %63 = vector.extract_strided_slice %62 {offsets = [0, 0, 0], sizes = [8, 16, 4], strides = [1, 1, 1]} : vector<10x24x4xf32> to vector<8x16x4xf32>
    %64 = vector.shape_cast %63 : vector<8x16x4xf32> to vector<128x4xf32>
    %c0_23 = arith.constant 0 : index
    %c0_24 = arith.constant 0 : index
    %65 = vector.load %arg9[%c0_23, %c0_24] : memref<128x36xf32, #tpu.memory_space<vmem>>, vector<128x4xf32>
    tpu.vector_store %arg9[%c0_23, %c0_24], %64 {strides = array<i32>} : memref<128x36xf32, #tpu.memory_space<vmem>>, vector<128x4xf32>,
    %66 = vector.extract_strided_slice %62 {offsets = [0, 1, 0], sizes = [8, 16, 4], strides = [1, 1, 1]} : vector<10x24x4xf32> to vector<8x16x4xf32>
    %67 = vector.shape_cast %66 : vector<8x16x4xf32> to vector<128x4xf32>
    %c0_25 = arith.constant 0 : index
    %c4_26 = arith.constant 4 : index
    %68 = vector.load %arg9[%c0_25, %c4_26] : memref<128x36xf32, #tpu.memory_space<vmem>>, vector<128x4xf32>
    tpu.vector_store %arg9[%c0_25, %c4_26], %67 {strides = array<i32>} : memref<128x36xf32, #tpu.memory_space<vmem>>, vector<128x4xf32>,
    %69 = vector.extract_strided_slice %62 {offsets = [0, 2, 0], sizes = [8, 16, 4], strides = [1, 1, 1]} : vector<10x24x4xf32> to vector<8x16x4xf32>
    %70 = vector.shape_cast %69 : vector<8x16x4xf32> to vector<128x4xf32>
    %c0_27 = arith.constant 0 : index
    %c8_28 = arith.constant 8 : index
    %71 = vector.load %arg9[%c0_27, %c8_28] : memref<128x36xf32, #tpu.memory_space<vmem>>, vector<128x4xf32>
    tpu.vector_store %arg9[%c0_27, %c8_28], %70 {strides = array<i32>} : memref<128x36xf32, #tpu.memory_space<vmem>>, vector<128x4xf32>,
    %72 = vector.extract_strided_slice %62 {offsets = [1, 0, 0], sizes = [8, 16, 4], strides = [1, 1, 1]} : vector<10x24x4xf32> to vector<8x16x4xf32>
    %73 = vector.shape_cast %72 : vector<8x16x4xf32> to vector<128x4xf32>
    %c0_29 = arith.constant 0 : index
    %c12_30 = arith.constant 12 : index
    %74 = vector.load %arg9[%c0_29, %c12_30] : memref<128x36xf32, #tpu.memory_space<vmem>>, vector<128x4xf32>
    tpu.vector_store %arg9[%c0_29, %c12_30], %73 {strides = array<i32>} : memref<128x36xf32, #tpu.memory_space<vmem>>, vector<128x4xf32>,
    %75 = vector.extract_strided_slice %62 {offsets = [1, 1, 0], sizes = [8, 16, 4], strides = [1, 1, 1]} : vector<10x24x4xf32> to vector<8x16x4xf32>
    %76 = vector.shape_cast %75 : vector<8x16x4xf32> to vector<128x4xf32>
    %c0_31 = arith.constant 0 : index
    %c16_32 = arith.constant 16 : index
    %77 = vector.load %arg9[%c0_31, %c16_32] : memref<128x36xf32, #tpu.memory_space<vmem>>, vector<128x4xf32>
    tpu.vector_store %arg9[%c0_31, %c16_32], %76 {strides = array<i32>} : memref<128x36xf32, #tpu.memory_space<vmem>>, vector<128x4xf32>,
    %78 = vector.extract_strided_slice %62 {offsets = [1, 2, 0], sizes = [8, 16, 4], strides = [1, 1, 1]} : vector<10x24x4xf32> to vector<8x16x4xf32>
    %79 = vector.shape_cast %78 : vector<8x16x4xf32> to vector<128x4xf32>
    %c0_33 = arith.constant 0 : index
    %c20_34 = arith.constant 20 : index
    %80 = vector.load %arg9[%c0_33, %c20_34] : memref<128x36xf32, #tpu.memory_space<vmem>>, vector<128x4xf32>
    tpu.vector_store %arg9[%c0_33, %c20_34], %79 {strides = array<i32>} : memref<128x36xf32, #tpu.memory_space<vmem>>, vector<128x4xf32>,
    %81 = vector.extract_strided_slice %62 {offsets = [2, 0, 0], sizes = [8, 16, 4], strides = [1, 1, 1]} : vector<10x24x4xf32> to vector<8x16x4xf32>
    %82 = vector.shape_cast %81 : vector<8x16x4xf32> to vector<128x4xf32>
    %c0_35 = arith.constant 0 : index
    %c24_36 = arith.constant 24 : index
    %83 = vector.load %arg9[%c0_35, %c24_36] : memref<128x36xf32, #tpu.memory_space<vmem>>, vector<128x4xf32>
    tpu.vector_store %arg9[%c0_35, %c24_36], %82 {strides = array<i32>} : memref<128x36xf32, #tpu.memory_space<vmem>>, vector<128x4xf32>,
    %84 = vector.extract_strided_slice %62 {offsets = [2, 1, 0], sizes = [8, 16, 4], strides = [1, 1, 1]} : vector<10x24x4xf32> to vector<8x16x4xf32>
    %85 = vector.shape_cast %84 : vector<8x16x4xf32> to vector<128x4xf32>
    %c0_37 = arith.constant 0 : index
    %c28_38 = arith.constant 28 : index
    %86 = vector.load %arg9[%c0_37, %c28_38] : memref<128x36xf32, #tpu.memory_space<vmem>>, vector<128x4xf32>
    tpu.vector_store %arg9[%c0_37, %c28_38], %85 {strides = array<i32>} : memref<128x36xf32, #tpu.memory_space<vmem>>, vector<128x4xf32>,
    %87 = vector.extract_strided_slice %62 {offsets = [2, 2, 0], sizes = [8, 16, 4], strides = [1, 1, 1]} : vector<10x24x4xf32> to vector<8x16x4xf32>
    %88 = vector.shape_cast %87 : vector<8x16x4xf32> to vector<128x4xf32>
    %c0_39 = arith.constant 0 : index
    %c32_40 = arith.constant 32 : index
    %89 = vector.load %arg9[%c0_39, %c32_40] : memref<128x36xf32, #tpu.memory_space<vmem>>, vector<128x4xf32>
    tpu.vector_store %arg9[%c0_39, %c32_40], %88 {strides = array<i32>} : memref<128x36xf32, #tpu.memory_space<vmem>>, vector<128x4xf32>,
    %c0_41 = arith.constant 0 : index
    %c0_42 = arith.constant 0 : index
    %90 = vector.load %arg9[%c0_41, %c0_42] : memref<128x36xf32, #tpu.memory_space<vmem>>, vector<128x36xf32>
    %91 = arith.truncf %90 : vector<128x36xf32> to vector<128x36xbf16>
    %c0_43 = arith.constant 0 : index
    %c0_44 = arith.constant 0 : index
    %92 = vector.load %arg5[%c0_43, %c0_44] : memref<36x4xbf16, #tpu.memory_space<vmem>>, vector<36x4xbf16>
    %cst_45 = arith.constant dense<0.000000e+00> : vector<128x4xf32>
    %93 = tpu.matmul %91, %92, %cst_45 {dimension_numbers = #tpu.dot_dimension_numbers<[1], [0], [0], [1], [0, 0, 1, 1], [], []>} : vector<128x36xbf16>, vector<36x4xbf16>, vector<128x4xf32> -> vector<128x4xf32>
    %c0_46 = arith.constant 0 : index
    %c0_47 = arith.constant 0 : index
    %94 = vector.load %arg6[%c0_46, %c0_47] : memref<1x4xf32, #tpu.memory_space<vmem>>, vector<1x4xf32>
    %95 = vector.broadcast %94 : vector<1x4xf32> to vector<128x4xf32>
    %96 = arith.addf %93, %95 : vector<128x4xf32>
    %97 = vector.shape_cast %96 : vector<128x4xf32> to vector<8x16x4xf32>
    %98 = vector.extract_strided_slice %5 {offsets = [2, 2, 0], sizes = [8, 16, 4], strides = [1, 1, 1]} : vector<12x26x4xf32> to vector<8x16x4xf32>
    %99 = arith.addf %97, %98 : vector<8x16x4xf32>
    %cst_48 = arith.constant 0.000000e+00 : f32
    %100 = vector.broadcast %cst_48 : f32 to vector<8x16x4xf32>
    %101 = arith.maximumf %99, %100 : vector<8x16x4xf32>
    %c0_49 = arith.constant 0 : index
    %c0_50 = arith.constant 0 : index
    %c0_51 = arith.constant 0 : index
    %c0_52 = arith.constant 0 : index
    %102 = vector.load %arg7[%c0_49, %c0_50, %c0_51, %c0_52] : memref<1x8x16x4xf32, #tpu.memory_space<vmem>>, vector<1x8x16x4xf32>
    %103 = vector.shape_cast %102 : vector<1x8x16x4xf32> to vector<8x16x4xf32>
    %104 = vector.shape_cast %101 : vector<8x16x4xf32> to vector<1x8x16x4xf32>
    tpu.vector_store %arg7[%c0_49, %c0_50, %c0_51, %c0_52], %104 {strides = array<i32>} : memref<1x8x16x4xf32, #tpu.memory_space<vmem>>, vector<1x8x16x4xf32>,
    return
  }
  func.func @transform_0(%arg0: i32, %arg1: i32) -> (i32, i32, i32, i32) {
    %c0_i32 = arith.constant 0 : i32
    %c0_i32_0 = arith.constant 0 : i32
    %c0_i32_1 = arith.constant 0 : i32
    %c0_i32_2 = arith.constant 0 : i32
    return %arg0, %c0_i32, %c0_i32_0, %c0_i32_1 : i32, i32, i32, i32
  }
  func.func @transform_1(%arg0: i32, %arg1: i32) -> (i32, i32) {
    %c0_i32 = arith.constant 0 : i32
    %c0_i32_0 = arith.constant 0 : i32
    %c0_i32_1 = arith.constant 0 : i32
    return %c0_i32, %c0_i32_0 : i32, i32
  }
  func.func @transform_2(%arg0: i32, %arg1: i32) -> (i32, i32) {
    %c0_i32 = arith.constant 0 : i32
    %c0_i32_0 = arith.constant 0 : i32
    %c0_i32_1 = arith.constant 0 : i32
    return %c0_i32, %c0_i32_0 : i32, i32
  }
  func.func @transform_3(%arg0: i32, %arg1: i32) -> (i32, i32) {
    %c0_i32 = arith.constant 0 : i32
    %c0_i32_0 = arith.constant 0 : i32
    %c0_i32_1 = arith.constant 0 : i32
    return %c0_i32, %c0_i32_0 : i32, i32
  }
  func.func @transform_4(%arg0: i32, %arg1: i32) -> (i32, i32) {
    %c0_i32 = arith.constant 0 : i32
    %c0_i32_0 = arith.constant 0 : i32
    %c0_i32_1 = arith.constant 0 : i32
    return %c0_i32, %c0_i32_0 : i32, i32
  }
  func.func @transform_5(%arg0: i32, %arg1: i32) -> (i32, i32, i32, i32) {
    %c0_i32 = arith.constant 0 : i32
    %c0_i32_0 = arith.constant 0 : i32
    %c0_i32_1 = arith.constant 0 : i32
    return %arg0, %arg1, %c0_i32, %c0_i32_0 : i32, i32, i32, i32
  }
}

</mosaic_0001>

<bundles_post_ra>
// kernel: basic_block_forward.1
= control target key start
LH: loop header
LB: loop body
LE: loop exit
PB: predicated region body
PF: predicated region fallthrough
CT: control target
= control target key end

     0   :  { %s3745_s18 = smov 0   ;;  %s3747_s19 = smov 0   ;;  %s5899_s0 = inlined_call_operand.vmem [shape: bf16[2,20,26,4], index: 0, kind: input, shape index: {}]   ;;  %s5900_s1 = inlined_call_operand.vmem [shape: bf16[36,4], index: 1, kind: input, shape index: {}]   ;;  %s5901_s2 = inlined_call_operand.vmem [shape: f32[1,4], index: 2, kind: input, shape index: {}]   ;;  %s5902_s3 = inlined_call_operand.vmem [shape: bf16[36,4], index: 3, kind: input, shape index: {}]   ;;  %s5903_s4 = inlined_call_operand.vmem [shape: f32[1,4], index: 4, kind: input, shape index: {}]   ;;  %s5904_s5 = inlined_call_operand.vmem [shape: f32[2,16,16,4], index: 5, kind: output, shape index: {}]  }
   0x1   :  { %s3749_s20 = smov 0   ;;  %s3751_s21 = smov 0  }
   0x2   :  { %s3753_s22 = smov 0  }
   0x3 LB: > { %s24_s23 = sadd.s32 1, %s3697_s20  ;;  %s27_s24 = sadd.s32 1, %s3701_s21  ;;  %s3705_s22 = sphi %s3753_s22, %s15_s22   ;;  %s3701_s21 = sphi %s3751_s21, %s6254_s21   ;;  %s3697_s20 = sphi %s3749_s20, %s6253_s20   ;;  %s3693_s19 = sphi %s3747_s19, %s6252_s19   ;;  %s3689_s18 = sphi %s3745_s18, %s6251_s18  }
   0x4   : > { %p25_p0 = scmp.ge.s32.totalorder %s24_s23, 2  ;;  %p2887_p1 = scmp.ge.s32.totalorder %s3705_s22, 1 }
   0x5   : > { %p201_p2 = scmp.lt.s32.totalorder %s3705_s22, 5 }
   0x6   : > { %s6256_s23 = smov (%p25_p0, %s24_s23), 0  ;;  %s6258_s24 = smov (!%p25_p0, %s27_s24), %s3701_s21 }
   0x7   : > { %p202_p3 = pnand %p2887_p1, %p201_p2  ;;  %p29_p4 = scmp.ge.s32.totalorder %s6258_s24, 2 }
   0x9   : > { %s6260_s24 = smov (%p29_p4, %s6258_s24), 0  ;;  %205 = sbr.rel (%p202_p3) target bundleno = 1213 (0x4bd), region = 40 }
   0xe   : > { %p234_p5 = scmp.lt.s32.totalorder %s3693_s19, 1  ;;  %s2942_s26 = sshll.u32 %s3689_s18, 7  ;;  %vm422_vm0 = vcmask 1046528   ;;  %vm614_vm1 = vcmask 1045504   ;;  %vm351_vm2 = vcmask 31744   ;;  %vm5984_vm3 = vcmask 64544  }
   0xf   : > { %s3707_s6 = smov 4   ;;  %s3708_s7 = smov 8   ;;  %vm5983_vm4 = vcmask 97344   ;;  %vm5982_vm5 = vcmask 130144   ;;  %vm5980_vm6 = vcmask 162944   ;;  %vm5979_vm7 = vcmask 195744  }
  0x10   : > { %s6262_s19 = smov (!%p234_p5, %s3693_s19), 1  ;;  %s3709_s8 = smov 12   ;;  %vm5978_vm8 = vcmask 228544   ;;  %vm5981_vm9 = vcmask 1041408   ;;  %vm1409_vm10 = vcmask 261344   ;;  %vm1537_vm11 = vcmask 294144  }
  0x11   : > { %s3015_s25 = smul.u32 320, %s6262_s19  ;;  %s3710_s9 = smov 16   ;;  %vm5985_vm12 = vcmask 293888  }
  0x12   : > { %s3711_s10 = smov 20   ;;  %s3712_s11 = smov 24  }
  0x13   : > { %s238_s29 = scalar_lea.vmem %s5899_s0, %s3015_s25  ;;  %s3713_s12 = smov 28  }
  0x14   : > { %s3784_s30 = scalar_lea.vmem %s238_s29, %s2942_s26  ;;  %s3714_s13 = smov 32  }
  0x15   : > { %v261_v0 = vld [vmem:[%s3784_s30 + $0x18] sm:$0xf]  ;;  %v3788_v1 = vld [vmem:[%s3784_s30 + $0x1c] sm:$0x1]  ;;  %v2996_v2 = vld [vmem:[%s3784_s30 + $0x20] sm:$0xff]   ;;  %s4985_s27 = sshll.u32 %s3689_s18, 3 }
  0x16   : > { %v3791_v3 = vunpack.c.l.bf16 %v2996_v2  ;;  %v3793_v4 = vunpack.c.h.bf16 %v2996_v2  ;;  %v3795_v5 = vunpack.c.l.bf16 %v261_v0  ;;  %v5905_v6 = vunpack.c.l.bf16 %v3788_v1  ;;  %v2995_v7 = vld [vmem:[%s3784_s30 + $0x10] sm:$0xff]   ;;  %v265_v8 = vld [vmem:[%s3784_s30 + $0x28] sm:$0xf]  ;;  %v2948_v9 = vld [vmem:[%s3784_s30] sm:$0xff]   ;;  %s2919_s28 = sadd.s32 4294967295, %s4985_s27  ;;  %p242_p6 = scmp.lt.s32.totalorder %s4985_s27, 15 }
  0x17   : > { %v3801_v10 = vunpack.c.h.bf16 %v2995_v7  ;;  %v3803_v11 = vunpack.c.l.bf16 %v2995_v7  ;;  %v3805_v12 = vunpack.c.l.bf16 %v265_v8  ;;  %v3807_v13 = vunpack.c.l.bf16 %v2948_v9  ;;  %v257_v14 = vld [vmem:[%s3784_s30 + $0x8] sm:$0xf]  ;;  %v2999_v29 = vld [vmem:[%s3784_s30 + $0x50] sm:$0xff]   ;;  %v3835_v30 = vld [vmem:[%s3784_s30 + $0xc] sm:$0x1] }
  0x18   : > { %v433_v15 = vrot.slane %v3795_v5, 1  ;;  %v435_v16 = vrot.slane %v5905_v6, 1  ;;  %v437_v17 = vrot.slane %v3791_v3, 1  ;;  %v438_v18 = vrot.slane %v3793_v4, 1  ;;  %v273_v28 = vld [vmem:[%s3784_s30 + $0x48] sm:$0xf] }
  0x19   : > { %v431_v19 = vrot.slane %v3801_v10, 1  ;;  %v430_v20 = vrot.slane %v3803_v11, 1  ;;  %v3817_v21 = vunpack.c.h.bf16 %v2948_v9  ;;  %v3822_v23 = vunpack.c.l.bf16 %v257_v14  ;;  %v3843_v34 = vld [vmem:[%s3784_s30 + $0x4c] sm:$0x1]  ;;  %v3001_v45 = vld [vmem:[%s3784_s30 + $0x70] sm:$0xff]   ;;  %v2998_v48 = vld [vmem:[%s3784_s30 + $0x40] sm:$0xff]  }
  0x1a   : > { %v3820_v22 = vsel %vm422_vm0, %v433_v15, %v435_v16  ;;  %v423_v24 = vrot.slane %v3807_v13, 1  ;;  %v440_v27 = vrot.slane %v3805_v12, 1  ;;  %v3846_v35 = vsel %vm422_vm0, %v437_v17, %v438_v18  ;;  %v281_v49 = vld [vmem:[%s3784_s30 + $0x68] sm:$0xf]  ;;  %v3871_v50 = vld [vmem:[%s3784_s30 + $0x6c] sm:$0x1] }
  0x1b   : > { %v3826_v25 = vsel %vm422_vm0, %v431_v19, %v433_v15  ;;  %v3829_v26 = vsel %vm422_vm0, %v430_v20, %v431_v19  ;;  %v424_v33 = vrot.slane %v3817_v21, 1  ;;  %v426_v36 = vrot.slane %v3822_v23, 1  ;;  %v3000_v9 = vld [vmem:[%s3784_s30 + $0x60] sm:$0xff]   ;;  %v3003_v19 = vld [vmem:[%s3784_s30 + $0x90] sm:$0xff]   ;;  %357 = vst.msk [vmem:[#allocation2 + $0x28] sm:$0xff] %vm351_vm2, %v3795_v5  ;;  %s6264_s27 = smov (!%p242_p6, %s4985_s27), 15 }
  0x1c   : > { %v3074_v31 = vpack.i.bf16 %v3820_v22, %v3826_v25  ;;  %v3851_v38 = vunpack.c.l.bf16 %v2999_v29  ;;  %v3853_v39 = vunpack.c.l.bf16 %v273_v28  ;;  %v5911_v40 = vunpack.c.l.bf16 %v3835_v30  ;;  %356 = vst.msk [vmem:[#allocation2 + $0x20] sm:$0xff] %vm351_vm2, %v3801_v10 }
  0x1d   : > { %v425_v37 = vsel %vm422_vm0, %v423_v24, %v424_v33  ;;  %v3859_v41 = vsel %vm422_vm0, %v438_v18, %v440_v27  ;;  %v427_v42 = vsel %vm422_vm0, %v424_v33, %v426_v36  ;;  %v3862_v43 = vunpack.c.h.bf16 %v2999_v29  ;;  %v289_v18 = vld [vmem:[%s3784_s30 + $0x88] sm:$0xf]  ;;  %v3922_v24 = vld [vmem:[%s3784_s30 + $0x8c] sm:$0x1]  ;;  %v2997_v33 = vld [vmem:[%s3784_s30 + $0x30] sm:$0xff]   ;;  %352 = vst.msk [vmem:[#allocation2] sm:$0xff] %vm351_vm2, %v3807_v13 }
  0x1e   : > { %3075 = vrot.lane.b32.xlu1 %v3074_v31, %s3707_s6  ;;  %5992 = vst [vmem:[#allocation4_spill] sm:$0xff] %v3859_v41  ;;  %v5909_v44 = vunpack.c.l.bf16 %v3843_v34  ;;  %v3064_v46 = vpack.i.bf16 %v427_v42, %v425_v37  ;;  %v428_v47 = vrot.slane %v5911_v40, 1  ;;  %v3875_v51 = vpack.i.bf16 %v3859_v41, %v3846_v35  ;;  %v3929_v31 = vld [vmem:[%s3784_s30 + $0x2c] sm:$0x1]  ;;  %v4161_v41 = vld [vmem:[%s3784_s30 + $0x9c] sm:$0x1] }
  0x1f   : > { %v454_v52 = vrot.slane %v3853_v39, 1  ;;  %v458_v53 = vrot.slane %v3851_v38, 1  ;;  %v3880_v54 = vunpack.c.l.bf16 %v3001_v45  ;;  %v5910_v56 = vrot.slane %v3862_v43, 1  ;;  %353 = vst.msk [vmem:[#allocation2 + $0x8] sm:$0xff] %vm351_vm2, %v3817_v21 }
  0x20   : > { %5993 = vst [vmem:[#allocation5_spill] sm:$0xff] %v3875_v51  ;;  %3065 = vrot.lane.b32.xlu0 %v3064_v46, %s3707_s6  ;;  %v456_v55 = vrot.slane %v5909_v44, 1  ;;  %v429_v57 = vsel %vm422_vm0, %v426_v36, %v428_v47  ;;  %v3886_v58 = vunpack.c.l.bf16 %v2998_v48  ;;  %v3888_v59 = vunpack.c.h.bf16 %v3001_v45 }
  0x21   : > { %v3890_v60 = vunpack.c.l.bf16 %v281_v49  ;;  %v5906_v61 = vunpack.c.l.bf16 %v3871_v50  ;;  %v3893_v62 = vunpack.c.h.bf16 %v2998_v48  ;;  %v3069_v63 = vpack.i.bf16 %v3829_v26, %v429_v57  ;;  %354 = vst.msk [vmem:[#allocation2 + $0x10] sm:$0xff] %vm351_vm2, %v3822_v23 }
  0x22   : > { %v3899_v0 = vsel %vm422_vm0, %v454_v52, %v456_v55  ;;  %v3904_v2 = vsel %vm422_vm0, %v458_v53, %v5910_v56  ;;  %v451_v7 = vrot.slane %v3886_v58, 1  ;;  %v472_v16 = vrot.slane %v3880_v54, 1  ;;  %355 = vst.msk [vmem:[#allocation2 + $0x18] sm:$0xff] %vm351_vm2, %v3803_v11 }
  0x23   : > { %5994 = vst [vmem:[#allocation6_spill] sm:$0xff] %v3899_v0  ;;  %v452_v8 = vrot.slane %v3893_v62, 1  ;;  %v468_v14 = vrot.slane %v3890_v60, 1  ;;  %v470_v15 = vrot.slane %v5906_v61, 1  ;;  %v5907_v17 = vrot.slane %v3888_v59, 1 }
  0x24   : > { %v3918_v20 = vpack.i.bf16 %v3904_v2, %v3899_v0  ;;  %v3924_v28 = vunpack.c.l.bf16 %v3000_v9  ;;  %v3926_v29 = vunpack.c.h.bf16 %v3000_v9  ;;  %v3946_v46 = vunpack.c.l.bf16 %v3003_v19  ;;  %v285_v0 = vld [vmem:[%s3784_s30 + $0x78] sm:$0xf]  ;;  %358 = vst.msk [vmem:[#allocation2 + $0x30] sm:$0xff] %vm351_vm2, %v3791_v3 }
  0x25   : > { %v3933_v36 = vsel %vm422_vm0, %v451_v7, %v452_v8  ;;  %v3936_v37 = vsel %vm422_vm0, %v452_v8, %v454_v52  ;;  %v3939_v42 = vsel %vm422_vm0, %v468_v14, %v470_v15  ;;  %v3944_v45 = vsel %vm422_vm0, %v472_v16, %v5907_v17  ;;  %v3002_v15 = vld [vmem:[%s3784_s30 + $0x80] sm:$0xff]   ;;  %359 = vst.msk [vmem:[#allocation2 + $0x38] sm:$0xff] %vm351_vm2, %v3793_v4 }
  0x26   : > { %3080 = vrot.lane.b32.xlu1 %v3875_v51, %s3707_s6  ;;  %5995 = vst [vmem:[#allocation7_spill] sm:$0xff] %v3918_v20  ;;  %v3948_v47 = vunpack.c.h.bf16 %v3003_v19  ;;  %v3950_v48 = vunpack.c.l.bf16 %v289_v18  ;;  %v5908_v49 = vunpack.c.l.bf16 %v3922_v24  ;;  %v3953_v53 = vunpack.c.l.bf16 %v2997_v33 }
  0x27   : > { %5996 = vst [vmem:[#allocation8_spill] sm:$0xff] %v3936_v37  ;;  %v314_v52 = vunpack.c.l.bf16 %v3929_v31  ;;  %v3960_v55 = vpack.i.bf16 %v3936_v37, %v3933_v36  ;;  %v465_v57 = vrot.slane %v3924_v28, 1  ;;  %v3964_v7 = vunpack.c.h.bf16 %v2997_v33 }
  0x28   : > { %3070 = vrot.lane.b32.xlu0 %v3069_v63, %s3707_s6  ;;  %5997 = vst [vmem:[#allocation9_spill] sm:$0xff] %v3939_v42  ;;  %v466_v63 = vrot.slane %v3926_v29, 1  ;;  %v444_v9 = vrot.slane %v3953_v53, 1  ;;  %v3971_v18 = vpack.i.bf16 %v3944_v45, %v3939_v42  ;;  %v482_v19 = vrot.slane %v3950_v48, 1  ;;  %v4062_v42 = vld [vmem:[%s3784_s30 + $0x5c] sm:$0x1] }
  0x29   : > { %5998 = vst [vmem:[#allocation10_spill] sm:$0xff] %v3944_v45  ;;  %v442_v8 = vrot.slane %v314_v52, 1  ;;  %v445_v16 = vrot.slane %v3964_v7, 1  ;;  %v484_v31 = vrot.slane %v5908_v49, 1  ;;  %v486_v32 = vrot.slane %v3946_v46, 1 }
  0x2a   : > { %5999 = vst [vmem:[#allocation11_spill] sm:$0xff] %v3960_v55  ;;  %v5915_v6 = vrot.slane %v3948_v47, 1  ;;  %v3986_v61 = vsel %vm422_vm0, %v465_v57, %v466_v63  ;;  %v3992_v49 = vsel %vm422_vm0, %v466_v63, %v468_v14  ;;  %v3994_v44 = vunpack.c.l.bf16 %v3002_v15  ;;  %v269_v57 = vld [vmem:[%s3784_s30 + $0x38] sm:$0xf] }
  0x2b   : > { %6000 = vst [vmem:[#allocation12_spill] sm:$0xff] %v3971_v18  ;;  %v3979_v33 = vsel %vm422_vm0, %v440_v27, %v442_v8  ;;  %v3989_v17 = vsel %vm422_vm0, %v444_v9, %v445_v16  ;;  %v3996_v27 = vunpack.c.h.bf16 %v3002_v15  ;;  %v4003_v56 = vsel %vm422_vm0, %v482_v19, %v484_v31  ;;  %v4009_v9 = vld [vmem:[%s3784_s30 + $0x3c] sm:$0x1] }
  0x2c   : > { %6001 = vst [vmem:[#allocation13_spill] sm:$0xff] %v3979_v33  ;;  %v4000_v8 = vpack.i.bf16 %v3989_v17, %v3979_v33  ;;  %v4016_v14 = vsel %vm422_vm0, %v486_v32, %v5915_v6  ;;  %v4020_v63 = vpack.i.bf16 %v3992_v49, %v3986_v61  ;;  %v4022_v15 = vunpack.c.l.bf16 %v269_v57 }
  0x2d   : > { %6002 = vst [vmem:[#allocation14_spill] sm:$0xff] %v3992_v49  ;;  %v5919_v31 = vunpack.c.l.bf16 %v4009_v9  ;;  %v479_v40 = vrot.slane %v3994_v44, 1  ;;  %v4032_v32 = vpack.i.bf16 %v4016_v14, %v4003_v56  ;;  %v618_v57 = vrot.slane %v3822_v23, 2 }
  0x2e   : > { %3100 = vrot.lane.b32.xlu1 %v3918_v20, %s3707_s6  ;;  %6003 = vst [vmem:[#allocation15_spill] sm:$0xff] %v4000_v8  ;;  %3085 = vrot.lane.b32.xlu2 %v4000_v8, %s3707_s6  ;;  %v447_v20 = vrot.slane %v4022_v15, 1  ;;  %v6008_v6 = vunpack.c.l.bf16 %v3835_v30  ;;  %v622_v8 = vrot.slane %v3803_v11, 2  ;;  %v6015_v37 = vrot.slane %v3862_v43, 1 }
  0x2f   : > { %6004 = vst [vmem:[#allocation16_spill] sm:$0xff] %v4003_v56  ;;  %v6066_v23 = vunpack.c.l.bf16 %v4161_v41 }
  0x30   : > { %3095 = vrot.lane.b32.xlu0 %v3960_v55, %s3707_s6  ;;  %6005 = vst [vmem:[#allocation17_spill] sm:$0xff] %v4016_v14  ;;  %v480_v55 = vrot.slane %v3996_v27, 1  ;;  %v620_v51 = vrot.slane %v6008_v6, 2 }
  0x31   : > { %6006 = vst [vmem:[#allocation18_spill] sm:$0xff] %v4020_v63 }
  0x32   : > { %6007 = vst [vmem:[#allocation19_spill] sm:$0xff] %v4032_v32  ;;  %v4048_v56 = vsel %vm422_vm0, %v479_v40, %v480_v55  ;;  %v4051_v14 = vsel %vm422_vm0, %v480_v55, %v482_v19  ;;  %v621_v30 = vsel %vm614_vm1, %v618_v57, %v620_v51  ;;  %v6012_v40 = vrot.slane %v3801_v10, 2 }
  0x33   : > { %6009 = vst [vmem:[#allocation20_spill] sm:$0xff] %v4048_v56  ;;  %v4073_v55 = vpack.i.bf16 %v4051_v14, %v4048_v56  ;;  %v5931_v51 = vunpack.c.l.bf16 %v4062_v42  ;;  %v615_v19 = vrot.slane %v3807_v13, 2  ;;  %v6023_v56 = vrot.slane %v3888_v59, 1 }
  0x34   : > { %6010 = vst [vmem:[#allocation21_spill] sm:$0xff] %v4051_v14  ;;  %v634_v14 = vrot.slane %v314_v52, 2 }
  0x35   : > { %6014 = vst [vmem:[#allocation24_spill] sm:$0xff] %v4073_v55 }
  0x36   : > { %3115 = vrot.lane.b32.xlu1 %v3971_v18, %s3707_s6  ;;  %v449_v18 = vrot.slane %v5919_v31, 1  ;;  %v4042_v31 = vsel %vm422_vm0, %v445_v16, %v447_v20  ;;  %v277_v16 = vld [vmem:[%s3784_s30 + $0x58] sm:$0xf]  ;;  %360 = vst.msk [vmem:[#allocation2 + $0x40] sm:$0xff] %vm351_vm2, %v3805_v12 }
  0x37   : > { %361 = vst.msk [vmem:[#allocation2 + $0x48] sm:$0xff] %vm351_vm2, %v3953_v53 }
  0x38   : > { %3110 = vrot.lane.b32.xlu0 %v4020_v63, %s3707_s6  ;;  %v4045_v49 = vsel %vm422_vm0, %v447_v20, %v449_v18  ;;  %v4069_v20 = vsel %vm614_vm1, %v622_v8, %v6012_v40  ;;  %v4075_v18 = vunpack.c.l.bf16 %v277_v16  ;;  %v463_v8 = vrot.slane %v5931_v51, 1  ;;  %362 = vst.msk [vmem:[#allocation2 + $0x50] sm:$0xff] %vm351_vm2, %v3964_v7 }
  0x39   : > { %v4055_v6 = vpack.i.bf16 %v4045_v49, %v4042_v31  ;;  %6013 = vst [vmem:[#allocation23_spill] sm:$0xff] %v4069_v20  ;;  %v3144_v40 = vpack.i.bf16 %v4069_v20, %v621_v30  ;;  %v632_v63 = vrot.slane %v3805_v12, 2  ;;  %v636_v16 = vrot.slane %v3953_v53, 2 }
  0x3a   : > { %363 = vst.msk [vmem:[#allocation2 + $0x58] sm:$0xff] %vm351_vm2, %v4022_v15 }
  0x3b   : > { %6011 = vst [vmem:[#allocation22_spill] sm:$0xff] %v4055_v6  ;;  %3090 = vrot.lane.b32.xlu2 %v4055_v6, %s3707_s6  ;;  %v616_v6 = vrot.slane %v3817_v21, 2  ;;  %v3229_v21 = vpack.i.bf16 %v3964_v7, %v3953_v53 }
  0x3c   : > { %364 = vst.msk [vmem:[#allocation2 + $0x60] sm:$0xff] %vm351_vm2, %v3886_v58 }
  0x3d   : > { %v617_v30 = vsel %vm614_vm1, %v615_v19, %v616_v6  ;;  %v619_v51 = vsel %vm614_vm1, %v616_v6, %v618_v57  ;;  %v4118_v19 = vunpack.c.l.bf16 %v285_v0  ;;  %v646_v0 = vrot.slane %v3853_v39, 2  ;;  %365 = vst.msk [vmem:[#allocation2 + $0x68] sm:$0xff] %vm351_vm2, %v3893_v62 }
  0x3e   : > { %3130 = vrot.lane.b32.xlu1 %v4032_v32, %s3707_s6  ;;  %v461_v32 = vrot.slane %v4075_v18, 1  ;;  %v3139_v6 = vpack.i.bf16 %v619_v51, %v617_v30  ;;  %v6022_v51 = vunpack.c.l.bf16 %v3843_v34  ;;  %366 = vst.msk [vmem:[#allocation2 + $0x70] sm:$0xff] %vm351_vm2, %v3853_v39 }
  0x3f   : > { %v475_v20 = vrot.slane %v4118_v19, 1  ;;  %367 = vst.msk [vmem:[#allocation2 + $0x78] sm:$0xff] %vm351_vm2, %v3851_v38 }
  0x40   : > { %3125 = vrot.lane.b32.xlu0 %v4073_v55, %s3707_s6  ;;  %v4092_v45 = vsel %vm422_vm0, %v6015_v37, %v461_v32  ;;  %v4095_v33 = vsel %vm422_vm0, %v461_v32, %v463_v8  ;;  %v4104_v55 = vsel %vm614_vm1, %v632_v63, %v634_v14  ;;  %v4110_v37 = vld [vmem:[%s3784_s30 + $0x7c] sm:$0x1]  ;;  %v6019_v32 = vrot.slane %v3964_v7, 2  ;;  %368 = vst.msk [vmem:[#allocation2 + $0x80] sm:$0xff] %vm351_vm2, %v3862_v43 }
  0x41   : > { %6016 = vst [vmem:[#allocation25_spill] sm:$0xff] %v4092_v45  ;;  %v4101_v52 = vpack.i.bf16 %v4095_v33, %v4092_v45  ;;  %v5938_v14 = vunpack.c.l.bf16 %v4110_v37  ;;  %v629_v8 = vrot.slane %v3791_v3, 2  ;;  %v648_v30 = vrot.slane %v6022_v51, 2 }
  0x42   : > { %6018 = vst [vmem:[#allocation27_spill] sm:$0xff] %v4104_v55  ;;  %v4116_v57 = vsel %vm614_vm1, %v636_v16, %v6019_v32  ;;  %v650_v32 = vrot.slane %v3851_v38, 2  ;;  %v4139_v45 = vsel %vm422_vm0, %v6023_v56, %v475_v20  ;;  %v293_v56 = vld [vmem:[%s3784_s30 + $0x98] sm:$0xf] }
  0x43   : > { %6017 = vst [vmem:[#allocation26_spill] sm:$0xff] %v4101_v52  ;;  %3105 = vrot.lane.b32.xlu2 %v4101_v52, %s3707_s6  ;;  %v630_v52 = vrot.slane %v3793_v4, 2  ;;  %v4128_v16 = vpack.i.bf16 %v4116_v57, %v4104_v55  ;;  %v4155_v51 = vsel %vm614_vm1, %v646_v0, %v648_v30  ;;  %v643_v30 = vrot.slane %v3886_v58, 2 }
  0x44   : > { %6020 = vst [vmem:[#allocation28_spill] sm:$0xff] %v4116_v57 }
  0x45   : > { %6021 = vst [vmem:[#allocation29_spill] sm:$0xff] %v4128_v16  ;;  %v4145_v55 = vsel %vm614_vm1, %v629_v8, %v630_v52  ;;  %v4148_v34 = vsel %vm614_vm1, %v630_v52, %v632_v63  ;;  %v4174_v8 = vunpack.c.l.bf16 %v293_v56  ;;  %v6035_v56 = vunpack.c.l.bf16 %v3871_v50 }
  0x46   : > { %3145 = vrot.lane.b32.xlu1 %v3144_v40, %s3708_s7  ;;  %v477_v40 = vrot.slane %v5938_v14, 1  ;;  %6024 = vst [vmem:[#allocation30_spill] sm:$0xff] %v4139_v45  ;;  %v4172_v52 = vpack.i.bf16 %v4148_v34, %v4145_v55 }
  0x47   : > { %6026 = vst [vmem:[#allocation32_spill] sm:$0xff] %v4145_v55  ;;  %v489_v57 = vrot.slane %v4174_v8, 1  ;;  %v664_v55 = vrot.slane %v3880_v54, 2 }
  0x48   : > { %3140 = vrot.lane.b32.xlu0 %v3139_v6, %s3708_s7  ;;  %v4142_v14 = vsel %vm422_vm0, %v475_v20, %v477_v40  ;;  %6027 = vst [vmem:[#allocation33_spill] sm:$0xff] %v4148_v34  ;;  %v6030_v20 = vrot.slane %v3862_v43, 2  ;;  %v5950_v40 = vunpack.c.l.bf16 %v4161_v41  ;;  %v662_v34 = vrot.slane %v6035_v56, 2 }
  0x49   : > { %6025 = vst [vmem:[#allocation31_spill] sm:$0xff] %v4142_v14  ;;  %v4152_v6 = vpack.i.bf16 %v4142_v14, %v4139_v45  ;;  %v6036_v45 = vrot.slane %v3948_v47, 1  ;;  %v657_v56 = vrot.slane %v3924_v28, 2 }
  0x4a   : > { %6029 = vst [vmem:[#allocation35_spill] sm:$0xff] %v4155_v51  ;;  %v4168_v63 = vsel %vm614_vm1, %v650_v32, %v6030_v20  ;;  %v660_v20 = vrot.slane %v3890_v60, 2 }
  0x4b   : > { %6028 = vst [vmem:[#allocation34_spill] sm:$0xff] %v4152_v6  ;;  %3120 = vrot.lane.b32.xlu2 %v4152_v6, %s3707_s6  ;;  %v644_v6 = vrot.slane %v3893_v62, 2  ;;  %v4184_v32 = vpack.i.bf16 %v4168_v63, %v4155_v51  ;;  %v4195_v14 = vsel %vm422_vm0, %v6036_v45, %v489_v57  ;;  %v5959_v51 = vrot.slane %v3888_v59, 2 }
  0x4c   : > { %6031 = vst [vmem:[#allocation36_spill] sm:$0xff] %v4168_v63 }
  0x4d   : > { %6032 = vst [vmem:[#allocation37_spill] sm:$0xff] %v4172_v52  ;;  %v4202_v63 = vsel %vm614_vm1, %v643_v30, %v644_v6  ;;  %v4228_v30 = vsel %vm614_vm1, %v664_v55, %v5959_v51  ;;  %v674_v55 = vrot.slane %v3950_v48, 2  ;;  %v6047_v51 = vunpack.c.l.bf16 %v3922_v24 }
  0x4e   : > { %3160 = vrot.lane.b32.xlu1 %v4128_v16, %s3708_s7  ;;  %6033 = vst [vmem:[#allocation38_spill] sm:$0xff] %v4174_v8  ;;  %v491_v16 = vrot.slane %v5950_v40, 1  ;;  %v639_v24 = vrot.slane %v4022_v15, 2 }
  0x4f   : > { %6034 = vst [vmem:[#allocation39_spill] sm:$0xff] %v4184_v32 }
  0x50   : > { %3155 = vrot.lane.b32.xlu0 %v4172_v52, %s3708_s7  ;;  %v4198_v40 = vsel %vm422_vm0, %v489_v57, %v491_v16  ;;  %6037 = vst [vmem:[#allocation40_spill] sm:$0xff] %v4202_v63  ;;  %v4205_v52 = vsel %vm614_vm1, %v644_v6, %v646_v0  ;;  %v625_v57 = vrot.slane %v3795_v5, 2  ;;  %v6041_v16 = vunpack.c.l.bf16 %v3788_v1 }
  0x51   : > { %6038 = vst [vmem:[#allocation41_spill] sm:$0xff] %v4205_v52  ;;  %v4209_v50 = vpack.i.bf16 %v4198_v40, %v4195_v14  ;;  %v4217_v45 = vpack.i.bf16 %v4205_v52, %v4202_v63  ;;  %v4223_v6 = vsel %vm614_vm1, %v660_v20, %v662_v34  ;;  %v676_v63 = vrot.slane %v6047_v51, 2 }
  0x52   : > { %v627_v0 = vrot.slane %v6041_v16, 2  ;;  %6042 = vst [vmem:[#allocation44_spill] sm:$0xff] %v4223_v6  ;;  %v4244_v16 = vpack.i.bf16 %v4228_v30, %v4223_v6  ;;  %v6051_v51 = vunpack.c.l.bf16 %v4009_v9 }
  0x53   : > { %6039 = vst [vmem:[#allocation42_spill] sm:$0xff] %v4209_v50  ;;  %3135 = vrot.lane.b32.xlu2 %v4209_v50, %s3707_s6  ;;  %v658_v50 = vrot.slane %v3926_v29, 2 }
  0x54   : > { %6040 = vst [vmem:[#allocation43_spill] sm:$0xff] %v4217_v45  ;;  %v4238_v1 = vsel %vm614_vm1, %v625_v57, %v627_v0  ;;  %v641_v6 = vrot.slane %v6051_v51, 2  ;;  %v6059_v51 = vunpack.c.l.bf16 %v4062_v42  ;;  %v3214_v42 = vpack.i.bf16 %v3801_v10, %v3803_v11 }
  0x55   : > { %6043 = vst [vmem:[#allocation45_spill] sm:$0xff] %v4228_v30  ;;  %v4254_v0 = vsel %vm614_vm1, %v657_v56, %v658_v50  ;;  %v4270_v56 = vsel %vm614_vm1, %v674_v55, %v676_v63  ;;  %v681_v11 = vrot.slane %v4174_v8, 2 }
  0x56   : > { %3175 = vrot.lane.b32.xlu1 %v4184_v32, %s3708_s7  ;;  %v6044_v32 = vrot.slane %v3801_v10, 2  ;;  %6046 = vst [vmem:[#allocation47_spill] sm:$0xff] %v4244_v16  ;;  %v4283_v30 = vsel %vm614_vm1, %v639_v24, %v641_v6 }
  0x57   : > { %6048 = vst [vmem:[#allocation48_spill] sm:$0xff] %v4254_v0 }
  0x58   : > { %v4235_v52 = vsel %vm614_vm1, %v6044_v32, %v625_v57  ;;  %3170 = vrot.lane.b32.xlu0 %v4217_v45, %s3708_s7  ;;  %v678_v32 = vrot.slane %v3946_v46, 2  ;;  %v679_v57 = vrot.slane %v3948_v47, 2  ;;  %369 = vst.msk [vmem:[#allocation2 + $0x88] sm:$0xff] %vm351_vm2, %v4075_v18 }
  0x59   : > { %6045 = vst [vmem:[#allocation46_spill] sm:$0xff] %v4235_v52  ;;  %v3149_v34 = vpack.i.bf16 %v4238_v1, %v4235_v52  ;;  %v4257_v52 = vsel %vm614_vm1, %v658_v50, %v660_v20  ;;  %v671_v50 = vrot.slane %v3994_v44, 2 }
  0x5a   : > { %6049 = vst [vmem:[#allocation49_spill] sm:$0xff] %v4257_v52  ;;  %v4264_v45 = vpack.i.bf16 %v4257_v52, %v4254_v0  ;;  %v4273_v20 = vsel %vm614_vm1, %v678_v32, %v679_v57 }
  0x5b   : > { %3150 = vrot.lane.b32.xlu2 %v3149_v34, %s3708_s7  ;;  %6052 = vst [vmem:[#allocation51_spill] sm:$0xff] %v4273_v20  ;;  %v672_v34 = vrot.slane %v3996_v27, 2  ;;  %v4291_v63 = vpack.i.bf16 %v4273_v20, %v4270_v56 }
  0x5c   : > { %6050 = vst [vmem:[#allocation50_spill] sm:$0xff] %v4264_v45 }
  0x5d   : > { %6055 = vst [vmem:[#allocation53_spill] sm:$0xff] %v4291_v63  ;;  %v4296_v32 = vsel %vm614_vm1, %v671_v50, %v672_v34  ;;  %v6060_v50 = vrot.slane %v3862_v43, 2 }
  0x5e   : > { %3190 = vrot.lane.b32.xlu1 %v4244_v16, %s3708_s7  ;;  %v6053_v16 = vrot.slane %v3964_v7, 2  ;;  %6056 = vst [vmem:[#allocation54_spill] sm:$0xff] %v4296_v32 }
  0x5f   : > { %370 = vst.msk [vmem:[#allocation2 + $0x90] sm:$0xff] %vm351_vm2, %v3924_v28 }
  0x60   : > { %v4280_v52 = vsel %vm614_vm1, %v6053_v16, %v639_v24  ;;  %3185 = vrot.lane.b32.xlu0 %v4264_v45, %s3708_s7  ;;  %v4299_v16 = vsel %vm614_vm1, %v672_v34, %v674_v55  ;;  %v653_v24 = vrot.slane %v4075_v18, 2  ;;  %v655_v45 = vrot.slane %v6059_v51, 2  ;;  %371 = vst.msk [vmem:[#allocation2 + $0x98] sm:$0xff] %vm351_vm2, %v3926_v29 }
  0x61   : > { %v4287_v9 = vpack.i.bf16 %v4283_v30, %v4280_v52  ;;  %6057 = vst [vmem:[#allocation55_spill] sm:$0xff] %v4299_v16  ;;  %v4307_v6 = vpack.i.bf16 %v4299_v16, %v4296_v32 }
  0x62   : > { %v4315_v55 = vsel %vm614_vm1, %v6060_v50, %v653_v24  ;;  %v4318_v34 = vsel %vm614_vm1, %v653_v24, %v655_v45  ;;  %v667_v45 = vrot.slane %v4118_v19, 2  ;;  %v6062_v24 = vunpack.c.l.bf16 %v4110_v37  ;;  %372 = vst.msk [vmem:[#allocation2 + $0xa0] sm:$0xff] %vm351_vm2, %v3890_v60 }
  0x63   : > { %6054 = vst [vmem:[#allocation52_spill] sm:$0xff] %v4287_v9  ;;  %3165 = vrot.lane.b32.xlu2 %v4287_v9, %s3708_s7  ;;  %v3219_v9 = vpack.i.bf16 %v3791_v3, %v3795_v5  ;;  %v6063_v5 = vrot.slane %v3888_v59, 2  ;;  %v683_v50 = vrot.slane %v6066_v23, 2 }
  0x64   : > { %6058 = vst [vmem:[#allocation56_spill] sm:$0xff] %v4307_v6  ;;  %v669_v51 = vrot.slane %v6062_v24, 2 }
  0x65   : > { %v4352_v10 = vsel %vm614_vm1, %v6063_v5, %v667_v45  ;;  %v4392_v24 = vsel %vm614_vm1, %v681_v11, %v683_v50  ;;  %373 = vst.msk [vmem:[#allocation2 + $0xa8] sm:$0xff] %vm351_vm2, %v3880_v54  ;;  %v3224_v5 = vpack.i.bf16 %v3805_v12, %v3793_v4  ;;  %v3239_v50 = vpack.i.bf16 %v3853_v39, %v3893_v62 }
  0x66   : > { %3205 = vrot.lane.b32.xlu1 %v4291_v63, %s3708_s7  ;;  %v4322_v63 = vpack.i.bf16 %v4318_v34, %v4315_v55  ;;  %6064 = vst [vmem:[#allocation58_spill] sm:$0xff] %v4352_v10  ;;  %v4355_v13 = vsel %vm614_vm1, %v667_v45, %v669_v51  ;;  %v4389_v45 = vsel %vm614_vm1, %v679_v57, %v681_v11 }
  0x67   : > { %v4361_v37 = vpack.i.bf16 %v4355_v13, %v4352_v10  ;;  %6067 = vst [vmem:[#allocation60_spill] sm:$0xff] %v4389_v45  ;;  %v4398_v41 = vpack.i.bf16 %v4392_v24, %v4389_v45  ;;  %v3244_v51 = vpack.i.bf16 %v3862_v43, %v3851_v38  ;;  %v3264_v57 = vpack.i.bf16 %v3994_v44, %v4118_v19 }
  0x68   : > { %6061 = vst [vmem:[#allocation57_spill] sm:$0xff] %v4322_v63  ;;  %3200 = vrot.lane.b32.xlu0 %v4307_v6, %s3708_s7  ;;  %v3259_v11 = vpack.i.bf16 %v3888_v59, %v3880_v54  ;;  %v3294_v6 = vpack.i.bf16 %v3846_v35, %v3820_v22 }
  0x69   : > { %6065 = vst [vmem:[#allocation59_spill] sm:$0xff] %v4361_v37 }
  0x6a   : > { %6068 = vst [vmem:[#allocation61_spill] sm:$0xff] %v4398_v41 }
  0x6b   : > { %3180 = vrot.lane.b32.xlu2 %v4322_v63, %s3708_s7  ;;  %374 = vst.msk [vmem:[#allocation2 + $0xb0] sm:$0xff] %vm351_vm2, %v3888_v59 }
  0x6c   : > { %375 = vst.msk [vmem:[#allocation2 + $0xb8] sm:$0xff] %vm351_vm2, %v4118_v19 }
  0x6d   : > { %376 = vst.msk [vmem:[#allocation2 + $0xc0] sm:$0xff] %vm351_vm2, %v3994_v44 }
  0x6e   : > { %3220 = vrot.lane.b32.xlu1 %v3219_v9, %s3709_s8  ;;  %v3234_v9 = vpack.i.bf16 %v3886_v58, %v4022_v15  ;;  %377 = vst.msk [vmem:[#allocation2 + $0xc8] sm:$0xff] %vm351_vm2, %v3996_v27 }
  0x6f   : > { %378 = vst.msk [vmem:[#allocation2 + $0xd0] sm:$0xff] %vm351_vm2, %v3950_v48 }
  0x70   : > { %3215 = vrot.lane.b32.xlu0 %v3214_v42, %s3709_s8  ;;  %v3249_v42 = vpack.i.bf16 %v3924_v28, %v4075_v18  ;;  %379 = vst.msk [vmem:[#allocation2 + $0xd8] sm:$0xff] %vm351_vm2, %v3946_v46 }
  0x71   : > { %380 = vst.msk [vmem:[#allocation2 + $0xe0] sm:$0xff] %vm351_vm2, %v3948_v47 }
  0x72   : > { %381 = vst.msk [vmem:[#allocation2 + $0xe8] sm:$0xff] %vm351_vm2, %v4174_v8 }
  0x73   : > { %3195 = vrot.lane.b32.xlu2 %v4361_v37, %s3708_s7 }
  0x76   : > { %3235 = vrot.lane.b32.xlu1 %v3234_v9, %s3709_s8  ;;  %v4421_v9 = vld [vmem:[%s3784_s30 + $0xa0] sm:$0xff]  }
  0x78   : > { %3230 = vrot.lane.b32.xlu0 %v3229_v21, %s3709_s8  ;;  %v4433_v21 = vunpack.c.l.bf16 %v4421_v9 }
  0x7a   : > { %v3279_v23 = vpack.i.bf16 %v4433_v21, %v4174_v8 }
  0x7b   : > { %3210 = vrot.lane.b32.xlu2 %v4398_v41, %s3708_s7 }
  0x7e   : > { %3250 = vrot.lane.b32.xlu1 %v3249_v42, %s3709_s8  ;;  %v3274_v42 = vpack.i.bf16 %v3948_v47, %v3946_v46 }
  0x80   : > { %3245 = vrot.lane.b32.xlu0 %v3244_v51, %s3709_s8 }
  0x83   : > { %3225 = vrot.lane.b32.xlu2 %v3224_v5, %s3709_s8 }
  0x86   : > { %3265 = vrot.lane.b32.xlu1 %v3264_v57, %s3709_s8 }
  0x88   : > { %3260 = vrot.lane.b32.xlu0 %v3259_v11, %s3709_s8  ;;  %v3086_v51 = vpop.permute.xlu2 %3085 }
  0x89   : > { %v3088_v5 = vunpack.i.h.bf16 %v3086_v51  ;;  %v3087_v63 = vunpack.i.l.bf16 %v3086_v51 }
  0x8b   : > { %3240 = vrot.lane.b32.xlu2 %v3239_v50, %s3709_s8  ;;  %593 = vst.msk [vmem:[#allocation2 + $0x48] sm:$0xff] %vm5984_vm3, %v3088_v5  ;;  %v3254_v50 = vpack.i.bf16 %v3890_v60, %v3926_v29  ;;  %v3309_v5 = vpack.i.bf16 %v3933_v36, %v4045_v49 }
  0x8c   : > { %592 = vst.msk [vmem:[#allocation2 + $0x40] sm:$0xff] %vm5984_vm3, %v3087_v63  ;;  %v6069_v63 = vpack.i.bf16 %v3826_v25, %v3829_v26  ;;  %v3304_v25 = vpack.i.bf16 %v4042_v31, %v3989_v17 }
  0x8e   : > { %3280 = vrot.lane.b32.xlu1 %v3279_v23, %s3709_s8 }
  0x90   : > { %v3076_v57 = vpop.permute.xlu1 %3075  ;;  %3275 = vrot.lane.b32.xlu0 %v3274_v42, %s3709_s8 }
  0x91   : > { %v3078_v11 = vunpack.i.h.bf16 %v3076_v57  ;;  %v3077_v41 = vunpack.i.l.bf16 %v3076_v57 }
  0x92   : > { %v3066_v23 = vpop.permute.xlu0 %3065 }
  0x93   : > { %589 = vst.msk [vmem:[#allocation2 + $0x28] sm:$0xff] %vm5984_vm3, %v3078_v11  ;;  %v3068_v37 = vunpack.i.h.bf16 %v3066_v23  ;;  %v3067_v8 = vunpack.i.l.bf16 %v3066_v23  ;;  %3255 = vrot.lane.b32.xlu2 %v3254_v50, %s3709_s8 }
  0x94   : > { %588 = vst.msk [vmem:[#allocation2 + $0x20] sm:$0xff] %vm5984_vm3, %v3077_v41 }
  0x95   : > { %585 = vst.msk [vmem:[#allocation2 + $0x8] sm:$0xff] %vm5984_vm3, %v3068_v37  ;;  %v3091_v22 = vpop.permute.xlu2 %3090 }
  0x96   : > { %3295 = vrot.lane.b32.xlu1 %v3294_v6, %s3710_s9  ;;  %584 = vst.msk [vmem:[#allocation2] sm:$0xff] %vm5984_vm3, %v3067_v8  ;;  %v3093_v41 = vunpack.i.h.bf16 %v3091_v22  ;;  %v3092_v57 = vunpack.i.l.bf16 %v3091_v22  ;;  %v3269_v8 = vpack.i.bf16 %v3950_v48, %v3996_v27 }
  0x98   : > { %v3081_v35 = vpop.permute.xlu1 %3080  ;;  %3290 = vrot.lane.b32.xlu0 %v6069_v63, %s3710_s9  ;;  %595 = vst.msk [vmem:[#allocation2 + $0x58] sm:$0xff] %vm5984_vm3, %v3093_v41  ;;  %v4494_v41 = vunpack.c.h.bf16 %v4421_v9 }
  0x99   : > { %v3083_v42 = vunpack.i.h.bf16 %v3081_v35  ;;  %v3082_v51 = vunpack.i.l.bf16 %v3081_v35  ;;  %594 = vst.msk [vmem:[#allocation2 + $0x50] sm:$0xff] %vm5984_vm3, %v3092_v57  ;;  %v297_v35 = vld [vmem:[%s3784_s30 + $0xa8] sm:$0xf] }
  0x9a   : > { %v3071_v6 = vpop.permute.xlu0 %3070  ;;  %v4500_v17 = vunpack.c.l.bf16 %v297_v35 }
  0x9b   : > { %591 = vst.msk [vmem:[#allocation2 + $0x38] sm:$0xff] %vm5984_vm3, %v3083_v42  ;;  %v3073_v37 = vunpack.i.h.bf16 %v3071_v6  ;;  %v3072_v11 = vunpack.i.l.bf16 %v3071_v6  ;;  %3270 = vrot.lane.b32.xlu2 %v3269_v8, %s3709_s8  ;;  %v3324_v42 = vpack.i.bf16 %v3986_v61, %v4095_v33  ;;  %v6070_v61 = vld [vmem:[#allocation25_spill] sm:$0xff] }
  0x9c   : > { %590 = vst.msk [vmem:[#allocation2 + $0x30] sm:$0xff] %vm5984_vm3, %v3082_v51  ;;  %v3284_v51 = vpack.i.bf16 %v4500_v17, %v4494_v41  ;;  %v3319_v33 = vpack.i.bf16 %v6070_v61, %v3904_v2  ;;  %v931_v2 = vrot.slane %v4433_v21, 1 }
  0x9d   : > { %587 = vst.msk [vmem:[#allocation2 + $0x18] sm:$0xff] %vm5984_vm3, %v3073_v37  ;;  %v3106_v26 = vpop.permute.xlu2 %3105 }
  0x9e   : > { %3310 = vrot.lane.b32.xlu1 %v3309_v5, %s3710_s9  ;;  %586 = vst.msk [vmem:[#allocation2 + $0x10] sm:$0xff] %vm5984_vm3, %v3072_v11  ;;  %v3108_v49 = vunpack.i.h.bf16 %v3106_v26  ;;  %v3107_v22 = vunpack.i.l.bf16 %v3106_v26  ;;  %v6072_v26 = vld [vmem:[#allocation20_spill] sm:$0xff] }
  0xa0   : > { %v3101_v36 = vpop.permute.xlu1 %3100  ;;  %3305 = vrot.lane.b32.xlu0 %v3304_v25, %s3710_s9  ;;  %601 = vst.msk [vmem:[#allocation2 + $0x88] sm:$0xff] %vm5984_vm3, %v3108_v49  ;;  %v6071_v25 = vld [vmem:[#allocation31_spill] sm:$0xff]  ;;  %v932_v49 = vrot.slane %v4494_v41, 1 }
  0xa1   : > { %v3103_v23 = vunpack.i.h.bf16 %v3101_v36  ;;  %v3102_v50 = vunpack.i.l.bf16 %v3101_v36  ;;  %600 = vst.msk [vmem:[#allocation2 + $0x80] sm:$0xff] %vm5984_vm3, %v3107_v22  ;;  %v3339_v36 = vpack.i.bf16 %v6072_v26, %v6071_v25  ;;  %v6074_v22 = vld [vmem:[#allocation13_spill] sm:$0xff]  ;;  %v6077_v26 = vld [vmem:[#allocation8_spill] sm:$0xff] }
  0xa2   : > { %v3096_v31 = vpop.permute.xlu0 %3095  ;;  %v4531_v61 = vsel %vm422_vm0, %v931_v2, %v932_v49 }
  0xa3   : > { %599 = vst.msk [vmem:[#allocation2 + $0x78] sm:$0xff] %vm5984_vm3, %v3103_v23  ;;  %v3098_v57 = vunpack.i.h.bf16 %v3096_v31  ;;  %v3097_v9 = vunpack.i.l.bf16 %v3096_v31  ;;  %3285 = vrot.lane.b32.xlu2 %v3284_v51, %s3709_s8  ;;  %v6075_v51 = vld [vmem:[#allocation10_spill] sm:$0xff] }
  0xa4   : > { %598 = vst.msk [vmem:[#allocation2 + $0x70] sm:$0xff] %vm5984_vm3, %v3102_v50  ;;  %v6073_v50 = vld [vmem:[#allocation4_spill] sm:$0xff] }
  0xa5   : > { %597 = vst.msk [vmem:[#allocation2 + $0x68] sm:$0xff] %vm5984_vm3, %v3098_v57  ;;  %v3121_v5 = vpop.permute.xlu2 %3120  ;;  %v3299_v35 = vpack.i.bf16 %v6074_v22, %v6073_v50  ;;  %v6076_v57 = vld [vmem:[#allocation30_spill] sm:$0xff]  ;;  %v6079_v22 = vld [vmem:[#allocation17_spill] sm:$0xff] }
  0xa6   : > { %3325 = vrot.lane.b32.xlu1 %v3324_v42, %s3710_s9  ;;  %596 = vst.msk [vmem:[#allocation2 + $0x60] sm:$0xff] %vm5984_vm3, %v3097_v9  ;;  %v3123_v6 = vunpack.i.h.bf16 %v3121_v5  ;;  %v3122_v11 = vunpack.i.l.bf16 %v3121_v5  ;;  %v3334_v9 = vpack.i.bf16 %v6076_v57, %v6075_v51 }
  0xa8   : > { %v3116_v63 = vpop.permute.xlu1 %3115  ;;  %3320 = vrot.lane.b32.xlu0 %v3319_v33, %s3710_s9  ;;  %607 = vst.msk [vmem:[#allocation2 + $0xb8] sm:$0xff] %vm5984_vm3, %v3123_v6 }
  0xa9   : > { %v3118_v8 = vunpack.i.h.bf16 %v3116_v63  ;;  %v3117_v37 = vunpack.i.l.bf16 %v3116_v63  ;;  %606 = vst.msk [vmem:[#allocation2 + $0xb0] sm:$0xff] %vm5984_vm3, %v3122_v11  ;;  %v3354_v11 = vpack.i.bf16 %v4531_v61, %v4198_v40  ;;  %v3349_v40 = vpack.i.bf16 %v4195_v14, %v6079_v22 }
  0xaa   : > { %v3111_v23 = vpop.permute.xlu0 %3110 }
  0xab   : > { %605 = vst.msk [vmem:[#allocation2 + $0xa8] sm:$0xff] %vm5984_vm3, %v3118_v8  ;;  %v3113_v42 = vunpack.i.h.bf16 %v3111_v23  ;;  %v3112_v31 = vunpack.i.l.bf16 %v3111_v23  ;;  %3300 = vrot.lane.b32.xlu2 %v3299_v35, %s3710_s9 }
  0xac   : > { %604 = vst.msk [vmem:[#allocation2 + $0xa0] sm:$0xff] %vm5984_vm3, %v3117_v37 }
  0xad   : > { %603 = vst.msk [vmem:[#allocation2 + $0x98] sm:$0xff] %vm5984_vm3, %v3113_v42  ;;  %v3136_v33 = vpop.permute.xlu2 %3135 }
  0xae   : > { %3340 = vrot.lane.b32.xlu1 %v3339_v36, %s3710_s9  ;;  %602 = vst.msk [vmem:[#allocation2 + $0x90] sm:$0xff] %vm5984_vm3, %v3112_v31  ;;  %v3138_v63 = vunpack.i.h.bf16 %v3136_v33  ;;  %v3137_v37 = vunpack.i.l.bf16 %v3136_v33  ;;  %v6078_v36 = vld [vmem:[#allocation6_spill] sm:$0xff]  ;;  %v6080_v33 = vld [vmem:[#allocation32_spill] sm:$0xff] }
  0xaf   : > { %v3314_v2 = vpack.i.bf16 %v6078_v36, %v6077_v26 }
  0xb0   : > { %v3131_v5 = vpop.permute.xlu1 %3130  ;;  %3335 = vrot.lane.b32.xlu0 %v3334_v9, %s3710_s9  ;;  %613 = vst.msk [vmem:[#allocation2 + $0xe8] sm:$0xff] %vm5984_vm3, %v3138_v63  ;;  %v6081_v63 = vld [vmem:[#allocation14_spill] sm:$0xff] }
  0xb1   : > { %v3133_v6 = vunpack.i.h.bf16 %v3131_v5  ;;  %v3132_v8 = vunpack.i.l.bf16 %v3131_v5  ;;  %612 = vst.msk [vmem:[#allocation2 + $0xe0] sm:$0xff] %vm5984_vm3, %v3137_v37  ;;  %v3369_v5 = vpack.i.bf16 %v6080_v33, %v4238_v1  ;;  %v6083_v1 = vld [vmem:[#allocation23_spill] sm:$0xff] }
  0xb2   : > { %v3126_v25 = vpop.permute.xlu0 %3125 }
  0xb3   : > { %611 = vst.msk [vmem:[#allocation2 + $0xd8] sm:$0xff] %vm5984_vm3, %v3133_v6  ;;  %v3128_v23 = vunpack.i.h.bf16 %v3126_v25  ;;  %v3127_v50 = vunpack.i.l.bf16 %v3126_v25  ;;  %3315 = vrot.lane.b32.xlu2 %v3314_v2, %s3710_s9  ;;  %v6082_v6 = vld [vmem:[#allocation9_spill] sm:$0xff]  ;;  %v6084_v25 = vld [vmem:[#allocation46_spill] sm:$0xff] }
  0xb4   : > { %610 = vst.msk [vmem:[#allocation2 + $0xd0] sm:$0xff] %vm5984_vm3, %v3132_v8  ;;  %v3329_v8 = vpack.i.bf16 %v6082_v6, %v6081_v63  ;;  %v3364_v26 = vpack.i.bf16 %v6084_v25, %v6083_v1  ;;  %v6088_v63 = vld [vmem:[#allocation28_spill] sm:$0xff]  ;;  %v4579_v6 = vld [vmem:[%s3784_s30 + $0xac] sm:$0x1] }
  0xb5   : > { %609 = vst.msk [vmem:[#allocation2 + $0xc8] sm:$0xff] %vm5984_vm3, %v3128_v23  ;;  %v3151_v35 = vpop.permute.xlu2 %3150 }
  0xb6   : > { %3355 = vrot.lane.b32.xlu1 %v3354_v11, %s3710_s9  ;;  %608 = vst.msk [vmem:[#allocation2 + $0xc0] sm:$0xff] %vm5984_vm3, %v3127_v50  ;;  %v3152_v31 = vunpack.i.l.bf16 %v3151_v35  ;;  %v3153_v9 = vunpack.i.h.bf16 %v3151_v35  ;;  %v6085_v35 = vld [vmem:[#allocation40_spill] sm:$0xff] }
  0xb8   : > { %v3146_v42 = vpop.permute.xlu1 %3145  ;;  %3350 = vrot.lane.b32.xlu0 %v3349_v40, %s3710_s9  ;;  %780 = vst.msk [vmem:[#allocation2 + $0x20] sm:$0xff] %vm5983_vm4, %v3152_v31 }
  0xb9   : > { %v3148_v51 = vunpack.i.h.bf16 %v3146_v42  ;;  %v3147_v57 = vunpack.i.l.bf16 %v3146_v42  ;;  %781 = vst.msk [vmem:[#allocation2 + $0x28] sm:$0xff] %vm5983_vm4, %v3153_v9  ;;  %v3384_v42 = vpack.i.bf16 %v6085_v35, %v4283_v30  ;;  %v3379_v30 = vpack.i.bf16 %v4280_v52, %v6088_v63 }
  0xba   : > { %v3141_v14 = vpop.permute.xlu0 %3140 }
  0xbb   : > { %778 = vst.msk [vmem:[#allocation2 + $0x10] sm:$0xff] %vm5983_vm4, %v3147_v57  ;;  %v3143_v37 = vunpack.i.h.bf16 %v3141_v14  ;;  %v3142_v11 = vunpack.i.l.bf16 %v3141_v14  ;;  %3330 = vrot.lane.b32.xlu2 %v3329_v8, %s3710_s9  ;;  %v6087_v57 = vld [vmem:[#allocation16_spill] sm:$0xff] }
  0xbc   : > { %779 = vst.msk [vmem:[#allocation2 + $0x18] sm:$0xff] %vm5983_vm4, %v3148_v51  ;;  %v6086_v51 = vld [vmem:[#allocation21_spill] sm:$0xff] }
  0xbd   : > { %776 = vst.msk [vmem:[#allocation2] sm:$0xff] %vm5983_vm4, %v3142_v11  ;;  %v3166_v36 = vpop.permute.xlu2 %3165  ;;  %v3344_v9 = vpack.i.bf16 %v6087_v57, %v6086_v51  ;;  %v6089_v57 = vld [vmem:[#allocation36_spill] sm:$0xff] }
  0xbe   : > { %3370 = vrot.lane.b32.xlu1 %v3369_v5, %s3711_s10  ;;  %777 = vst.msk [vmem:[#allocation2 + $0x8] sm:$0xff] %vm5983_vm4, %v3143_v37  ;;  %v3168_v23 = vunpack.i.h.bf16 %v3166_v36  ;;  %v3167_v40 = vunpack.i.l.bf16 %v3166_v36  ;;  %v346_v37 = vunpack.c.l.bf16 %v4579_v6 }
  0xc0   : > { %v3161_v2 = vpop.permute.xlu1 %3160  ;;  %3365 = vrot.lane.b32.xlu0 %v3364_v26, %s3711_s10  ;;  %787 = vst.msk [vmem:[#allocation2 + $0x58] sm:$0xff] %vm5983_vm4, %v3168_v23  ;;  %v936_v23 = vrot.slane %v346_v37, 1 }
  0xc1   : > { %v3163_v50 = vunpack.i.h.bf16 %v3161_v2  ;;  %v3162_v22 = vunpack.i.l.bf16 %v3161_v2  ;;  %786 = vst.msk [vmem:[#allocation2 + $0x50] sm:$0xff] %vm5983_vm4, %v3167_v40  ;;  %v934_v2 = vrot.slane %v4500_v17, 1 }
  0xc2   : > { %v3156_v31 = vpop.permute.xlu0 %3155 }
  0xc3   : > { %785 = vst.msk [vmem:[#allocation2 + $0x48] sm:$0xff] %vm5983_vm4, %v3163_v50  ;;  %v3158_v5 = vunpack.i.h.bf16 %v3156_v31  ;;  %v3157_v14 = vunpack.i.l.bf16 %v3156_v31  ;;  %3345 = vrot.lane.b32.xlu2 %v3344_v9, %s3710_s9  ;;  %v3399_v50 = vpack.i.bf16 %v4254_v0, %v4318_v34  ;;  %v4598_v40 = vsel %vm422_vm0, %v934_v2, %v936_v23  ;;  %v6091_v23 = vld [vmem:[#allocation27_spill] sm:$0xff] }
  0xc4   : > { %784 = vst.msk [vmem:[#allocation2 + $0x40] sm:$0xff] %vm5983_vm4, %v3162_v22  ;;  %v4595_v22 = vsel %vm422_vm0, %v932_v49, %v934_v2  ;;  %v3394_v9 = vpack.i.bf16 %v4315_v55, %v6089_v57  ;;  %v6090_v2 = vld [vmem:[#allocation33_spill] sm:$0xff] }
  0xc5   : > { %783 = vst.msk [vmem:[#allocation2 + $0x38] sm:$0xff] %vm5983_vm4, %v3158_v5  ;;  %v3181_v8 = vpop.permute.xlu2 %3180  ;;  %v3359_v34 = vpack.i.bf16 %v4598_v40, %v4595_v22 }
  0xc6   : > { %3385 = vrot.lane.b32.xlu1 %v3384_v42, %s3711_s10  ;;  %782 = vst.msk [vmem:[#allocation2 + $0x30] sm:$0xff] %vm5983_vm4, %v3157_v14  ;;  %v3183_v1 = vunpack.i.h.bf16 %v3181_v8  ;;  %v3182_v25 = vunpack.i.l.bf16 %v3181_v8 }
  0xc8   : > { %v3176_v11 = vpop.permute.xlu1 %3175  ;;  %3380 = vrot.lane.b32.xlu0 %v3379_v30, %s3711_s10  ;;  %793 = vst.msk [vmem:[#allocation2 + $0x88] sm:$0xff] %vm5983_vm4, %v3183_v1 }
  0xc9   : > { %v3178_v26 = vunpack.i.h.bf16 %v3176_v11  ;;  %v3177_v36 = vunpack.i.l.bf16 %v3176_v11  ;;  %792 = vst.msk [vmem:[#allocation2 + $0x80] sm:$0xff] %vm5983_vm4, %v3182_v25  ;;  %v3414_v11 = vpack.i.bf16 %v4296_v32, %v4355_v13  ;;  %v1059_v25 = vrot.slane %v4433_v21, 2  ;;  %v6092_v13 = vld [vmem:[#allocation45_spill] sm:$0xff] }
  0xca   : > { %v3171_v42 = vpop.permute.xlu0 %3170 }
  0xcb   : > { %791 = vst.msk [vmem:[#allocation2 + $0x78] sm:$0xff] %vm5983_vm4, %v3178_v26  ;;  %v3173_v31 = vunpack.i.h.bf16 %v3171_v42  ;;  %v3172_v51 = vunpack.i.l.bf16 %v3171_v42  ;;  %3360 = vrot.lane.b32.xlu2 %v3359_v34, %s3710_s9  ;;  %v1060_v26 = vrot.slane %v4494_v41, 2 }
  0xcc   : > { %790 = vst.msk [vmem:[#allocation2 + $0x70] sm:$0xff] %vm5983_vm4, %v3177_v36 }
  0xcd   : > { %788 = vst.msk [vmem:[#allocation2 + $0x60] sm:$0xff] %vm5983_vm4, %v3172_v51  ;;  %v3196_v5 = vpop.permute.xlu2 %3195  ;;  %v4628_v51 = vsel %vm614_vm1, %v1059_v25, %v1060_v26  ;;  %v6093_v25 = vld [vmem:[#allocation41_spill] sm:$0xff] }
  0xce   : > { %3400 = vrot.lane.b32.xlu1 %v3399_v50, %s3711_s10  ;;  %789 = vst.msk [vmem:[#allocation2 + $0x68] sm:$0xff] %vm5983_vm4, %v3173_v31  ;;  %v3198_v8 = vunpack.i.h.bf16 %v3196_v5  ;;  %v3197_v1 = vunpack.i.l.bf16 %v3196_v5  ;;  %v3374_v50 = vpack.i.bf16 %v6091_v23, %v6090_v2  ;;  %v3409_v31 = vpack.i.bf16 %v4352_v10, %v6092_v13 }
  0xd0   : > { %v3191_v49 = vpop.permute.xlu1 %3190  ;;  %3395 = vrot.lane.b32.xlu0 %v3394_v9, %s3711_s10  ;;  %799 = vst.msk [vmem:[#allocation2 + $0xb8] sm:$0xff] %vm5983_vm4, %v3198_v8  ;;  %v3429_v8 = vpack.i.bf16 %v4628_v51, %v4392_v24  ;;  %v3424_v24 = vpack.i.bf16 %v4389_v45, %v4273_v20 }
  0xd1   : > { %v3193_v14 = vunpack.i.h.bf16 %v3191_v49  ;;  %v3192_v30 = vunpack.i.l.bf16 %v3191_v49  ;;  %798 = vst.msk [vmem:[#allocation2 + $0xb0] sm:$0xff] %vm5983_vm4, %v3197_v1 }
  0xd2   : > { %v3186_v36 = vpop.permute.xlu0 %3185 }
  0xd3   : > { %797 = vst.msk [vmem:[#allocation2 + $0xa8] sm:$0xff] %vm5983_vm4, %v3193_v14  ;;  %v3188_v42 = vunpack.i.h.bf16 %v3186_v36  ;;  %v3187_v34 = vunpack.i.l.bf16 %v3186_v36  ;;  %3375 = vrot.lane.b32.xlu2 %v3374_v50, %s3711_s10  ;;  %v6094_v36 = vld [vmem:[#allocation35_spill] sm:$0xff] }
  0xd4   : > { %796 = vst.msk [vmem:[#allocation2 + $0xa0] sm:$0xff] %vm5983_vm4, %v3192_v30  ;;  %v3389_v23 = vpack.i.bf16 %v6094_v36, %v6093_v25 }
  0xd5   : > { %794 = vst.msk [vmem:[#allocation2 + $0x90] sm:$0xff] %vm5983_vm4, %v3187_v34  ;;  %v3211_v49 = vpop.permute.xlu2 %3210 }
  0xd6   : > { %3415 = vrot.lane.b32.xlu1 %v3414_v11, %s3711_s10  ;;  %795 = vst.msk [vmem:[#allocation2 + $0x98] sm:$0xff] %vm5983_vm4, %v3188_v42  ;;  %v3213_v30 = vunpack.i.h.bf16 %v3211_v49  ;;  %v3212_v11 = vunpack.i.l.bf16 %v3211_v49 }
  0xd8   : > { %v3206_v9 = vpop.permute.xlu1 %3205  ;;  %3410 = vrot.lane.b32.xlu0 %v3409_v31, %s3711_s10  ;;  %805 = vst.msk [vmem:[#allocation2 + $0xe8] sm:$0xff] %vm5983_vm4, %v3213_v30 }
  0xd9   : > { %v3208_v5 = vunpack.i.h.bf16 %v3206_v9  ;;  %v3207_v14 = vunpack.i.l.bf16 %v3206_v9  ;;  %804 = vst.msk [vmem:[#allocation2 + $0xe0] sm:$0xff] %vm5983_vm4, %v3212_v11  ;;  %v6095_v11 = vld [vmem:[#allocation49_spill] sm:$0xff] }
  0xda   : > { %v3201_v1 = vpop.permute.xlu0 %3200 }
  0xdb   : > { %803 = vst.msk [vmem:[#allocation2 + $0xd8] sm:$0xff] %vm5983_vm4, %v3208_v5  ;;  %v3203_v50 = vunpack.i.h.bf16 %v3201_v1  ;;  %v3202_v42 = vunpack.i.l.bf16 %v3201_v1  ;;  %3390 = vrot.lane.b32.xlu2 %v3389_v23, %s3711_s10  ;;  %v6096_v1 = vld [vmem:[#allocation44_spill] sm:$0xff] }
  0xdc   : > { %802 = vst.msk [vmem:[#allocation2 + $0xd0] sm:$0xff] %vm5983_vm4, %v3207_v14  ;;  %v3444_v14 = vpack.i.bf16 %v3953_v53, %v3805_v12  ;;  %v3404_v36 = vpack.i.bf16 %v6096_v1, %v6095_v11  ;;  %v3439_v12 = vpack.i.bf16 %v3793_v4, %v3791_v3  ;;  %v3419_v4 = vpack.i.bf16 %v4270_v56, %v4299_v16 }
  0xdd   : > { %800 = vst.msk [vmem:[#allocation2 + $0xc0] sm:$0xff] %vm5983_vm4, %v3202_v42  ;;  %v3226_v31 = vpop.permute.xlu2 %3225 }
  0xde   : > { %3430 = vrot.lane.b32.xlu1 %v3429_v8, %s3711_s10  ;;  %801 = vst.msk [vmem:[#allocation2 + $0xc8] sm:$0xff] %vm5983_vm4, %v3203_v50  ;;  %v3227_v5 = vunpack.i.l.bf16 %v3226_v31  ;;  %v3228_v30 = vunpack.i.h.bf16 %v3226_v31 }
  0xe0   : > { %v3221_v34 = vpop.permute.xlu1 %3220  ;;  %3425 = vrot.lane.b32.xlu0 %v3424_v24, %s3711_s10  ;;  %904 = vst.msk [vmem:[#allocation2 + $0x20] sm:$0xff] %vm5982_vm5, %v3227_v5 }
  0xe1   : > { %v3223_v9 = vunpack.i.h.bf16 %v3221_v34  ;;  %v3222_v49 = vunpack.i.l.bf16 %v3221_v34  ;;  %905 = vst.msk [vmem:[#allocation2 + $0x28] sm:$0xff] %vm5982_vm5, %v3228_v30 }
  0xe2   : > { %v3216_v8 = vpop.permute.xlu0 %3215 }
  0xe3   : > { %902 = vst.msk [vmem:[#allocation2 + $0x10] sm:$0xff] %vm5982_vm5, %v3222_v49  ;;  %v3218_v23 = vunpack.i.h.bf16 %v3216_v8  ;;  %v3217_v50 = vunpack.i.l.bf16 %v3216_v8  ;;  %3405 = vrot.lane.b32.xlu2 %v3404_v36, %s3711_s10  ;;  %v3474_v36 = vpack.i.bf16 %v3880_v54, %v3890_v60 }
  0xe4   : > { %903 = vst.msk [vmem:[#allocation2 + $0x18] sm:$0xff] %vm5982_vm5, %v3223_v9  ;;  %v3459_v9 = vpack.i.bf16 %v3851_v38, %v3853_v39  ;;  %v3454_v38 = vpack.i.bf16 %v3893_v62, %v3886_v58  ;;  %v1062_v58 = vrot.slane %v4500_v17, 2  ;;  %v1064_v62 = vrot.slane %v346_v37, 2 }
  0xe5   : > { %900 = vst.msk [vmem:[#allocation2] sm:$0xff] %vm5982_vm5, %v3217_v50  ;;  %v3241_v42 = vpop.permute.xlu2 %3240  ;;  %v3469_v37 = vpack.i.bf16 %v3926_v29, %v3924_v28  ;;  %v4708_v28 = vld [vmem:[%s3784_s30 + $0xb0] sm:$0xff]  }
  0xe6   : > { %3445 = vrot.lane.b32.xlu1 %v3444_v14, %s3712_s11  ;;  %901 = vst.msk [vmem:[#allocation2 + $0x8] sm:$0xff] %vm5982_vm5, %v3218_v23  ;;  %v3242_v31 = vunpack.i.l.bf16 %v3241_v42  ;;  %v3243_v49 = vunpack.i.h.bf16 %v3241_v42  ;;  %v4691_v54 = vsel %vm614_vm1, %v1062_v58, %v1064_v62 }
  0xe8   : > { %v3236_v53 = vpop.permute.xlu1 %3235  ;;  %3440 = vrot.lane.b32.xlu0 %v3439_v12, %s3712_s11  ;;  %910 = vst.msk [vmem:[#allocation2 + $0x50] sm:$0xff] %vm5982_vm5, %v3242_v31  ;;  %v4688_v12 = vsel %vm614_vm1, %v1060_v26, %v1062_v58 }
  0xe9   : > { %v3238_v24 = vunpack.i.h.bf16 %v3236_v53  ;;  %v3237_v34 = vunpack.i.l.bf16 %v3236_v53  ;;  %911 = vst.msk [vmem:[#allocation2 + $0x58] sm:$0xff] %vm5982_vm5, %v3243_v49  ;;  %v3434_v6 = vpack.i.bf16 %v4691_v54, %v4688_v12 }
  0xea   : > { %v3231_v3 = vpop.permute.xlu0 %3230 }
  0xeb   : > { %908 = vst.msk [vmem:[#allocation2 + $0x40] sm:$0xff] %vm5982_vm5, %v3237_v34  ;;  %v3233_v5 = vunpack.i.h.bf16 %v3231_v3  ;;  %v3232_v14 = vunpack.i.l.bf16 %v3231_v3  ;;  %3420 = vrot.lane.b32.xlu2 %v3419_v4, %s3711_s10  ;;  %v3449_v3 = vpack.i.bf16 %v4022_v15, %v3964_v7 }
  0xec   : > { %909 = vst.msk [vmem:[#allocation2 + $0x48] sm:$0xff] %vm5982_vm5, %v3238_v24 }
  0xed   : > { %906 = vst.msk [vmem:[#allocation2 + $0x30] sm:$0xff] %vm5982_vm5, %v3232_v14  ;;  %v3256_v30 = vpop.permute.xlu2 %3255 }
  0xee   : > { %3460 = vrot.lane.b32.xlu1 %v3459_v9, %s3712_s11  ;;  %907 = vst.msk [vmem:[#allocation2 + $0x38] sm:$0xff] %vm5982_vm5, %v3233_v5  ;;  %v3257_v1 = vunpack.i.l.bf16 %v3256_v30  ;;  %v3258_v23 = vunpack.i.h.bf16 %v3256_v30  ;;  %v3489_v9 = vpack.i.bf16 %v3946_v46, %v3950_v48  ;;  %v4716_v46 = vunpack.c.l.bf16 %v4708_v28 }
  0xef   : > { %v3484_v48 = vpack.i.bf16 %v3996_v27, %v3994_v44  ;;  %v3464_v27 = vpack.i.bf16 %v4075_v18, %v3862_v43 }
  0xf0   : > { %v3251_v39 = vpop.permute.xlu1 %3250  ;;  %3455 = vrot.lane.b32.xlu0 %v3454_v38, %s3712_s11  ;;  %916 = vst.msk [vmem:[#allocation2 + $0x80] sm:$0xff] %vm5982_vm5, %v3257_v1  ;;  %v3504_v30 = vpack.i.bf16 %v4716_v46, %v4500_v17  ;;  %v3499_v17 = vpack.i.bf16 %v4494_v41, %v4433_v21  ;;  %v3479_v41 = vpack.i.bf16 %v4118_v19, %v3888_v59 }
  0xf1   : > { %v3253_v56 = vunpack.i.h.bf16 %v3251_v39  ;;  %v3252_v8 = vunpack.i.l.bf16 %v3251_v39  ;;  %917 = vst.msk [vmem:[#allocation2 + $0x88] sm:$0xff] %vm5982_vm5, %v3258_v23 }
  0xf2   : > { %v3246_v50 = vpop.permute.xlu0 %3245 }
  0xf3   : > { %914 = vst.msk [vmem:[#allocation2 + $0x70] sm:$0xff] %vm5982_vm5, %v3252_v8  ;;  %v3248_v60 = vunpack.i.h.bf16 %v3246_v50  ;;  %v3247_v53 = vunpack.i.l.bf16 %v3246_v50  ;;  %3435 = vrot.lane.b32.xlu2 %v3434_v6, %s3711_s10 }
  0xf4   : > { %915 = vst.msk [vmem:[#allocation2 + $0x78] sm:$0xff] %vm5982_vm5, %v3253_v56 }
  0xf5   : > { %912 = vst.msk [vmem:[#allocation2 + $0x60] sm:$0xff] %vm5982_vm5, %v3247_v53  ;;  %v3271_v42 = vpop.permute.xlu2 %3270  ;;  %v6097_v53 = vld [vmem:[#allocation15_spill] sm:$0xff] }
  0xf6   : > { %3475 = vrot.lane.b32.xlu1 %v3474_v36, %s3712_s11  ;;  %913 = vst.msk [vmem:[#allocation2 + $0x68] sm:$0xff] %vm5982_vm5, %v3248_v60  ;;  %v3272_v31 = vunpack.i.l.bf16 %v3271_v42  ;;  %v3273_v49 = vunpack.i.h.bf16 %v3271_v42  ;;  %v6098_v42 = vld [vmem:[#allocation5_spill] sm:$0xff] }
  0xf8   : > { %v3266_v26 = vpop.permute.xlu1 %3265  ;;  %3470 = vrot.lane.b32.xlu0 %v3469_v37, %s3712_s11  ;;  %922 = vst.msk [vmem:[#allocation2 + $0xb0] sm:$0xff] %vm5982_vm5, %v3272_v31  ;;  %v6099_v31 = vld [vmem:[#allocation38_spill] sm:$0xff] }
  0xf9   : > { %v3268_v24 = vunpack.i.h.bf16 %v3266_v26  ;;  %v3267_v34 = vunpack.i.l.bf16 %v3266_v26  ;;  %923 = vst.msk [vmem:[#allocation2 + $0xb8] sm:$0xff] %vm5982_vm5, %v3273_v49 }
  0xfa   : > { %v3261_v29 = vpop.permute.xlu0 %3260 }
  0xfb   : > { %920 = vst.msk [vmem:[#allocation2 + $0xa0] sm:$0xff] %vm5982_vm5, %v3267_v34  ;;  %v3263_v4 = vunpack.i.h.bf16 %v3261_v29  ;;  %v3262_v5 = vunpack.i.l.bf16 %v3261_v29  ;;  %3450 = vrot.lane.b32.xlu2 %v3449_v3, %s3712_s11  ;;  %v6100_v3 = vld [vmem:[#allocation7_spill] sm:$0xff] }
  0xfc   : > { %921 = vst.msk [vmem:[#allocation2 + $0xa8] sm:$0xff] %vm5982_vm5, %v3268_v24 }
  0xfd   : > { %918 = vst.msk [vmem:[#allocation2 + $0x90] sm:$0xff] %vm5982_vm5, %v3262_v5  ;;  %v3286_v7 = vpop.permute.xlu2 %3285 }
  0xfe   : > { %3490 = vrot.lane.b32.xlu1 %v3489_v9, %s3712_s11  ;;  %919 = vst.msk [vmem:[#allocation2 + $0x98] sm:$0xff] %vm5982_vm5, %v3263_v4  ;;  %v3287_v39 = vunpack.i.l.bf16 %v3286_v7  ;;  %v3288_v56 = vunpack.i.h.bf16 %v3286_v7  ;;  %v3494_v9 = vpack.i.bf16 %v6099_v31, %v3948_v47  ;;  %v301_v7 = vld [vmem:[%s3784_s30 + $0xb8] sm:$0xf] }
 0x100   : > { %v3281_v14 = vpop.permute.xlu1 %3280  ;;  %3485 = vrot.lane.b32.xlu0 %v3484_v48, %s3712_s11  ;;  %928 = vst.msk [vmem:[#allocation2 + $0xe0] sm:$0xff] %vm5982_vm5, %v3287_v39  ;;  %v4768_v39 = vunpack.c.h.bf16 %v4708_v28 }
 0x101   : > { %v3283_v15 = vunpack.i.h.bf16 %v3281_v14  ;;  %v3282_v38 = vunpack.i.l.bf16 %v3281_v14  ;;  %929 = vst.msk [vmem:[#allocation2 + $0xe8] sm:$0xff] %vm5982_vm5, %v3288_v56 }
 0x102   : > { %v3276_v44 = vpop.permute.xlu0 %3275 }
 0x103   : > { %926 = vst.msk [vmem:[#allocation2 + $0xd0] sm:$0xff] %vm5982_vm5, %v3282_v38  ;;  %v3278_v8 = vunpack.i.h.bf16 %v3276_v44  ;;  %v3277_v1 = vunpack.i.l.bf16 %v3276_v44  ;;  %3465 = vrot.lane.b32.xlu2 %v3464_v27, %s3712_s11 }
 0x104   : > { %927 = vst.msk [vmem:[#allocation2 + $0xd8] sm:$0xff] %vm5982_vm5, %v3283_v15  ;;  %v6101_v15 = vld [vmem:[#allocation11_spill] sm:$0xff] }
 0x105   : > { %924 = vst.msk [vmem:[#allocation2 + $0xc0] sm:$0xff] %vm5982_vm5, %v3277_v1  ;;  %v3301_v43 = vpop.permute.xlu2 %3300  ;;  %v6102_v1 = vld [vmem:[#allocation37_spill] sm:$0xff] }
 0x106   : > { %3505 = vrot.lane.b32.xlu1 %v3504_v30, %s3712_s11  ;;  %925 = vst.msk [vmem:[#allocation2 + $0xc8] sm:$0xff] %vm5982_vm5, %v3278_v8  ;;  %v3302_v58 = vunpack.i.l.bf16 %v3301_v43  ;;  %v3303_v62 = vunpack.i.h.bf16 %v3301_v43  ;;  %v4770_v30 = vunpack.c.l.bf16 %v301_v7 }
 0x108   : > { %v3296_v36 = vpop.permute.xlu1 %3295  ;;  %3500 = vrot.lane.b32.xlu0 %v3499_v17, %s3712_s11  ;;  %1033 = vst.msk [vmem:[#allocation2 + $0x20] sm:$0xff] %vm5980_vm6, %v3302_v58  ;;  %v3509_v44 = vpack.i.bf16 %v4770_v30, %v4768_v39 }
 0x109   : > { %v3298_v18 = vunpack.i.h.bf16 %v3296_v36  ;;  %v3297_v23 = vunpack.i.l.bf16 %v3296_v36  ;;  %1034 = vst.msk [vmem:[#allocation2 + $0x28] sm:$0xff] %vm5980_vm6, %v3303_v62 }
 0x10a   : > { %v3291_v21 = vpop.permute.xlu0 %3290 }
 0x10b   : > { %1031 = vst.msk [vmem:[#allocation2 + $0x10] sm:$0xff] %vm5980_vm6, %v3297_v23  ;;  %v3293_v50 = vunpack.i.h.bf16 %v3291_v21  ;;  %v3292_v60 = vunpack.i.l.bf16 %v3291_v21  ;;  %3480 = vrot.lane.b32.xlu2 %v3479_v41, %s3712_s11  ;;  %v6103_v23 = vld [vmem:[#allocation18_spill] sm:$0xff] }
 0x10c   : > { %1032 = vst.msk [vmem:[#allocation2 + $0x18] sm:$0xff] %vm5980_vm6, %v3298_v18 }
 0x10d   : > { %1029 = vst.msk [vmem:[#allocation2] sm:$0xff] %vm5980_vm6, %v3292_v60  ;;  %v3316_v37 = vpop.permute.xlu2 %3315  ;;  %v6105_v60 = vld [vmem:[#allocation22_spill] sm:$0xff] }
 0x10e   : > { %3520 = vrot.lane.b32.xlu1 %v6097_v53, %s3713_s12  ;;  %1030 = vst.msk [vmem:[#allocation2 + $0x8] sm:$0xff] %vm5980_vm6, %v3293_v50  ;;  %v3317_v19 = vunpack.i.l.bf16 %v3316_v37  ;;  %v3318_v24 = vunpack.i.h.bf16 %v3316_v37  ;;  %v6104_v50 = vld [vmem:[#allocation29_spill] sm:$0xff] }
 0x110   : > { %v3311_v6 = vpop.permute.xlu1 %3310  ;;  %3515 = vrot.lane.b32.xlu0 %v6098_v42, %s3713_s12  ;;  %1039 = vst.msk [vmem:[#allocation2 + $0x50] sm:$0xff] %vm5980_vm6, %v3317_v19  ;;  %v6106_v19 = vld [vmem:[#allocation34_spill] sm:$0xff] }
 0x111   : > { %v3313_v26 = vunpack.i.h.bf16 %v3311_v6  ;;  %v3312_v59 = vunpack.i.l.bf16 %v3311_v6  ;;  %1040 = vst.msk [vmem:[#allocation2 + $0x58] sm:$0xff] %vm5980_vm6, %v3318_v24 }
 0x112   : > { %v3306_v34 = vpop.permute.xlu0 %3305 }
 0x113   : > { %1037 = vst.msk [vmem:[#allocation2 + $0x40] sm:$0xff] %vm5980_vm6, %v3312_v59  ;;  %v3308_v49 = vunpack.i.h.bf16 %v3306_v34  ;;  %v3307_v29 = vunpack.i.l.bf16 %v3306_v34  ;;  %3495 = vrot.lane.b32.xlu2 %v3494_v9, %s3712_s11  ;;  %v6107_v9 = vld [vmem:[#allocation50_spill] sm:$0xff] }
 0x114   : > { %1038 = vst.msk [vmem:[#allocation2 + $0x48] sm:$0xff] %vm5980_vm6, %v3313_v26 }
 0x115   : > { %1035 = vst.msk [vmem:[#allocation2 + $0x30] sm:$0xff] %vm5980_vm6, %v3307_v29  ;;  %v3331_v5 = vpop.permute.xlu2 %3330 }
 0x116   : > { %3535 = vrot.lane.b32.xlu1 %v6100_v3, %s3713_s12  ;;  %1036 = vst.msk [vmem:[#allocation2 + $0x38] sm:$0xff] %vm5980_vm6, %v3308_v49  ;;  %v3332_v47 = vunpack.i.l.bf16 %v3331_v5  ;;  %v3333_v38 = vunpack.i.h.bf16 %v3331_v5  ;;  %v6108_v49 = vld [vmem:[#allocation26_spill] sm:$0xff] }
 0x118   : > { %v3326_v4 = vpop.permute.xlu1 %3325  ;;  %3530 = vrot.lane.b32.xlu0 %v6101_v15, %s3713_s12  ;;  %1045 = vst.msk [vmem:[#allocation2 + $0x80] sm:$0xff] %vm5980_vm6, %v3332_v47 }
 0x119   : > { %v3328_v48 = vunpack.i.h.bf16 %v3326_v4  ;;  %v3327_v14 = vunpack.i.l.bf16 %v3326_v4  ;;  %1046 = vst.msk [vmem:[#allocation2 + $0x88] sm:$0xff] %vm5980_vm6, %v3333_v38 }
 0x11a   : > { %v3321_v56 = vpop.permute.xlu0 %3320 }
 0x11b   : > { %1043 = vst.msk [vmem:[#allocation2 + $0x70] sm:$0xff] %vm5980_vm6, %v3327_v14  ;;  %v3323_v27 = vunpack.i.h.bf16 %v3321_v56  ;;  %v3322_v8 = vunpack.i.l.bf16 %v3321_v56  ;;  %3510 = vrot.lane.b32.xlu2 %v3509_v44, %s3712_s11  ;;  %v6109_v14 = vld [vmem:[#allocation52_spill] sm:$0xff]  ;;  %v6110_v56 = vld [vmem:[#allocation47_spill] sm:$0xff] }
 0x11c   : > { %1044 = vst.msk [vmem:[#allocation2 + $0x78] sm:$0xff] %vm5980_vm6, %v3328_v48  ;;  %v6111_v44 = vld [vmem:[#allocation12_spill] sm:$0xff] }
 0x11d   : > { %1041 = vst.msk [vmem:[#allocation2 + $0x60] sm:$0xff] %vm5980_vm6, %v3322_v8  ;;  %v3346_v17 = vpop.permute.xlu2 %3345 }
 0x11e   : > { %3550 = vrot.lane.b32.xlu1 %v6102_v1, %s3714_s13  ;;  %1042 = vst.msk [vmem:[#allocation2 + $0x68] sm:$0xff] %vm5980_vm6, %v3323_v27  ;;  %v3347_v18 = vunpack.i.l.bf16 %v3346_v17  ;;  %v3348_v58 = vunpack.i.h.bf16 %v3346_v17 }
 0x120   : > { %v3341_v28 = vpop.permute.xlu1 %3340  ;;  %3545 = vrot.lane.b32.xlu0 %v6103_v23, %s3713_s12  ;;  %1051 = vst.msk [vmem:[#allocation2 + $0xb0] sm:$0xff] %vm5980_vm6, %v3347_v18 }
 0x121   : > { %v3343_v36 = vunpack.i.h.bf16 %v3341_v28  ;;  %v3342_v43 = vunpack.i.l.bf16 %v3341_v28  ;;  %1052 = vst.msk [vmem:[#allocation2 + $0xb8] sm:$0xff] %vm5980_vm6, %v3348_v58 }
 0x122   : > { %v3336_v62 = vpop.permute.xlu0 %3335 }
 0x123   : > { %1049 = vst.msk [vmem:[#allocation2 + $0xa0] sm:$0xff] %vm5980_vm6, %v3342_v43  ;;  %v3338_v21 = vunpack.i.h.bf16 %v3336_v62  ;;  %v3337_v41 = vunpack.i.l.bf16 %v3336_v62  ;;  %3525 = vrot.lane.b32.xlu2 %v6105_v60, %s3713_s12  ;;  %v6113_v62 = vld [vmem:[#allocation59_spill] sm:$0xff] }
 0x124   : > { %1050 = vst.msk [vmem:[#allocation2 + $0xa8] sm:$0xff] %vm5980_vm6, %v3343_v36  ;;  %v6112_v36 = vld [vmem:[#allocation43_spill] sm:$0xff] }
 0x125   : > { %1047 = vst.msk [vmem:[#allocation2 + $0x90] sm:$0xff] %vm5980_vm6, %v3337_v41  ;;  %v3361_v6 = vpop.permute.xlu2 %3360 }
 0x126   : > { %3565 = vrot.lane.b32.xlu1 %v6104_v50, %s3714_s13  ;;  %1048 = vst.msk [vmem:[#allocation2 + $0x98] sm:$0xff] %vm5980_vm6, %v3338_v21  ;;  %v3362_v59 = vunpack.i.l.bf16 %v3361_v6  ;;  %v3363_v42 = vunpack.i.h.bf16 %v3361_v6  ;;  %v6114_v6 = vld [vmem:[#allocation39_spill] sm:$0xff] }
 0x128   : > { %v3356_v53 = vpop.permute.xlu1 %3355  ;;  %3560 = vrot.lane.b32.xlu0 %v6106_v19, %s3713_s12  ;;  %1057 = vst.msk [vmem:[#allocation2 + $0xe0] sm:$0xff] %vm5980_vm6, %v3362_v59 }
 0x129   : > { %v3358_v37 = vunpack.i.h.bf16 %v3356_v53  ;;  %v3357_v26 = vunpack.i.l.bf16 %v3356_v53  ;;  %1058 = vst.msk [vmem:[#allocation2 + $0xe8] sm:$0xff] %vm5980_vm6, %v3363_v42  ;;  %v6115_v42 = vld [vmem:[#allocation24_spill] sm:$0xff] }
 0x12a   : > { %v3351_v24 = vpop.permute.xlu0 %3350 }
 0x12b   : > { %1055 = vst.msk [vmem:[#allocation2 + $0xd0] sm:$0xff] %vm5980_vm6, %v3357_v26  ;;  %v3353_v34 = vunpack.i.h.bf16 %v3351_v24  ;;  %v3352_v31 = vunpack.i.l.bf16 %v3351_v24  ;;  %3540 = vrot.lane.b32.xlu2 %v6108_v49, %s3713_s12 }
 0x12c   : > { %1056 = vst.msk [vmem:[#allocation2 + $0xd8] sm:$0xff] %vm5980_vm6, %v3358_v37 }
 0x12d   : > { %1053 = vst.msk [vmem:[#allocation2 + $0xc0] sm:$0xff] %vm5980_vm6, %v3352_v31  ;;  %v3376_v3 = vpop.permute.xlu2 %3375 }
 0x12e   : > { %3580 = vrot.lane.b32.xlu1 %v6107_v9, %s3714_s13  ;;  %1054 = vst.msk [vmem:[#allocation2 + $0xc8] sm:$0xff] %vm5980_vm6, %v3353_v34  ;;  %v3377_v48 = vunpack.i.l.bf16 %v3376_v3  ;;  %v3378_v47 = vunpack.i.h.bf16 %v3376_v3 }
 0x130   : > { %v3371_v29 = vpop.permute.xlu1 %3370  ;;  %3575 = vrot.lane.b32.xlu0 %v6109_v14, %s3714_s13  ;;  %1161 = vst.msk [vmem:[#allocation2 + $0x20] sm:$0xff] %vm5979_vm7, %v3377_v48  ;;  %v6117_v14 = vld [vmem:[#allocation19_spill] sm:$0xff] }
 0x131   : > { %v3373_v4 = vunpack.i.h.bf16 %v3371_v29  ;;  %v3372_v5 = vunpack.i.l.bf16 %v3371_v29  ;;  %1162 = vst.msk [vmem:[#allocation2 + $0x28] sm:$0xff] %vm5979_vm7, %v3378_v47  ;;  %v6116_v29 = vld [vmem:[#allocation56_spill] sm:$0xff] }
 0x132   : > { %v3366_v7 = vpop.permute.xlu0 %3365 }
 0x133   : > { %1159 = vst.msk [vmem:[#allocation2 + $0x10] sm:$0xff] %vm5979_vm7, %v3372_v5  ;;  %v3368_v15 = vunpack.i.h.bf16 %v3366_v7  ;;  %v3367_v38 = vunpack.i.l.bf16 %v3366_v7  ;;  %3555 = vrot.lane.b32.xlu2 %v6111_v44, %s3713_s12 }
 0x134   : > { %1160 = vst.msk [vmem:[#allocation2 + $0x18] sm:$0xff] %vm5979_vm7, %v3373_v4 }
 0x135   : > { %1157 = vst.msk [vmem:[#allocation2] sm:$0xff] %vm5979_vm7, %v3367_v38  ;;  %v3391_v8 = vpop.permute.xlu2 %3390 }
 0x136   : > { %3595 = vrot.lane.b32.xlu1 %v6110_v56, %s3714_s13  ;;  %1158 = vst.msk [vmem:[#allocation2 + $0x8] sm:$0xff] %vm5979_vm7, %v3368_v15  ;;  %v3392_v17 = vunpack.i.l.bf16 %v3391_v8  ;;  %v3393_v43 = vunpack.i.h.bf16 %v3391_v8 }
 0x138   : > { %v3386_v27 = vpop.permute.xlu1 %3385  ;;  %3590 = vrot.lane.b32.xlu0 %v6112_v36, %s3714_s13  ;;  %1167 = vst.msk [vmem:[#allocation2 + $0x50] sm:$0xff] %vm5979_vm7, %v3392_v17 }
 0x139   : > { %v3388_v1 = vunpack.i.h.bf16 %v3386_v27  ;;  %v3387_v28 = vunpack.i.l.bf16 %v3386_v27  ;;  %1168 = vst.msk [vmem:[#allocation2 + $0x58] sm:$0xff] %vm5979_vm7, %v3393_v43 }
 0x13a   : > { %v3381_v18 = vpop.permute.xlu0 %3380 }
 0x13b   : > { %1165 = vst.msk [vmem:[#allocation2 + $0x40] sm:$0xff] %vm5979_vm7, %v3387_v28  ;;  %v3383_v23 = vunpack.i.h.bf16 %v3381_v18  ;;  %v3382_v58 = vunpack.i.l.bf16 %v3381_v18  ;;  %3570 = vrot.lane.b32.xlu2 %v6115_v42, %s3713_s12  ;;  %v6118_v28 = vld [vmem:[#allocation42_spill] sm:$0xff] }
 0x13c   : > { %1166 = vst.msk [vmem:[#allocation2 + $0x48] sm:$0xff] %vm5979_vm7, %v3388_v1 }
 0x13d   : > { %1163 = vst.msk [vmem:[#allocation2 + $0x30] sm:$0xff] %vm5979_vm7, %v3382_v58  ;;  %v3406_v41 = vpop.permute.xlu2 %3405 }
 0x13e   : > { %3610 = vrot.lane.b32.xlu1 %v6113_v62, %s3714_s13  ;;  %1164 = vst.msk [vmem:[#allocation2 + $0x38] sm:$0xff] %vm5979_vm7, %v3383_v23  ;;  %v3407_v53 = vunpack.i.l.bf16 %v3406_v41  ;;  %v3408_v37 = vunpack.i.h.bf16 %v3406_v41 }
 0x140   : > { %v3401_v21 = vpop.permute.xlu1 %3400  ;;  %3605 = vrot.lane.b32.xlu0 %v6114_v6, %s3714_s13  ;;  %1173 = vst.msk [vmem:[#allocation2 + $0x80] sm:$0xff] %vm5979_vm7, %v3407_v53 }
 0x141   : > { %v3403_v50 = vunpack.i.h.bf16 %v3401_v21  ;;  %v3402_v60 = vunpack.i.l.bf16 %v3401_v21  ;;  %1174 = vst.msk [vmem:[#allocation2 + $0x88] sm:$0xff] %vm5979_vm7, %v3408_v37 }
 0x142   : > { %v3396_v26 = vpop.permute.xlu0 %3395 }
 0x143   : > { %1171 = vst.msk [vmem:[#allocation2 + $0x70] sm:$0xff] %vm5979_vm7, %v3402_v60  ;;  %v3398_v59 = vunpack.i.h.bf16 %v3396_v26  ;;  %v3397_v19 = vunpack.i.l.bf16 %v3396_v26  ;;  %3585 = vrot.lane.b32.xlu2 %v6117_v14, %s3713_s12 }
 0x144   : > { %1172 = vst.msk [vmem:[#allocation2 + $0x78] sm:$0xff] %vm5979_vm7, %v3403_v50  ;;  %v6119_v50 = vld [vmem:[#allocation57_spill] sm:$0xff] }
 0x145   : > { %1169 = vst.msk [vmem:[#allocation2 + $0x60] sm:$0xff] %vm5979_vm7, %v3397_v19  ;;  %v3421_v34 = vpop.permute.xlu2 %3420 }
 0x146   : > { %1170 = vst.msk [vmem:[#allocation2 + $0x68] sm:$0xff] %vm5979_vm7, %v3398_v59  ;;  %v3422_v49 = vunpack.i.l.bf16 %v3421_v34  ;;  %v3423_v3 = vunpack.i.h.bf16 %v3421_v34  ;;  %v6120_v34 = vld [vmem:[#allocation53_spill] sm:$0xff] }
 0x148   : > { %v3416_v24 = vpop.permute.xlu1 %3415  ;;  %3620 = vrot.lane.b32.xlu0 %v6116_v29, %s3714_s13  ;;  %1179 = vst.msk [vmem:[#allocation2 + $0xb0] sm:$0xff] %vm5979_vm7, %v3422_v49 }
 0x149   : > { %v3418_v31 = vunpack.i.h.bf16 %v3416_v24  ;;  %v3417_v9 = vunpack.i.l.bf16 %v3416_v24  ;;  %1180 = vst.msk [vmem:[#allocation2 + $0xb8] sm:$0xff] %vm5979_vm7, %v3423_v3 }
 0x14a   : > { %v3411_v4 = vpop.permute.xlu0 %3410 }
 0x14b   : > { %1177 = vst.msk [vmem:[#allocation2 + $0xa0] sm:$0xff] %vm5979_vm7, %v3417_v9  ;;  %v3413_v5 = vunpack.i.h.bf16 %v3411_v4  ;;  %v3412_v48 = vunpack.i.l.bf16 %v3411_v4  ;;  %3600 = vrot.lane.b32.xlu2 %v6118_v28, %s3713_s12 }
 0x14c   : > { %1178 = vst.msk [vmem:[#allocation2 + $0xa8] sm:$0xff] %vm5979_vm7, %v3418_v31 }
 0x14d   : > { %1175 = vst.msk [vmem:[#allocation2 + $0x90] sm:$0xff] %vm5979_vm7, %v3412_v48  ;;  %v3436_v38 = vpop.permute.xlu2 %3435 }
 0x14e   : > { %1176 = vst.msk [vmem:[#allocation2 + $0x98] sm:$0xff] %vm5979_vm7, %v3413_v5  ;;  %v3438_v56 = vunpack.i.h.bf16 %v3436_v38  ;;  %v3437_v44 = vunpack.i.l.bf16 %v3436_v38 }
 0x150   : > { %v3431_v47 = vpop.permute.xlu1 %3430  ;;  %1185 = vst.msk [vmem:[#allocation2 + $0xe0] sm:$0xff] %vm5979_vm7, %v3437_v44 }
 0x151   : > { %v3433_v7 = vunpack.i.h.bf16 %v3431_v47  ;;  %v3432_v15 = vunpack.i.l.bf16 %v3431_v47  ;;  %1186 = vst.msk [vmem:[#allocation2 + $0xe8] sm:$0xff] %vm5979_vm7, %v3438_v56  ;;  %v1617_v47 = vld [vmem:[%s5900_s1 + $0x10] sm:$0x3] }
 0x152   : > { %v3426_v27 = vpop.permute.xlu0 %3425 }
 0x153   : > { %1183 = vst.msk [vmem:[#allocation2 + $0xd0] sm:$0xff] %vm5979_vm7, %v3432_v15  ;;  %v3428_v8 = vunpack.i.h.bf16 %v3426_v27  ;;  %v3427_v1 = vunpack.i.l.bf16 %v3426_v27  ;;  %3615 = vrot.lane.b32.xlu2 %v6119_v50, %s3714_s13  ;;  %v2943_v50 = vld [vmem:[%s5900_s1] sm:$0xff] }
 0x154   : > { %1184 = vst.msk [vmem:[#allocation2 + $0xd8] sm:$0xff] %vm5979_vm7, %v3433_v7  ;;  %v1631_v7 = vunpack.c.l.b16 %v1617_v47 }
 0x155   : > { %1181 = vst.msk [vmem:[#allocation2 + $0xc0] sm:$0xff] %vm5979_vm7, %v3427_v1  ;;  %v3451_v18 = vpop.permute.xlu2 %3450 }
 0x156   : > { %1182 = vst.msk [vmem:[#allocation2 + $0xc8] sm:$0xff] %vm5979_vm7, %v3428_v8  ;;  %v3453_v23 = vunpack.i.h.bf16 %v3451_v18  ;;  %v3452_v58 = vunpack.i.l.bf16 %v3451_v18  ;;  %v1634_v38 = vpack.c.b16 %v1631_v7, %v1631_v7 }
 0x158   : > { %v3446_v17 = vpop.permute.xlu1 %3445  ;;  %1285 = vst.msk [vmem:[#allocation2 + $0x20] sm:$0xff] %vm5978_vm8, %v3452_v58  ;;  %v1685_v28 = vsel %vm5981_vm9, %v1634_v38, 0 }
 0x159   : > { %v3448_v36 = vunpack.i.h.bf16 %v3446_v17  ;;  %v3447_v43 = vunpack.i.l.bf16 %v3446_v17  ;;  %1286 = vst.msk [vmem:[#allocation2 + $0x28] sm:$0xff] %vm5978_vm8, %v3453_v23  ;;  %1692 = vmatpush.bf16.msra.mxu0 %v1685_v28  ;;  %3006 = vmatpush.bf16.msra.mxu2 %v1685_v28  ;;  %v6121_v23 = vld [vmem:[#allocation61_spill] sm:$0xff] }
 0x15a   : > { %v3441_v62 = vpop.permute.xlu0 %3440  ;;  %3007 = vmatpush.bf16.msra.mxu3 %v1685_v28 }
 0x15b   : > { %1283 = vst.msk [vmem:[#allocation2 + $0x10] sm:$0xff] %vm5978_vm8, %v3447_v43  ;;  %v3443_v21 = vunpack.i.h.bf16 %v3441_v62  ;;  %v3442_v41 = vunpack.i.l.bf16 %v3441_v62  ;;  %3630 = vrot.lane.b32.xlu2 %v6120_v34, %s3714_s13 }
 0x15c   : > { %1284 = vst.msk [vmem:[#allocation2 + $0x18] sm:$0xff] %vm5978_vm8, %v3448_v36  ;;  %v2944_v36 = vld [vmem:[%s5900_s1 + $0x8] sm:$0xff] }
 0x15d   : > { %1281 = vst.msk [vmem:[#allocation2] sm:$0xff] %vm5978_vm8, %v3442_v41  ;;  %v3466_v37 = vpop.permute.xlu2 %3465  ;;  %1693 = vmatpush.bf16.msra.mxu0 %v2944_v36  ;;  %3008 = vmatpush.bf16.msra.mxu2 %v2944_v36 }
 0x15e   : > { %1282 = vst.msk [vmem:[#allocation2 + $0x8] sm:$0xff] %vm5978_vm8, %v3443_v21  ;;  %v3468_v26 = vunpack.i.h.bf16 %v3466_v37  ;;  %v3467_v59 = vunpack.i.l.bf16 %v3466_v37  ;;  %3009 = vmatpush.bf16.msra.mxu3 %v2944_v36 }
 0x160   : > { %v3461_v60 = vpop.permute.xlu1 %3460  ;;  %1291 = vst.msk [vmem:[#allocation2 + $0x50] sm:$0xff] %vm5978_vm8, %v3467_v59 }
 0x161   : > { %v3463_v53 = vunpack.i.h.bf16 %v3461_v60  ;;  %v3462_v6 = vunpack.i.l.bf16 %v3461_v60  ;;  %1292 = vst.msk [vmem:[#allocation2 + $0x58] sm:$0xff] %vm5978_vm8, %v3468_v26  ;;  %1694 = vmatpush.bf16.msra.mxu0 %v2943_v50  ;;  %3010 = vmatpush.bf16.msra.mxu2 %v2943_v50 }
 0x162   : > { %v3456_v19 = vpop.permute.xlu0 %3455  ;;  %3011 = vmatpush.bf16.msra.mxu3 %v2943_v50 }
 0x163   : > { %1289 = vst.msk [vmem:[#allocation2 + $0x40] sm:$0xff] %vm5978_vm8, %v3462_v6  ;;  %v3458_v42 = vunpack.i.h.bf16 %v3456_v19  ;;  %v3457_v24 = vunpack.i.l.bf16 %v3456_v19  ;;  %3645 = vrot.lane.b32.xlu2 %v6121_v23, %s3714_s13 }
 0x164   : > { %1290 = vst.msk [vmem:[#allocation2 + $0x48] sm:$0xff] %vm5978_vm8, %v3463_v53 }
 0x165   : > { %1287 = vst.msk [vmem:[#allocation2 + $0x30] sm:$0xff] %vm5978_vm8, %v3457_v24  ;;  %v3481_v29 = vpop.permute.xlu2 %3480 }
 0x166   : > { %1288 = vst.msk [vmem:[#allocation2 + $0x38] sm:$0xff] %vm5978_vm8, %v3458_v42  ;;  %v3483_v3 = vunpack.i.h.bf16 %v3481_v29  ;;  %v3482_v4 = vunpack.i.l.bf16 %v3481_v29 }
 0x168   : > { %v3476_v31 = vpop.permute.xlu1 %3475  ;;  %1297 = vst.msk [vmem:[#allocation2 + $0x80] sm:$0xff] %vm5978_vm8, %v3482_v4 }
 0x169   : > { %v3478_v9 = vunpack.i.h.bf16 %v3476_v31  ;;  %v3477_v49 = vunpack.i.l.bf16 %v3476_v31  ;;  %1298 = vst.msk [vmem:[#allocation2 + $0x88] sm:$0xff] %vm5978_vm8, %v3483_v3 }
 0x16a   : > { %v3471_v5 = vpop.permute.xlu0 %3470 }
 0x16b   : > { %1295 = vst.msk [vmem:[#allocation2 + $0x70] sm:$0xff] %vm5978_vm8, %v3477_v49  ;;  %v3473_v48 = vunpack.i.h.bf16 %v3471_v5  ;;  %v3472_v14 = vunpack.i.l.bf16 %v3471_v5 }
 0x16c   : > { %1296 = vst.msk [vmem:[#allocation2 + $0x78] sm:$0xff] %vm5978_vm8, %v3478_v9 }
 0x16d   : > { %1293 = vst.msk [vmem:[#allocation2 + $0x60] sm:$0xff] %vm5978_vm8, %v3472_v14  ;;  %v3496_v27 = vpop.permute.xlu2 %3495 }
 0x16e   : > { %1294 = vst.msk [vmem:[#allocation2 + $0x68] sm:$0xff] %vm5978_vm8, %v3473_v48  ;;  %v3498_v8 = vunpack.i.h.bf16 %v3496_v27  ;;  %v3497_v1 = vunpack.i.l.bf16 %v3496_v27 }
 0x170   : > { %v3491_v15 = vpop.permute.xlu1 %3490  ;;  %1303 = vst.msk [vmem:[#allocation2 + $0xb0] sm:$0xff] %vm5978_vm8, %v3497_v1 }
 0x171   : > { %v3493_v56 = vunpack.i.h.bf16 %v3491_v15  ;;  %v3492_v44 = vunpack.i.l.bf16 %v3491_v15  ;;  %1304 = vst.msk [vmem:[#allocation2 + $0xb8] sm:$0xff] %vm5978_vm8, %v3498_v8 }
 0x172   : > { %v3486_v17 = vpop.permute.xlu0 %3485 }
 0x173   : > { %1301 = vst.msk [vmem:[#allocation2 + $0xa0] sm:$0xff] %vm5978_vm8, %v3492_v44  ;;  %v3488_v43 = vunpack.i.h.bf16 %v3486_v17  ;;  %v3487_v18 = vunpack.i.l.bf16 %v3486_v17 }
 0x174   : > { %1302 = vst.msk [vmem:[#allocation2 + $0xa8] sm:$0xff] %vm5978_vm8, %v3493_v56 }
 0x175   : > { %1299 = vst.msk [vmem:[#allocation2 + $0x90] sm:$0xff] %vm5978_vm8, %v3487_v18  ;;  %v3511_v41 = vpop.permute.xlu2 %3510 }
 0x176   : > { %1300 = vst.msk [vmem:[#allocation2 + $0x98] sm:$0xff] %vm5978_vm8, %v3488_v43  ;;  %v3513_v60 = vunpack.i.h.bf16 %v3511_v41  ;;  %v3512_v53 = vunpack.i.l.bf16 %v3511_v41 }
 0x178   : > { %v3506_v58 = vpop.permute.xlu1 %3505  ;;  %1309 = vst.msk [vmem:[#allocation2 + $0xe0] sm:$0xff] %vm5978_vm8, %v3512_v53 }
 0x179   : > { %v3508_v62 = vunpack.i.h.bf16 %v3506_v58  ;;  %v3507_v21 = vunpack.i.l.bf16 %v3506_v58  ;;  %1310 = vst.msk [vmem:[#allocation2 + $0xe8] sm:$0xff] %vm5978_vm8, %v3513_v60 }
 0x17a   : > { %v3501_v6 = vpop.permute.xlu0 %3500 }
 0x17b   : > { %1307 = vst.msk [vmem:[#allocation2 + $0xd0] sm:$0xff] %vm5978_vm8, %v3507_v21  ;;  %v3503_v37 = vunpack.i.h.bf16 %v3501_v6  ;;  %v3502_v26 = vunpack.i.l.bf16 %v3501_v6 }
 0x17c   : > { %1308 = vst.msk [vmem:[#allocation2 + $0xd8] sm:$0xff] %vm5978_vm8, %v3508_v62 }
 0x17d   : > { %1305 = vst.msk [vmem:[#allocation2 + $0xc0] sm:$0xff] %vm5978_vm8, %v3502_v26  ;;  %v3526_v24 = vpop.permute.xlu2 %3525 }
 0x17e   : > { %1306 = vst.msk [vmem:[#allocation2 + $0xc8] sm:$0xff] %vm5978_vm8, %v3503_v37  ;;  %v3528_v34 = vunpack.i.h.bf16 %v3526_v24  ;;  %v3527_v31 = vunpack.i.l.bf16 %v3526_v24 }
 0x180   : > { %v3521_v59 = vpop.permute.xlu1 %3520  ;;  %1414 = vst.msk [vmem:[#allocation2 + $0x20] sm:$0xff] %vm1409_vm10, %v3527_v31 }
 0x181   : > { %v3523_v19 = vunpack.i.h.bf16 %v3521_v59  ;;  %v3522_v42 = vunpack.i.l.bf16 %v3521_v59  ;;  %1415 = vst.msk [vmem:[#allocation2 + $0x28] sm:$0xff] %vm1409_vm10, %v3528_v34 }
 0x182   : > { %v3516_v9 = vpop.permute.xlu0 %3515 }
 0x183   : > { %1412 = vst.msk [vmem:[#allocation2 + $0x10] sm:$0xff] %vm1409_vm10, %v3522_v42  ;;  %v3518_v49 = vunpack.i.h.bf16 %v3516_v9  ;;  %v3517_v29 = vunpack.i.l.bf16 %v3516_v9 }
 0x184   : > { %1413 = vst.msk [vmem:[#allocation2 + $0x18] sm:$0xff] %vm1409_vm10, %v3523_v19 }
 0x185   : > { %1410 = vst.msk [vmem:[#allocation2] sm:$0xff] %vm1409_vm10, %v3517_v29  ;;  %v3541_v48 = vpop.permute.xlu2 %3540 }
 0x186   : > { %1411 = vst.msk [vmem:[#allocation2 + $0x8] sm:$0xff] %vm1409_vm10, %v3518_v49  ;;  %v3543_v14 = vunpack.i.h.bf16 %v3541_v48  ;;  %v3542_v47 = vunpack.i.l.bf16 %v3541_v48 }
 0x188   : > { %v3536_v3 = vpop.permute.xlu1 %3535  ;;  %1420 = vst.msk [vmem:[#allocation2 + $0x50] sm:$0xff] %vm1409_vm10, %v3542_v47 }
 0x189   : > { %v3538_v4 = vunpack.i.h.bf16 %v3536_v3  ;;  %v3537_v5 = vunpack.i.l.bf16 %v3536_v3  ;;  %1421 = vst.msk [vmem:[#allocation2 + $0x58] sm:$0xff] %vm1409_vm10, %v3543_v14 }
 0x18a   : > { %v3531_v7 = vpop.permute.xlu0 %3530 }
 0x18b   : > { %1418 = vst.msk [vmem:[#allocation2 + $0x40] sm:$0xff] %vm1409_vm10, %v3537_v5  ;;  %v3533_v15 = vunpack.i.h.bf16 %v3531_v7  ;;  %v3532_v38 = vunpack.i.l.bf16 %v3531_v7 }
 0x18c   : > { %1419 = vst.msk [vmem:[#allocation2 + $0x48] sm:$0xff] %vm1409_vm10, %v3538_v4 }
 0x18d   : > { %1416 = vst.msk [vmem:[#allocation2 + $0x30] sm:$0xff] %vm1409_vm10, %v3532_v38  ;;  %v3556_v8 = vpop.permute.xlu2 %3555 }
 0x18e   : > { %1417 = vst.msk [vmem:[#allocation2 + $0x38] sm:$0xff] %vm1409_vm10, %v3533_v15  ;;  %v3558_v1 = vunpack.i.h.bf16 %v3556_v8  ;;  %v3557_v28 = vunpack.i.l.bf16 %v3556_v8 }
 0x190   : > { %v3551_v56 = vpop.permute.xlu1 %3550  ;;  %1424 = vst.msk [vmem:[#allocation2 + $0x70] sm:$0xff] %vm1409_vm10, %v3557_v28 }
 0x191   : > { %v3553_v44 = vunpack.i.h.bf16 %v3551_v56  ;;  %v3552_v27 = vunpack.i.l.bf16 %v3551_v56  ;;  %1425 = vst.msk [vmem:[#allocation2 + $0x78] sm:$0xff] %vm1409_vm10, %v3558_v1 }
 0x192   : > { %v3546_v17 = vpop.permute.xlu0 %3545 }
 0x193   : > { %1538 = vst.msk [vmem:[#allocation2] sm:$0xff] %vm1537_vm11, %v3552_v27  ;;  %v3548_v36 = vunpack.i.h.bf16 %v3546_v17  ;;  %v3547_v43 = vunpack.i.l.bf16 %v3546_v17 }
 0x194   : > { %1539 = vst.msk [vmem:[#allocation2 + $0x8] sm:$0xff] %vm1537_vm11, %v3553_v44 }
 0x195   : > { %1422 = vst.msk [vmem:[#allocation2 + $0x60] sm:$0xff] %vm1409_vm10, %v3547_v43  ;;  %v3571_v37 = vpop.permute.xlu2 %3570 }
 0x196   : > { %1423 = vst.msk [vmem:[#allocation2 + $0x68] sm:$0xff] %vm1409_vm10, %v3548_v36  ;;  %v3572_v19 = vunpack.i.l.bf16 %v3571_v37  ;;  %v3573_v42 = vunpack.i.h.bf16 %v3571_v37 }
 0x198   : > { %v3566_v18 = vpop.permute.xlu1 %3565  ;;  %1428 = vst.msk [vmem:[#allocation2 + $0x90] sm:$0xff] %vm1409_vm10, %v3572_v19 }
 0x199   : > { %v3568_v23 = vunpack.i.h.bf16 %v3566_v18  ;;  %v3567_v58 = vunpack.i.l.bf16 %v3566_v18  ;;  %1429 = vst.msk [vmem:[#allocation2 + $0x98] sm:$0xff] %vm1409_vm10, %v3573_v42 }
 0x19a   : > { %v1568_v62 = vld [vmem:[#allocation2] sm:$0xff]  ;;  %v3561_v50 = vpop.permute.xlu0 %3560 }
 0x19b   : > { %1540 = vst.msk [vmem:[#allocation2 + $0x10] sm:$0xff] %vm1537_vm11, %v3567_v58  ;;  %v1569_v21 = vld [vmem:[#allocation2 + $0x8] sm:$0xff]  ;;  %v3563_v60 = vunpack.i.h.bf16 %v3561_v50  ;;  %v3562_v53 = vunpack.i.l.bf16 %v3561_v50 }
 0x19c   : > { %1541 = vst.msk [vmem:[#allocation2 + $0x18] sm:$0xff] %vm1537_vm11, %v3568_v23  ;;  %v1598_v41 = vpack.c.bf16 %v1569_v21, %v1568_v62 }
 0x19d   : > { %1427 = vst.msk [vmem:[#allocation2 + $0x88] sm:$0xff] %vm1409_vm10, %v3563_v60  ;;  %v3586_v49 = vpop.permute.xlu2 %3585 }
 0x19e   : > { %2904 = vmatmul.msk.bf16.vlgmr.msra.gmra.mxu0 %vm5985_vm12, %v1598_v41  ;;  %1426 = vst.msk [vmem:[#allocation2 + $0x80] sm:$0xff] %vm1409_vm10, %v3562_v53  ;;  %v3587_v48 = vunpack.i.l.bf16 %v3586_v49  ;;  %v3588_v47 = vunpack.i.h.bf16 %v3586_v49 }
 0x1a0   : > { %v3581_v6 = vpop.permute.xlu1 %3580  ;;  %1430 = vst.msk [vmem:[#allocation2 + $0xa0] sm:$0xff] %vm1409_vm10, %v3587_v48 }
 0x1a1   : > { %v3583_v26 = vunpack.i.h.bf16 %v3581_v6  ;;  %v3582_v59 = vunpack.i.l.bf16 %v3581_v6  ;;  %1431 = vst.msk [vmem:[#allocation2 + $0xa8] sm:$0xff] %vm1409_vm10, %v3588_v47 }
 0x1a2   : > { %v3576_v24 = vpop.permute.xlu0 %3575  ;;  %v1570_v29 = vld [vmem:[#allocation2 + $0x10] sm:$0xff] }
 0x1a3   : > { %1550 = vst.msk [vmem:[#allocation2 + $0x60] sm:$0xff] %vm1537_vm11, %v3582_v59  ;;  %v3578_v34 = vunpack.i.h.bf16 %v3576_v24  ;;  %v3577_v31 = vunpack.i.l.bf16 %v3576_v24  ;;  %v1571_v3 = vld [vmem:[#allocation2 + $0x18] sm:$0xff] }
 0x1a4   : > { %1551 = vst.msk [vmem:[#allocation2 + $0x68] sm:$0xff] %vm1537_vm11, %v3583_v26  ;;  %v1599_v15 = vpack.c.bf16 %v1571_v3, %v1570_v29 }
 0x1a5   : > { %1543 = vst.msk [vmem:[#allocation2 + $0x28] sm:$0xff] %vm1537_vm11, %v3578_v34  ;;  %v3601_v1 = vpop.permute.xlu2 %3600 }
 0x1a6   : > { %1542 = vst.msk [vmem:[#allocation2 + $0x20] sm:$0xff] %vm1537_vm11, %v3577_v31  ;;  %v3602_v36 = vunpack.i.l.bf16 %v3601_v1  ;;  %v3603_v43 = vunpack.i.h.bf16 %v3601_v1 }
 0x1a8   : > { %v3596_v9 = vpop.permute.xlu1 %3595  ;;  %1432 = vst.msk [vmem:[#allocation2 + $0xb0] sm:$0xff] %vm1409_vm10, %v3602_v36 }
 0x1a9   : > { %v3598_v4 = vunpack.i.h.bf16 %v3596_v9  ;;  %v3597_v5 = vunpack.i.l.bf16 %v3596_v9  ;;  %1433 = vst.msk [vmem:[#allocation2 + $0xb8] sm:$0xff] %vm1409_vm10, %v3603_v43 }
 0x1aa   : > { %v1580_v14 = vld [vmem:[#allocation2 + $0x60] sm:$0xff]  ;;  %v3591_v56 = vpop.permute.xlu0 %3590 }
 0x1ab   : > { %v1581_v7 = vld [vmem:[#allocation2 + $0x68] sm:$0xff]  ;;  %1552 = vst.msk [vmem:[#allocation2 + $0x70] sm:$0xff] %vm1537_vm11, %v3597_v5  ;;  %v3593_v44 = vunpack.i.h.bf16 %v3591_v56  ;;  %v3592_v27 = vunpack.i.l.bf16 %v3591_v56 }
 0x1ac   : > { %v1604_v38 = vpack.c.bf16 %v1581_v7, %v1580_v14  ;;  %1553 = vst.msk [vmem:[#allocation2 + $0x78] sm:$0xff] %vm1537_vm11, %v3598_v4  ;;  %v1573_v62 = vld [vmem:[#allocation2 + $0x28] sm:$0xff] }
 0x1ad   : > { %1544 = vst.msk [vmem:[#allocation2 + $0x30] sm:$0xff] %vm1537_vm11, %v3592_v27  ;;  %v1572_v21 = vld [vmem:[#allocation2 + $0x20] sm:$0xff]  ;;  %v3616_v60 = vpop.permute.xlu2 %3615 }
 0x1ae   : > { %2905 = vmatmul.msk.bf16.gmra.mxu0 %vm5985_vm12, %v1599_v15  ;;  %2910 = vmatmul.msk.bf16.vlgmr.msra.gmra.mxu2 %vm5985_vm12, %v1604_v38  ;;  %1545 = vst.msk [vmem:[#allocation2 + $0x38] sm:$0xff] %vm1537_vm11, %v3593_v44  ;;  %v3618_v53 = vunpack.i.h.bf16 %v3616_v60  ;;  %v3617_v6 = vunpack.i.l.bf16 %v3616_v60  ;;  %v1600_v37 = vpack.c.bf16 %v1573_v62, %v1572_v21  ;;  %v3624_v62 = vpack.i.bf16 %v4595_v22, %v4531_v61 }
 0x1af   : > { %v3634_v21 = vpack.i.bf16 %v4688_v12, %v4628_v51  ;;  %v1440_v60 = vrot.slane %v4716_v46, 2 }
 0x1b0   : > { %v3611_v8 = vpop.permute.xlu1 %3610  ;;  %1548 = vst.msk [vmem:[#allocation2 + $0x50] sm:$0xff] %vm1537_vm11, %v3617_v6  ;;  %3625 = vrot.lane.b32.xlu1 %v3624_v62, %s3713_s12  ;;  %v302_v6 = vld [vmem:[%s3784_s30 + $0xbc] sm:$0x1] }
 0x1b1   : > { %v3613_v28 = vunpack.i.h.bf16 %v3611_v8  ;;  %v3612_v17 = vunpack.i.l.bf16 %v3611_v8  ;;  %1549 = vst.msk [vmem:[#allocation2 + $0x58] sm:$0xff] %vm1537_vm11, %v3618_v53  ;;  %3635 = vrot.lane.b32.xlu0 %v3634_v21, %s3714_s13  ;;  %v1441_v53 = vrot.slane %v4768_v39, 2 }
 0x1b2   : > { %v3606_v18 = vpop.permute.xlu0 %3605  ;;  %v1582_v41 = vld [vmem:[#allocation2 + $0x70] sm:$0xff] }
 0x1b3   : > { %1554 = vst.msk [vmem:[#allocation2 + $0x80] sm:$0xff] %vm1537_vm11, %v3612_v17  ;;  %v3608_v23 = vunpack.i.h.bf16 %v3606_v18  ;;  %v3607_v58 = vunpack.i.l.bf16 %v3606_v18  ;;  %v1583_v50 = vld [vmem:[#allocation2 + $0x78] sm:$0xff]  ;;  %v1442_v22 = vsel %vm614_vm1, %v1440_v60, %v1441_v53 }
 0x1b4   : > { %1555 = vst.msk [vmem:[#allocation2 + $0x88] sm:$0xff] %vm1537_vm11, %v3613_v28  ;;  %v1605_v26 = vpack.c.bf16 %v1583_v50, %v1582_v41  ;;  %v1574_v9 = vld [vmem:[#allocation2 + $0x30] sm:$0xff]  ;;  %v1312_v41 = vrot.slane %v4716_v46, 1  ;;  %v1313_v50 = vrot.slane %v4768_v39, 1  ;;  %v3649_v12 = vpack.i.bf16 %v1442_v22, %v4691_v54 }
 0x1b5   : > { %1547 = vst.msk [vmem:[#allocation2 + $0x48] sm:$0xff] %vm1537_vm11, %v3608_v23  ;;  %v3631_v24 = vpop.permute.xlu2 %3630  ;;  %v1575_v49 = vld [vmem:[#allocation2 + $0x38] sm:$0xff] }
 0x1b6   : > { %1546 = vst.msk [vmem:[#allocation2 + $0x40] sm:$0xff] %vm1537_vm11, %v3607_v58  ;;  %v3633_v34 = vunpack.i.h.bf16 %v3631_v24  ;;  %v3632_v31 = vunpack.i.l.bf16 %v3631_v24  ;;  %v1601_v4 = vpack.c.bf16 %v1575_v49, %v1574_v9  ;;  %v1314_v61 = vsel %vm422_vm0, %v1312_v41, %v1313_v50  ;;  %v4998_v9 = vld [vmem:[%s5901_s2] ss:$0 sm:$0xff] }
 0x1b7   : > { %v1578_v28 = vld [vmem:[#allocation2 + $0x50] sm:$0xff]  ;;  %v3639_v51 = vpack.i.bf16 %v1314_v61, %v4598_v40  ;;  %v1812_v40 = vlaneseq }
 0x1b8   : > { %1558 = vst.msk [vmem:[#allocation2 + $0xa0] sm:$0xff] %vm1537_vm11, %v3632_v31  ;;  %v1579_v17 = vld [vmem:[#allocation2 + $0x58] sm:$0xff] }
 0x1b9   : > { %1559 = vst.msk [vmem:[#allocation2 + $0xa8] sm:$0xff] %vm1537_vm11, %v3633_v34  ;;  %v1603_v43 = vpack.c.bf16 %v1579_v17, %v1578_v28  ;;  %3640 = vrot.lane.b32.xlu1 %v3639_v51, %s3713_s12  ;;  %3650 = vrot.lane.b32.xlu0 %v3649_v12, %s3714_s13  ;;  %v1813_v54 = vshrl.u32 %v1812_v40, 7  ;;  %v1443_v34 = vrot.slane %v4770_v30, 2 }
 0x1ba   : > { %v3621_v59 = vpop.permute.xlu0 %3620  ;;  %v1584_v29 = vld [vmem:[#allocation2 + $0x80] sm:$0xff] }
 0x1bb   : > { %v3623_v19 = vunpack.i.h.bf16 %v3621_v59  ;;  %v3622_v42 = vunpack.i.l.bf16 %v3621_v59  ;;  %v1585_v3 = vld [vmem:[#allocation2 + $0x88] sm:$0xff]  ;;  %v4990_v24 = vadd.s32 4294967295, %v1813_v54  ;;  %v1444_v49 = vsel %vm614_vm1, %v1441_v53, %v1443_v34 }
 0x1bc   : > { %v1606_v5 = vpack.c.bf16 %v1585_v3, %v1584_v29  ;;  %v1577_v56 = vld [vmem:[#allocation2 + $0x48] sm:$0xff] }
 0x1bd   : > { %1556 = vst.msk [vmem:[#allocation2 + $0x90] sm:$0xff] %vm1537_vm11, %v3622_v42  ;;  %v3646_v48 = vpop.permute.xlu2 %3645  ;;  %v1576_v38 = vld [vmem:[#allocation2 + $0x40] sm:$0xff]  ;;  %v4988_v42 = vstv %s2919_s28  ;;  %vm1849_vm8 = vcmp.ge.s32.totalorder %v4990_v24, 0 }
 0x1be   : > { %2906 = vmatmul.msk.bf16.gmra.mxu0 %vm5985_vm12, %v1600_v37  ;;  %2911 = vmatmul.msk.bf16.gmra.mxu2 %vm5985_vm12, %v1605_v26  ;;  %1557 = vst.msk [vmem:[#allocation2 + $0x98] sm:$0xff] %vm1537_vm11, %v3623_v19  ;;  %v3648_v14 = vunpack.i.h.bf16 %v3646_v48  ;;  %v3647_v47 = vunpack.i.l.bf16 %v3646_v48  ;;  %v1602_v27 = vpack.c.bf16 %v1577_v56, %v1576_v38  ;;  %v350_v37 = vunpack.c.l.bf16 %v302_v6 }
 0x1bf   : > { %v1588_v8 = vld [vmem:[#allocation2 + $0xa0] sm:$0xff]  ;;  %v1315_v26 = vrot.slane %v4770_v30, 1  ;;  %vm1819_vm13 = vcmp.ge.s32.totalorder %v4988_v42, 0  ;;  %vm1829_vm14 = vcmp.lt.s32.totalorder %v4988_v42, 16  ;;  %v1806_v28 = vadd.s32 4, %v4988_v42 }
 0x1c0   : > { %1560 = vst.msk [vmem:[#allocation2 + $0xb0] sm:$0xff] %vm1537_vm11, %v3647_v47  ;;  %v1589_v1 = vld [vmem:[#allocation2 + $0xa8] sm:$0xff]  ;;  %v1317_v46 = vrot.slane %v350_v37, 1  ;;  %v1445_v31 = vrot.slane %v350_v37, 2  ;;  %vm5002_vm15 = vmand %vm1819_vm13, %vm1829_vm14  ;;  %v1815_v47 = vadd.s32 16, %v1813_v54 }
 0x1c1   : > { %1561 = vst.msk [vmem:[#allocation2 + $0xb8] sm:$0xff] %vm1537_vm11, %v3648_v14  ;;  %v1608_v36 = vpack.c.bf16 %v1589_v1, %v1588_v8  ;;  %v1316_v59 = vsel %vm422_vm0, %v1313_v50, %v1315_v26  ;;  %vm1852_vm7 = vmand %vm5002_vm15, %vm1849_vm8  ;;  %vm1823_vm14 = vcmp.ge.s32.totalorder %v1806_v28, 0  ;;  %vm1833_vm6 = vcmp.lt.s32.totalorder %v1806_v28, 16 }
 0x1c2   : > { %v1318_v39 = vsel %vm422_vm0, %v1315_v26, %v1317_v46  ;;  %v1446_v29 = vsel %vm614_vm1, %v1443_v34, %v1445_v31  ;;  %v5015_v56 = vadd.s32 4294967295, %v1815_v47  ;;  %vm5042_vm4 = vmand %vm1823_vm14, %vm1833_vm6 }
 0x1c3   : > { %v3654_v19 = vpack.i.bf16 %v1318_v39, %v1316_v59 }
 0x1c4   : > { %v1586_v7 = vld [vmem:[#allocation2 + $0x90] sm:$0xff] }
 0x1c5   : > { %v1587_v15 = vld [vmem:[#allocation2 + $0x98] sm:$0xff]  ;;  %3655 = vrot.lane.b32.xlu1 %v3654_v19, %s3713_s12 }
 0x1c6   : > { %v1607_v44 = vpack.c.bf16 %v1587_v15, %v1586_v7 }
 0x1c7   : > { %v1590_v18 = vld [vmem:[#allocation2 + $0xb0] sm:$0xff] }
 0x1c8   : > { %v1591_v23 = vld [vmem:[#allocation2 + $0xb8] sm:$0xff] }
 0x1c9   : > { %v1609_v58 = vpack.c.bf16 %v1591_v23, %v1590_v18  ;;  %v1803_v18 = vadd.s32 1, %v4988_v42 }
 0x1cb   : > { %vm1820_vm9 = vcmp.ge.s32.totalorder %v1803_v18, 0  ;;  %vm1830_vm5 = vcmp.lt.s32.totalorder %v1803_v18, 16 }
 0x1cc   : > { %vm5048_vm3 = vmand %vm1820_vm9, %vm1830_vm5 }
 0x1cd   : > { %vm1855_vm5 = vmand %vm5048_vm3, %vm1849_vm8 }
 0x1ce   : > { %2907 = vmatmul.msk.bf16.gmra.mxu0 %vm5985_vm12, %v1601_v4  ;;  %2912 = vmatmul.msk.bf16.gmra.mxu2 %vm5985_vm12, %v1606_v5  ;;  %v3659_v4 = vpack.i.bf16 %v1446_v29, %v1444_v49 }
 0x1d0   : > { %3660 = vrot.lane.b32.xlu2 %v3659_v4, %s3714_s13 }
 0x1de   : > { %2908 = vmatmul.msk.bf16.gmra.mxu0 %vm5985_vm12, %v1602_v27  ;;  %2913 = vmatmul.msk.bf16.gmra.mxu2 %vm5985_vm12, %v1607_v44 }
 0x1ee   : > { %2909 = vmatmul.msk.bf16.gmra.mxu0 %vm5985_vm12, %v1603_v43  ;;  %2914 = vmatmul.msk.bf16.gmra.mxu2 %vm5985_vm12, %v1608_v36 }
 0x1fe   : > { %2915 = vmatmul.msk.bf16.gmra.mxu2 %vm5985_vm12, %v1609_v58 }
 0x21b   : > { %v1696_v5 = vpop.f32.mrf.mxu0 }
 0x21c   : > { %v1697_v30 = vadd.f32 %v4998_v9, %v1696_v5  ;;  %v1807_v5 = vadd.s32 5, %v4988_v42 }
 0x21e   : > { %v1771_v48 = vmax.f32 %v1697_v30, 0.0  ;;  %vm1824_vm9 = vcmp.ge.s32.totalorder %v1807_v5, 0 }
 0x220   : > { %v1915_v14 = vsel %vm1852_vm7, %v1771_v48, 0.0  ;;  %vm1884_vm7 = vcmp.lt.s32.totalorder %v5015_v56, 16 }
 0x221   : > { %1945 = vst.msk [vmem:[#allocation3] sm:$0xff] %vm351_vm2, %v1915_v14  ;;  %v1985_v27 = vrot.slane %v1915_v14, 1  ;;  %v2089_v17 = vrot.slane %v1915_v14, 2  ;;  %vm1887_vm13 = vmand %vm5002_vm15, %vm1884_vm7  ;;  %v1804_v14 = vadd.s32 2, %v4988_v42 }
 0x222   : > { %vm1890_vm6 = vmand %vm5048_vm3, %vm1884_vm7 }
 0x223   : > { %v1698_v7 = vpop.f32.mrf.mxu0  ;;  %vm1821_vm14 = vcmp.ge.s32.totalorder %v1804_v14, 0  ;;  %vm1899_vm12 = vmand %vm5042_vm4, %vm1884_vm7 }
 0x224   : > { %v1699_v15 = vadd.f32 %v4998_v9, %v1698_v7 }
 0x226   : > { %v1772_v38 = vmax.f32 %v1699_v15, 0.0 }
 0x228   : > { %v5019_v44 = vsel %vm5002_vm15, %v1772_v38, 0.0  ;;  %vm1864_vm15 = vmand %vm5042_vm4, %vm1849_vm8 }
 0x229   : > { %v1986_v8 = vrot.slane %v5019_v44, 1  ;;  %v2090_v1 = vrot.slane %v5019_v44, 2  ;;  %1946 = vst.msk [vmem:[#allocation3 + $0x8] sm:$0xff] %vm351_vm2, %v5019_v44 }
 0x22b   : > { %v1701_v36 = vpop.f32.mrf.mxu0  ;;  %v1987_v43 = vsel %vm422_vm0, %v1985_v27, %v1986_v8  ;;  %v5034_v58 = vsel %vm614_vm1, %v2089_v17, %v2090_v1 }
 0x22c   : > { %v1702_v23 = vadd.f32 %v4998_v9, %v1701_v36  ;;  %2025 = vrot.lane.b32.xlu0 %v1987_v43, %s3707_s6 }
 0x22e   : > { %v1773_v62 = vmax.f32 %v1702_v23, 0.0 }
 0x230   : > { %v5040_v21 = vsel %vm1887_vm13, %v1773_v62, 0.0  ;;  %vm1834_vm13 = vcmp.lt.s32.totalorder %v1807_v5, 16 }
 0x231   : > { %v1988_v50 = vrot.slane %v5040_v21, 1  ;;  %v1726_v60 = vpop.f32.mrf.mxu2 }
 0x232   : > { %v1727_v53 = vadd.f32 %v4998_v9, %v1726_v60 }
 0x233   : > { %v1703_v22 = vpop.f32.mrf.mxu0  ;;  %v1989_v51 = vsel %vm422_vm0, %v1986_v8, %v1988_v50 }
 0x234   : > { %v1783_v12 = vmax.f32 %v1727_v53, 0.0  ;;  %v1704_v6 = vadd.f32 %v4998_v9, %v1703_v22  ;;  %2027 = vrot.lane.b32.xlu1 %v1989_v51, %s3707_s6 }
 0x236   : > { %v5063_v37 = vsel %vm1864_vm15, %v1783_v12, 0.0  ;;  %v1774_v26 = vmax.f32 %v1704_v6, 0.0  ;;  %vm1831_vm15 = vcmp.lt.s32.totalorder %v1804_v14, 16 }
 0x237   : > { %1953 = vst.msk [vmem:[#allocation3 + $0x40] sm:$0xff] %vm351_vm2, %v5063_v37  ;;  %v2005_v43 = vrot.slane %v5063_v37, 1 }
 0x238   : > { %v5067_v46 = vsel %vm1855_vm5, %v1774_v26, 0.0  ;;  %vm5103_vm5 = vmand %vm1824_vm9, %vm1834_vm13 }
 0x239   : > { %1947 = vst.msk [vmem:[#allocation3 + $0x10] sm:$0xff] %vm351_vm2, %v5067_v46  ;;  %v1728_v59 = vpop.f32.mrf.mxu2  ;;  %v1990_v3 = vrot.slane %v5067_v46, 1 }
 0x23a   : > { %v1729_v39 = vadd.f32 %v4998_v9, %v1728_v59 }
 0x23b   : > { %v1706_v19 = vpop.f32.mrf.mxu0 }
 0x23c   : > { %v1784_v40 = vmax.f32 %v1729_v39, 0.0  ;;  %v1707_v54 = vadd.f32 %v4998_v9, %v1706_v19 }
 0x23e   : > { %v5075_v34 = vsel %vm5042_vm4, %v1784_v40, 0.0  ;;  %v1775_v31 = vmax.f32 %v1707_v54, 0.0 }
 0x23f   : > { %1954 = vst.msk [vmem:[#allocation3 + $0x48] sm:$0xff] %vm351_vm2, %v5075_v34  ;;  %v2006_v38 = vrot.slane %v5075_v34, 1 }
 0x240   : > { %v5081_v49 = vsel %vm5048_vm3, %v1775_v31, 0.0  ;;  %vm5114_vm3 = vmand %vm1821_vm14, %vm1831_vm15 }
 0x241   : > { %1948 = vst.msk [vmem:[#allocation3 + $0x18] sm:$0xff] %vm351_vm2, %v5081_v49  ;;  %v1731_v29 = vpop.f32.mrf.mxu2  ;;  %v1991_v4 = vrot.slane %v5081_v49, 1  ;;  %v5123_v41 = vsel %vm422_vm0, %v2005_v43, %v2006_v38  ;;  %vm1858_vm4 = vmand %vm5114_vm3, %vm1849_vm8 }
 0x242   : > { %v1732_v47 = vadd.f32 %v4998_v9, %v1731_v29  ;;  %vm1893_vm14 = vmand %vm5114_vm3, %vm1884_vm7 }
 0x243   : > { %v1708_v30 = vpop.f32.mrf.mxu0  ;;  %v5089_v48 = vsel %vm422_vm0, %v1990_v3, %v1991_v4 }
 0x244   : > { %v1709_v7 = vadd.f32 %v4998_v9, %v1708_v30  ;;  %2029 = vrot.lane.b32.xlu2 %v5089_v48, %s3707_s6  ;;  %v1785_v27 = vmax.f32 %v1732_v47, 0.0  ;;  %v1808_v47 = vadd.s32 6, %v4988_v42 }
 0x246   : > { %v1776_v15 = vmax.f32 %v1709_v7, 0.0  ;;  %v5128_v60 = vsel %vm1899_vm12, %v1785_v27, 0.0  ;;  %vm1902_vm12 = vmand %vm5103_vm5, %vm1884_vm7  ;;  %vm1825_vm9 = vcmp.ge.s32.totalorder %v1808_v47, 0  ;;  %vm1835_vm13 = vcmp.lt.s32.totalorder %v1808_v47, 16 }
 0x247   : > { %v2008_v12 = vrot.slane %v5128_v60, 1 }
 0x248   : > { %v5101_v8 = vsel %vm1890_vm6, %v1776_v15, 0.0  ;;  %vm1867_vm6 = vmand %vm5103_vm5, %vm1849_vm8 }
 0x249   : > { %v1993_v17 = vrot.slane %v5101_v8, 1  ;;  %v1733_v36 = vpop.f32.mrf.mxu2  ;;  %v5150_v19 = vsel %vm422_vm0, %v2006_v38, %v2008_v12  ;;  %v1805_v38 = vadd.s32 3, %v4988_v42 }
 0x24a   : > { %v1734_v18 = vadd.f32 %v4998_v9, %v1733_v36 }
 0x24b   : > { %v1711_v62 = vpop.f32.mrf.mxu0  ;;  %v5126_v50 = vsel %vm422_vm0, %v1991_v4, %v1993_v17  ;;  %vm1822_vm15 = vcmp.ge.s32.totalorder %v1805_v38, 0 }
 0x24c   : > { %v1786_v53 = vmax.f32 %v1734_v18, 0.0  ;;  %v1712_v61 = vadd.f32 %v4998_v9, %v1711_v62  ;;  %2041 = vrot.lane.b32.xlu2 %v5123_v41, %s3707_s6  ;;  %2031 = vrot.lane.b32.xlu0 %v5126_v50, %s3707_s6 }
 0x24e   : > { %v5139_v22 = vsel %vm1867_vm6, %v1786_v53, 0.0  ;;  %v1777_v51 = vmax.f32 %v1712_v61, 0.0  ;;  %vm5191_vm6 = vmand %vm1825_vm9, %vm1835_vm13 }
 0x24f   : > { %1955 = vst.msk [vmem:[#allocation3 + $0x50] sm:$0xff] %vm351_vm2, %v5139_v22  ;;  %v2010_v3 = vrot.slane %v5139_v22, 1  ;;  %vm1905_vm9 = vmand %vm5191_vm6, %vm1884_vm7 }
 0x250   : > { %v5144_v6 = vsel %vm1858_vm4, %v1777_v51, 0.0  ;;  %vm1870_vm4 = vmand %vm5191_vm6, %vm1849_vm8 }
 0x251   : > { %1949 = vst.msk [vmem:[#allocation3 + $0x20] sm:$0xff] %vm351_vm2, %v5144_v6  ;;  %v1736_v26 = vpop.f32.mrf.mxu2  ;;  %v1995_v28 = vrot.slane %v5144_v6, 1 }
 0x252   : > { %v1737_v59 = vadd.f32 %v4998_v9, %v1736_v26 }
 0x253   : > { %v1713_v39 = vpop.f32.mrf.mxu0 }
 0x254   : > { %v1787_v40 = vmax.f32 %v1737_v59, 0.0  ;;  %v1714_v54 = vadd.f32 %v4998_v9, %v1713_v39  ;;  %2043 = vrot.lane.b32.xlu0 %v5150_v19, %s3707_s6 }
 0x256   : > { %v5157_v31 = vsel %vm5103_vm5, %v1787_v40, 0.0  ;;  %v1778_v29 = vmax.f32 %v1714_v54, 0.0  ;;  %vm1832_vm5 = vcmp.lt.s32.totalorder %v1805_v38, 16 }
 0x257   : > { %1956 = vst.msk [vmem:[#allocation3 + $0x58] sm:$0xff] %vm351_vm2, %v5157_v31  ;;  %v2011_v4 = vrot.slane %v5157_v31, 1 }
 0x258   : > { %v5165_v5 = vsel %vm5114_vm3, %v1778_v29, 0.0  ;;  %vm5208_vm3 = vmand %vm1822_vm15, %vm1832_vm5 }
 0x259   : > { %1950 = vst.msk [vmem:[#allocation3 + $0x28] sm:$0xff] %vm351_vm2, %v5165_v5  ;;  %v1738_v30 = vpop.f32.mrf.mxu2  ;;  %v5170_v14 = vsel %vm422_vm0, %v2010_v3, %v2011_v4  ;;  %v1996_v36 = vrot.slane %v5165_v5, 1 }
 0x25a   : > { %v1739_v7 = vadd.f32 %v4998_v9, %v1738_v30  ;;  %2045 = vrot.lane.b32.xlu1 %v5170_v14, %s3707_s6 }
 0x25b   : > { %v1716_v15 = vpop.f32.mrf.mxu0  ;;  %v5199_v12 = vsel %vm422_vm0, %v1995_v28, %v1996_v36 }
 0x25c   : > { %v1788_v27 = vmax.f32 %v1739_v7, 0.0  ;;  %v1717_v17 = vadd.f32 %v4998_v9, %v1716_v15 }
 0x25e   : > { %v5183_v43 = vsel %vm1902_vm12, %v1788_v27, 0.0  ;;  %v1779_v18 = vmax.f32 %v1717_v17, 0.0  ;;  %vm1861_vm12 = vmand %vm5208_vm3, %vm1849_vm8  ;;  %v2092_v27 = vrot.slane %v5040_v21, 2 }
 0x25f   : > { %v2013_v62 = vrot.slane %v5183_v43, 1  ;;  %v2117_v11 = vrot.slane %v5183_v43, 2 }
 0x260   : > { %v5201_v26 = vsel %vm1893_vm14, %v1779_v18, 0.0 }
 0x261   : > { %v1741_v61 = vpop.f32.mrf.mxu2  ;;  %v5196_v51 = vsel %vm422_vm0, %v2011_v4, %v2013_v62  ;;  %v1998_v29 = vrot.slane %v5201_v26, 1 }
 0x262   : > { %v1742_v23 = vadd.f32 %v4998_v9, %v1741_v61  ;;  %2047 = vrot.lane.b32.xlu2 %v5196_v51, %s3707_s6  ;;  %2033 = vrot.lane.b32.xlu1 %v5199_v12, %s3707_s6 }
 0x263   : > { %v1718_v39 = vpop.f32.mrf.mxu0  ;;  %v5231_v7 = vsel %vm422_vm0, %v1996_v36, %v1998_v29 }
 0x264   : > { %v1789_v40 = vmax.f32 %v1742_v23, 0.0  ;;  %v1719_v54 = vadd.f32 %v4998_v9, %v1718_v39  ;;  %v3626_v23 = vpop.permute.xlu1 %3625  ;;  %v3636_v39 = vpop.permute.xlu0 %3635 }
 0x265   : > { %v3627_v29 = vunpack.i.l.bf16 %v3626_v23 }
 0x266   : > { %v5222_v3 = vsel %vm1870_vm4, %v1789_v40, 0.0  ;;  %v1780_v4 = vmax.f32 %v1719_v54, 0.0  ;;  %v2093_v40 = vsel %vm614_vm1, %v2090_v1, %v2092_v27  ;;  %v3628_v54 = vunpack.i.h.bf16 %v3626_v23  ;;  %vm1896_vm4 = vmand %vm5208_vm3, %vm1884_vm7 }
 0x267   : > { %1957 = vst.msk [vmem:[#allocation3 + $0x60] sm:$0xff] %vm351_vm2, %v5222_v3  ;;  %v2015_v36 = vrot.slane %v5222_v3, 1  ;;  %v2095_v1 = vrot.slane %v5081_v49, 2  ;;  %v2119_v32 = vrot.slane %v5222_v3, 2 }
 0x268   : > { %v5226_v30 = vsel %vm1861_vm12, %v1780_v4, 0.0  ;;  %1434 = vst.msk [vmem:[#allocation2 + $0xc0] sm:$0xff] %vm1409_vm10, %v3627_v29 }
 0x269   : > { %1951 = vst.msk [vmem:[#allocation3 + $0x30] sm:$0xff] %vm351_vm2, %v5226_v30  ;;  %v1743_v47 = vpop.f32.mrf.mxu2 }
 0x26a   : > { %v1744_v15 = vadd.f32 %v4998_v9, %v1743_v47  ;;  %2035 = vrot.lane.b32.xlu2 %v5231_v7, %s3707_s6  ;;  %1435 = vst.msk [vmem:[#allocation2 + $0xc8] sm:$0xff] %vm1409_vm10, %v3628_v54 }
 0x26b   : > { %v1721_v38 = vpop.f32.mrf.mxu0 }
 0x26c   : > { %v1790_v17 = vmax.f32 %v1744_v15, 0.0  ;;  %v1722_v18 = vadd.f32 %v4998_v9, %v1721_v38  ;;  %v1809_v15 = vadd.s32 7, %v4988_v42  ;;  %v3638_v38 = vunpack.i.h.bf16 %v3636_v39  ;;  %v3641_v23 = vpop.permute.xlu1 %3640  ;;  %v3651_v53 = vpop.permute.xlu0 %3650 }
 0x26d   : > { %v3642_v54 = vunpack.i.l.bf16 %v3641_v23  ;;  %v3653_v29 = vunpack.i.h.bf16 %v3651_v53 }
 0x26e   : > { %v5240_v62 = vsel %vm5191_vm6, %v1790_v17, 0.0  ;;  %v1781_v28 = vmax.f32 %v1722_v18, 0.0  ;;  %v3637_v17 = vunpack.i.l.bf16 %v3636_v39  ;;  %vm1826_vm13 = vcmp.ge.s32.totalorder %v1809_v15, 0  ;;  %1563 = vst.msk [vmem:[#allocation2 + $0xc8] sm:$0xff] %vm1537_vm11, %v3638_v38 }
 0x26f   : > { %1958 = vst.msk [vmem:[#allocation3 + $0x68] sm:$0xff] %vm351_vm2, %v5240_v62  ;;  %v2016_v61 = vrot.slane %v5240_v62, 1  ;;  %vm1836_vm14 = vcmp.lt.s32.totalorder %v1809_v15, 16  ;;  %vm6138_vm6 = vcmask 293888  }
 0x270   : > { %v5248_v21 = vsel %vm5208_vm3, %v1781_v28, 0.0  ;;  %1562 = vst.msk [vmem:[#allocation2 + $0xc0] sm:$0xff] %vm1537_vm11, %v3637_v17  ;;  %vm5276_vm15 = vmand %vm1826_vm13, %vm1836_vm14  ;;  %v3652_v17 = vunpack.i.l.bf16 %v3651_v53  ;;  %v2000_v53 = vrot.slane %v5226_v30, 1 }
 0x271   : > { %1952 = vst.msk [vmem:[#allocation3 + $0x38] sm:$0xff] %vm351_vm2, %v5248_v21  ;;  %v1746_v4 = vpop.f32.mrf.mxu2  ;;  %v5256_v47 = vsel %vm422_vm0, %v2015_v36, %v2016_v61  ;;  %v2094_v36 = vrot.slane %v5067_v46, 2  ;;  %vm1873_vm5 = vmand %vm5276_vm15, %vm1849_vm8 }
 0x272   : > { %v1747_v18 = vadd.f32 %v4998_v9, %v1746_v4  ;;  %2131 = vrot.lane.b32.xlu2 %v2093_v40, %s3708_s7  ;;  %2049 = vrot.lane.b32.xlu0 %v5256_v47, %s3707_s6  ;;  %v3643_v40 = vunpack.i.h.bf16 %v3641_v23  ;;  %1436 = vst.msk [vmem:[#allocation2 + $0xd0] sm:$0xff] %vm1409_vm10, %v3642_v54  ;;  %vm1908_vm3 = vmand %vm5276_vm15, %vm1884_vm7 }
 0x273   : > { %v5284_v38 = vsel %vm614_vm1, %v2094_v36, %v2095_v1  ;;  %1564 = vst.msk [vmem:[#allocation2 + $0xd0] sm:$0xff] %vm1537_vm11, %v3652_v17  ;;  %v3661_v36 = vpop.permute.xlu2 %3660  ;;  %v1723_v23 = vpop.f32.mrf.mxu0  ;;  %vm6139_vm12 = vmmov %vm6138_vm6 }
 0x274   : > { %v1791_v44 = vmax.f32 %v1747_v18, 0.0  ;;  %1437 = vst.msk [vmem:[#allocation2 + $0xd8] sm:$0xff] %vm1409_vm10, %v3643_v40  ;;  %v3663_v54 = vunpack.i.h.bf16 %v3661_v36  ;;  %v3662_v13 = vunpack.i.l.bf16 %v3661_v36  ;;  %v1724_v17 = vadd.f32 %v4998_v9, %v1723_v23 }
 0x275   : > { %1565 = vst.msk [vmem:[#allocation2 + $0xd8] sm:$0xff] %vm1537_vm11, %v3653_v29  ;;  %v1593_v45 = vld [vmem:[#allocation2 + $0xc8] sm:$0xff]  ;;  %v2097_v23 = vrot.slane %v5101_v8, 2 }
 0x276   : > { %v5272_v27 = vsel %vm1905_vm9, %v1791_v44, 0.0  ;;  %v2001_v44 = vrot.slane %v5248_v21, 1  ;;  %vm6140_vm9 = vcmask 64544  }
 0x277   : > { %v2018_v28 = vrot.slane %v5272_v27, 1  ;;  %vm6141_vm13 = vmmov %vm6140_vm9 }
 0x278   : > { %v5306_v29 = vsel %vm422_vm0, %v2000_v53, %v2001_v44  ;;  %v1782_v53 = vmax.f32 %v1724_v17, 0.0  ;;  %v2100_v17 = vrot.slane %v5165_v5, 2  ;;  %vm6142_vm14 = vmmov %vm6140_vm9 }
 0x279   : > { %v1748_v4 = vpop.f32.mrf.mxu2  ;;  %v5281_v15 = vsel %vm422_vm0, %v2016_v61, %v2018_v28 }
 0x27a   : > { %v1749_v18 = vadd.f32 %v4998_v9, %v1748_v4  ;;  %2051 = vrot.lane.b32.xlu1 %v5281_v15, %s3707_s6  ;;  %2133 = vrot.lane.b32.xlu0 %v5284_v38, %s3708_s7  ;;  %v3656_v4 = vpop.permute.xlu1 %3655  ;;  %v1594_v39 = vld [vmem:[#allocation2 + $0xd0] sm:$0xff] }
 0x27b   : > { %v3658_v10 = vunpack.i.h.bf16 %v3656_v4  ;;  %v3657_v40 = vunpack.i.l.bf16 %v3656_v4  ;;  %v1592_v4 = vld [vmem:[#allocation2 + $0xc0] sm:$0xff] }
 0x27c   : > { %v1792_v61 = vmax.f32 %v1749_v18, 0.0  ;;  %v1610_v36 = vpack.c.bf16 %v1593_v45, %v1592_v4  ;;  %v2099_v4 = vrot.slane %v5144_v6, 2 }
 0x27d   : > { %1439 = vst.msk [vmem:[#allocation2 + $0xe8] sm:$0xff] %vm1409_vm10, %v3658_v10 }
 0x27e   : > { %v5300_v28 = vsel %vm1873_vm5, %v1792_v61, 0.0  ;;  %1567 = vst.msk [vmem:[#allocation2 + $0xe8] sm:$0xff] %vm1537_vm11, %v3663_v54  ;;  %2916 = vmatmul.msk.bf16.vlgmr.msra.gmra.mxu3 %vm6138_vm6, %v1610_v36  ;;  %v1926_v54 = vsel %vm1896_vm4, %v1782_v53, 0.0  ;;  %v5350_v36 = vsel %vm614_vm1, %v2099_v4, %v2100_v17  ;;  %v2115_v4 = vrot.slane %v5157_v31, 2  ;;  %vm6144_vm5 = vmmov %vm6140_vm9 }
 0x27f   : > { %1959 = vst.msk [vmem:[#allocation3 + $0x70] sm:$0xff] %vm351_vm2, %v5300_v28  ;;  %v2020_v10 = vrot.slane %v5300_v28, 1  ;;  %vm6146_vm4 = vmmov %vm6144_vm5 }
 0x280   : > { %1438 = vst.msk [vmem:[#allocation2 + $0xe0] sm:$0xff] %vm1409_vm10, %v3657_v40 }
 0x281   : > { %v1751_v18 = vpop.f32.mrf.mxu2  ;;  %1566 = vst.msk [vmem:[#allocation2 + $0xe0] sm:$0xff] %vm1537_vm11, %v3662_v13 }
 0x282   : > { %v1752_v61 = vadd.f32 %v4998_v9, %v1751_v18  ;;  %2129 = vrot.lane.b32.xlu1 %v5034_v58, %s3708_s7  ;;  %2037 = vrot.lane.b32.xlu0 %v5306_v29, %s3707_s6  ;;  %v2003_v18 = vrot.slane %v1926_v54, 1 }
 0x284   : > { %v1793_v20 = vmax.f32 %v1752_v61, 0.0 }
 0x286   : > { %v5321_v58 = vsel %vm5276_vm15, %v1793_v20, 0.0  ;;  %v5336_v20 = vsel %vm614_vm1, %v2095_v1, %v2097_v23  ;;  %v5353_v23 = vsel %vm422_vm0, %v2001_v44, %v2003_v18  ;;  %v2102_v44 = vrot.slane %v5201_v26, 2  ;;  %vm6143_vm15 = vmmov %vm6138_vm6 }
 0x287   : > { %1960 = vst.msk [vmem:[#allocation3 + $0x78] sm:$0xff] %vm351_vm2, %v5321_v58  ;;  %v2021_v45 = vrot.slane %v5321_v58, 1  ;;  %v2112_v26 = vrot.slane %v5128_v60, 2  ;;  %vm6145_vm6 = vmmov %vm6144_vm5 }
 0x289   : > { %v1753_v13 = vpop.f32.mrf.mxu2  ;;  %v5333_v8 = vsel %vm422_vm0, %v2020_v10, %v2021_v45  ;;  %v1595_v10 = vld [vmem:[#allocation2 + $0xd8] sm:$0xff] }
 0x28a   : > { %v1754_v40 = vadd.f32 %v4998_v9, %v1753_v13  ;;  %2053 = vrot.lane.b32.xlu2 %v5333_v8, %s3707_s6  ;;  %2135 = vrot.lane.b32.xlu1 %v5336_v20, %s3708_s7  ;;  %v1611_v13 = vpack.c.bf16 %v1595_v10, %v1594_v39 }
 0x28c   : > { %v1794_v59 = vmax.f32 %v1754_v40, 0.0  ;;  %v2107_v40 = vrot.slane %v1926_v54, 2  ;;  %v5379_v54 = vsel %vm614_vm1, %v2100_v17, %v2102_v44  ;;  %v2109_v17 = vrot.slane %v5063_v37, 2 }
 0x28e   : > { %v1938_v1 = vsel %vm1908_vm3, %v1794_v59, 0.0  ;;  %v2105_v59 = vrot.slane %v5248_v21, 2  ;;  %2917 = vmatmul.msk.bf16.gmra.mxu3 %vm6139_vm12, %v1611_v13  ;;  %v2110_v13 = vrot.slane %v5075_v34, 2  ;;  %vm6147_vm3 = vmmov %vm6146_vm4 }
 0x28f   : > { %v2023_v61 = vrot.slane %v1938_v1, 1  ;;  %v2127_v43 = vrot.slane %v1938_v1, 2  ;;  %vm6148_vm12 = vmmov %vm6147_vm3 }
 0x290   : > { %v5369_v18 = vsel %vm614_vm1, %v2105_v59, %v2107_v40  ;;  %v2114_v40 = vrot.slane %v5139_v22, 2  ;;  %v5394_v44 = vsel %vm614_vm1, %v2110_v13, %v2112_v26  ;;  %v5401_v60 = vsel %vm614_vm1, %v2109_v17, %v2110_v13 }
 0x291   : > { %v5356_v53 = vsel %vm422_vm0, %v2021_v45, %v2023_v61  ;;  %v2104_v45 = vrot.slane %v5226_v30, 2  ;;  %v2124_v17 = vrot.slane %v5300_v28, 2 }
 0x292   : > { %2137 = vrot.lane.b32.xlu2 %v5350_v36, %s3708_s7  ;;  %2039 = vrot.lane.b32.xlu1 %v5353_v23, %s3707_s6 }
 0x293   : > { %2055 = vrot.lane.b32.xlu0 %v5356_v53, %s3707_s6  ;;  %v5372_v61 = vsel %vm614_vm1, %v2104_v45, %v2105_v59  ;;  %v5391_v59 = vsel %vm614_vm1, %v2114_v40, %v2115_v4  ;;  %v1596_v45 = vld [vmem:[#allocation2 + $0xe0] sm:$0xff]  ;;  %v2120_v40 = vrot.slane %v5240_v62, 2 }
 0x29a   : > { %2143 = vrot.lane.b32.xlu2 %v5369_v18, %s3708_s7  ;;  %2141 = vrot.lane.b32.xlu1 %v5372_v61, %s3708_s7 }
 0x29b   : > { %2139 = vrot.lane.b32.xlu0 %v5379_v54, %s3708_s7 }
 0x29e   : > { %v2030_v39 = vpop.permute.xlu2 %2029  ;;  %v2026_v10 = vpop.permute.xlu0 %2025 }
 0x29f   : > { %2075 = vst.msk [vmem:[#allocation3 + $0x10] sm:$0xff] %vm6140_vm9, %v2030_v39  ;;  %v1597_v39 = vld [vmem:[#allocation2 + $0xe8] sm:$0xff]  ;;  %vm6149_vm9 = vcmask 97344  }
 0x2a0   : > { %2073 = vst.msk [vmem:[#allocation3] sm:$0xff] %vm6141_vm13, %v2026_v10  ;;  %v2122_v10 = vrot.slane %v5272_v27, 2  ;;  %v1612_v26 = vpack.c.bf16 %v1597_v39, %v1596_v45  ;;  %v5416_v27 = vsel %vm614_vm1, %v2119_v32, %v2120_v40  ;;  %vm6150_vm13 = vmmov %vm6147_vm3 }
 0x2a2   : > { %2149 = vrot.lane.b32.xlu2 %v5391_v59, %s3708_s7  ;;  %2147 = vrot.lane.b32.xlu1 %v5394_v44, %s3708_s7  ;;  %v5413_v13 = vsel %vm614_vm1, %v2120_v40, %v2122_v10 }
 0x2a3   : > { %2145 = vrot.lane.b32.xlu0 %v5401_v60, %s3708_s7  ;;  %2918 = vmatmul.msk.bf16.gmra.mxu3 %vm6143_vm15, %v1612_v26  ;;  %vm6152_vm15 = vmmov %vm6147_vm3 }
 0x2a6   : > { %v2042_v0 = vpop.permute.xlu2 %2041  ;;  %v2028_v16 = vpop.permute.xlu1 %2027 }
 0x2a7   : > { %2081 = vst.msk [vmem:[#allocation3 + $0x40] sm:$0xff] %vm6142_vm14, %v2042_v0  ;;  %v5423_v0 = vsel %vm614_vm1, %v2115_v4, %v2117_v11  ;;  %vm6151_vm14 = vmmov %vm6147_vm3 }
 0x2a8   : > { %2074 = vst.msk [vmem:[#allocation3 + $0x8] sm:$0xff] %vm6144_vm5, %v2028_v16  ;;  %v2125_v16 = vrot.slane %v5321_v58, 2  ;;  %vm6153_vm5 = vmmov %vm6147_vm3 }
 0x2aa   : > { %2155 = vrot.lane.b32.xlu2 %v5413_v13, %s3708_s7  ;;  %2153 = vrot.lane.b32.xlu1 %v5416_v27, %s3708_s7  ;;  %v5430_v32 = vsel %vm614_vm1, %v2125_v16, %v2127_v43  ;;  %v5437_v11 = vsel %vm614_vm1, %v2124_v17, %v2125_v16 }
 0x2ab   : > { %2151 = vrot.lane.b32.xlu0 %v5423_v0, %s3708_s7 }
 0x2b2   : > { %2195 = vrot.lane.b32.xlu2 %v5067_v46, %s3709_s8  ;;  %2159 = vrot.lane.b32.xlu1 %v5430_v32, %s3708_s7 }
 0x2b3   : > { %2157 = vrot.lane.b32.xlu0 %v5437_v11, %s3708_s7 }
 0x2ba   : > { %2201 = vrot.lane.b32.xlu2 %v5165_v5, %s3709_s8  ;;  %2199 = vrot.lane.b32.xlu1 %v5144_v6, %s3709_s8 }
 0x2bb   : > { %2197 = vrot.lane.b32.xlu0 %v5081_v49, %s3709_s8 }
 0x2bc   : > { %v2048_v1 = vpop.permute.xlu2 %2047 }
 0x2bd   : > { %2084 = vst.msk [vmem:[#allocation3 + $0x58] sm:$0xff] %vm6145_vm6, %v2048_v1  ;;  %vm6154_vm6 = vmmov %vm6149_vm9 }
 0x2be   : > { %v2032_v46 = vpop.permute.xlu0 %2031 }
 0x2bf   : > { %2076 = vst.msk [vmem:[#allocation3 + $0x18] sm:$0xff] %vm6146_vm4, %v2032_v46  ;;  %vm6155_vm4 = vmmov %vm6147_vm3  ;;  %v2631_v46 = vld [vmem:[%s5902_s3 + $0x10] sm:$0x3] }
 0x2c2   : > { %2267 = vrot.lane.b32.xlu2 %v5126_v50, %s3710_s9  ;;  %2265 = vrot.lane.b32.xlu1 %v5089_v48, %s3710_s9 }
 0x2c3   : > { %2203 = vrot.lane.b32.xlu0 %v5226_v30, %s3709_s8 }
 0x2c4   : > { %v2036_v4 = vpop.permute.xlu2 %2035 }
 0x2c5   : > { %2078 = vst.msk [vmem:[#allocation3 + $0x28] sm:$0xff] %vm6147_vm3, %v2036_v4  ;;  %vm6156_vm3 = vmmov %vm6154_vm6 }
 0x2c6   : > { %v2044_v45 = vpop.permute.xlu0 %2043 }
 0x2c7   : > { %2082 = vst.msk [vmem:[#allocation3 + $0x48] sm:$0xff] %vm6148_vm12, %v2044_v45  ;;  %vm6157_vm12 = vmmov %vm6156_vm3 }
 0x2ca   : > { %2400 = vrot.lane.b32.xlu2 %v5144_v6, %s3712_s11  ;;  %2336 = vrot.lane.b32.xlu1 %v5336_v20, %s3711_s10 }
 0x2cb   : > { %2334 = vrot.lane.b32.xlu0 %v5284_v38, %s3711_s10 }
 0x2cc   : > { %v2132_v49 = vpop.permute.xlu2 %2131  ;;  %v2046_v48 = vpop.permute.xlu1 %2045 }
 0x2cd   : > { %2178 = vst.msk [vmem:[#allocation3 + $0x8] sm:$0xff] %vm6149_vm9, %v2132_v49  ;;  %vm6158_vm9 = vmmov %vm6155_vm4 }
 0x2ce   : > { %2083 = vst.msk [vmem:[#allocation3 + $0x50] sm:$0xff] %vm6150_vm13, %v2046_v48  ;;  %vm6159_vm13 = vmmov %vm6156_vm3 }
 0x2d2   : > { %2472 = vrot.lane.b32.xlu2 %v5231_v7, %s3713_s12  ;;  %2470 = vrot.lane.b32.xlu1 %v5199_v12, %s3713_s12 }
 0x2d3   : > { %2402 = vrot.lane.b32.xlu0 %v5165_v5, %s3712_s11 }
 0x2d4   : > { %v2034_v50 = vpop.permute.xlu1 %2033 }
 0x2d5   : > { %2077 = vst.msk [vmem:[#allocation3 + $0x20] sm:$0xff] %vm6151_vm14, %v2034_v50  ;;  %vm6160_vm14 = vmmov %vm6156_vm3 }
 0x2da   : > { %2269 = vrot.lane.b32.xlu2 %v5199_v12, %s3710_s9  ;;  %2541 = vrot.lane.b32.xlu1 %v5379_v54, %s3714_s13 }
 0x2db   : > { %2539 = vrot.lane.b32.xlu0 %v5350_v36, %s3714_s13 }
 0x2e2   : > { %2340 = vrot.lane.b32.xlu2 %v5379_v54, %s3711_s10  ;;  %2338 = vrot.lane.b32.xlu1 %v5350_v36, %s3711_s10 }
 0x2e3   : > { %2271 = vrot.lane.b32.xlu0 %v5231_v7, %s3710_s9 }
 0x2e4   : > { %v2054_v6 = vpop.permute.xlu2 %2053  ;;  %v2050_v5 = vpop.permute.xlu0 %2049 }
 0x2e5   : > { %2087 = vst.msk [vmem:[#allocation3 + $0x70] sm:$0xff] %vm6152_vm15, %v2054_v6  ;;  %vm6161_vm15 = vmmov %vm6156_vm3  ;;  %v2946_v6 = vld [vmem:[%s5902_s3 + $0x8] sm:$0xff] }
 0x2e6   : > { %2085 = vst.msk [vmem:[#allocation3 + $0x60] sm:$0xff] %vm6153_vm5, %v2050_v5  ;;  %vm6162_vm5 = vmmov %vm6155_vm4  ;;  %v2945_v5 = vld [vmem:[%s5902_s3] sm:$0xff] }
 0x2ea   : > { %2474 = vrot.lane.b32.xlu2 %v5306_v29, %s3713_s12  ;;  %2406 = vrot.lane.b32.xlu1 %v5248_v21, %s3712_s11 }
 0x2eb   : > { %2404 = vrot.lane.b32.xlu0 %v5226_v30, %s3712_s11 }
 0x2ec   : > { %v2138_v12 = vpop.permute.xlu2 %2137  ;;  %v2052_v38 = vpop.permute.xlu1 %2051 }
 0x2ed   : > { %2181 = vst.msk [vmem:[#allocation3 + $0x20] sm:$0xff] %vm6154_vm6, %v2138_v12  ;;  %v2134_v7 = vpop.permute.xlu0 %2133  ;;  %vm6163_vm6 = vmmov %vm6156_vm3  ;;  %v1810_v12 = vadd.s32 8, %v4988_v42 }
 0x2ee   : > { %2086 = vst.msk [vmem:[#allocation3 + $0x68] sm:$0xff] %vm6155_vm4, %v2052_v38 }
 0x2ef   : > { %2179 = vst.msk [vmem:[#allocation3 + $0x10] sm:$0xff] %vm6156_vm3, %v2134_v7  ;;  %vm6164_vm3 = vcmask 130144  }
 0x2f2   : > { %2545 = vrot.lane.b32.xlu2 %v5369_v18, %s3714_s13  ;;  %2543 = vrot.lane.b32.xlu1 %v5372_v61, %s3714_s13 }
 0x2f3   : > { %2476 = vrot.lane.b32.xlu0 %v5353_v23, %s3713_s12 }
 0x2f4   : > { %v2144_v20 = vpop.permute.xlu2 %2143  ;;  %v2130_v30 = vpop.permute.xlu1 %2129 }
 0x2f5   : > { %2177 = vst.msk [vmem:[#allocation3] sm:$0xff] %vm6157_vm12, %v2130_v30  ;;  %v2038_v36 = vpop.permute.xlu0 %2037  ;;  %vm6165_vm12 = vmmov %vm6163_vm6 }
 0x2f6   : > { %2079 = vst.msk [vmem:[#allocation3 + $0x30] sm:$0xff] %vm6158_vm9, %v2038_v36  ;;  %vm6166_vm9 = vmmov %vm6163_vm6 }
 0x2fa   : > { %2275 = vrot.lane.b32.xlu2 %v5353_v23, %s3710_s9  ;;  %2273 = vrot.lane.b32.xlu1 %v5306_v29, %s3710_s9 }
 0x2fb   : > { %2205 = vrot.lane.b32.xlu0 %v5248_v21, %s3709_s8 }
 0x2fc   : > { %v2150_v54 = vpop.permute.xlu2 %2149  ;;  %v2136_v39 = vpop.permute.xlu1 %2135 }
 0x2fd   : > { %2187 = vst.msk [vmem:[#allocation3 + $0x50] sm:$0xff] %vm6159_vm13, %v2150_v54  ;;  %vm6167_vm13 = vmmov %vm6164_vm3 }
 0x2fe   : > { %2180 = vst.msk [vmem:[#allocation3 + $0x18] sm:$0xff] %vm6160_vm14, %v2136_v39  ;;  %vm6168_vm14 = vmmov %vm6163_vm6 }
 0x302   : > { %2408 = vrot.lane.b32.xlu2 %v5063_v37, %s3712_s11  ;;  %2344 = vrot.lane.b32.xlu1 %v5369_v18, %s3711_s10 }
 0x303   : > { %2342 = vrot.lane.b32.xlu0 %v5372_v61, %s3711_s10 }
 0x304   : > { %v2156_v23 = vpop.permute.xlu2 %2155  ;;  %v2040_v29 = vpop.permute.xlu1 %2039 }
 0x305   : > { %2190 = vst.msk [vmem:[#allocation3 + $0x68] sm:$0xff] %vm6161_vm15, %v2156_v23  ;;  %v2056_v21 = vpop.permute.xlu0 %2055  ;;  %vm6169_vm15 = vmmov %vm6163_vm6 }
 0x306   : > { %2080 = vst.msk [vmem:[#allocation3 + $0x38] sm:$0xff] %vm6162_vm5, %v2040_v29  ;;  %vm6170_vm5 = vmmov %vm6163_vm6 }
 0x307   : > { %2184 = vst.msk [vmem:[#allocation3 + $0x38] sm:$0xff] %vm6163_vm6, %v2144_v20  ;;  %vm6171_vm6 = vmmov %vm6170_vm5 }
 0x308   : > { %2088 = vst.msk [vmem:[#allocation3 + $0x78] sm:$0xff] %vm6155_vm4, %v2056_v21  ;;  %vm6172_vm4 = vmmov %vm6170_vm5 }
 0x30a   : > { %2480 = vrot.lane.b32.xlu2 %v5150_v19, %s3713_s12  ;;  %2478 = vrot.lane.b32.xlu1 %v5123_v41, %s3713_s12 }
 0x30b   : > { %2410 = vrot.lane.b32.xlu0 %v5075_v34, %s3712_s11 }
 0x30c   : > { %v2196_v18 = vpop.permute.xlu2 %2195  ;;  %v2142_v61 = vpop.permute.xlu1 %2141 }
 0x30d   : > { %2243 = vst.msk [vmem:[#allocation3] sm:$0xff] %vm6164_vm3, %v2196_v18  ;;  %v2140_v10 = vpop.permute.xlu0 %2139  ;;  %vm6173_vm3 = vmmov %vm6172_vm4 }
 0x30e   : > { %2183 = vst.msk [vmem:[#allocation3 + $0x30] sm:$0xff] %vm6165_vm12, %v2142_v61  ;;  %vm6174_vm12 = vmmov %vm6167_vm13 }
 0x30f   : > { %2182 = vst.msk [vmem:[#allocation3 + $0x28] sm:$0xff] %vm6166_vm9, %v2140_v10  ;;  %vm6175_vm9 = vmmov %vm6174_vm12 }
 0x312   : > { %2207 = vrot.lane.b32.xlu2 %v5063_v37, %s3709_s8  ;;  %2549 = vrot.lane.b32.xlu1 %v5394_v44, %s3714_s13 }
 0x313   : > { %2547 = vrot.lane.b32.xlu0 %v5401_v60, %s3714_s13 }
 0x314   : > { %v2202_v40 = vpop.permute.xlu2 %2201  ;;  %v2148_v26 = vpop.permute.xlu1 %2147 }
 0x315   : > { %2246 = vst.msk [vmem:[#allocation3 + $0x18] sm:$0xff] %vm6167_vm13, %v2202_v40  ;;  %v2146_v43 = vpop.permute.xlu0 %2145  ;;  %vm6176_vm13 = vcmask 1041408  }
 0x316   : > { %2186 = vst.msk [vmem:[#allocation3 + $0x48] sm:$0xff] %vm6168_vm14, %v2148_v26  ;;  %vm6177_vm14 = vcmask 162944  }
 0x317   : > { %2185 = vst.msk [vmem:[#allocation3 + $0x40] sm:$0xff] %vm6169_vm15, %v2146_v43  ;;  %vm6178_vm15 = vmmov %vm6177_vm14 }
 0x31a   : > { %2279 = vrot.lane.b32.xlu2 %v5150_v19, %s3710_s9  ;;  %2277 = vrot.lane.b32.xlu1 %v5123_v41, %s3710_s9  ;;  %v1756_v41 = vpop.f32.mrf.mxu3 }
 0x31b   : > { %2209 = vrot.lane.b32.xlu0 %v5075_v34, %s3709_s8  ;;  %v1757_v36 = vadd.f32 %v4998_v9, %v1756_v41 }
 0x31c   : > { %v2268_v37 = vpop.permute.xlu2 %2267  ;;  %v2154_v16 = vpop.permute.xlu1 %2153 }
 0x31d   : > { %2189 = vst.msk [vmem:[#allocation3 + $0x60] sm:$0xff] %vm6170_vm5, %v2154_v16  ;;  %v2152_v17 = vpop.permute.xlu0 %2151  ;;  %vm6179_vm5 = vmmov %vm6177_vm14  ;;  %v1795_v21 = vmax.f32 %v1757_v36, 0.0 }
 0x31e   : > { %2188 = vst.msk [vmem:[#allocation3 + $0x58] sm:$0xff] %vm6171_vm6, %v2152_v17  ;;  %vm6180_vm6 = vmmov %vm6175_vm9 }
 0x322   : > { %2412 = vrot.lane.b32.xlu2 %v5139_v22, %s3712_s11  ;;  %2348 = vrot.lane.b32.xlu1 %v5394_v44, %s3711_s10  ;;  %v2645_v44 = vunpack.c.l.b16 %v2631_v46  ;;  %v1758_v48 = vpop.f32.mrf.mxu3 }
 0x323   : > { %2346 = vrot.lane.b32.xlu0 %v5401_v60, %s3711_s10  ;;  %v1759_v54 = vadd.f32 %v4998_v9, %v1758_v48 }
 0x324   : > { %v2401_v19 = vpop.permute.xlu2 %2400  ;;  %v2160_v1 = vpop.permute.xlu1 %2159  ;;  %v2648_v45 = vpack.c.b16 %v2645_v44, %v2645_v44 }
 0x325   : > { %2192 = vst.msk [vmem:[#allocation3 + $0x78] sm:$0xff] %vm6172_vm4, %v2160_v1  ;;  %v2158_v34 = vpop.permute.xlu0 %2157  ;;  %vm1827_vm4 = vcmp.ge.s32.totalorder %v1810_v12, 0 }
 0x326   : > { %2191 = vst.msk [vmem:[#allocation3 + $0x70] sm:$0xff] %vm6173_vm3, %v2158_v34  ;;  %v2676_v50 = vsel %vm6176_vm13, %v2648_v45, 0  ;;  %vm1837_vm3 = vcmp.lt.s32.totalorder %v1810_v12, 16 }
 0x327   : > { %2683 = vmatpush.bf16.msra.mxu1 %v2676_v50  ;;  %3012 = vmatpush.bf16.msrb.mxu3 %v2676_v50 }
 0x32a   : > { %2484 = vrot.lane.b32.xlu2 %v5196_v51, %s3713_s12  ;;  %2482 = vrot.lane.b32.xlu1 %v5170_v14, %s3713_s12  ;;  %v1761_v30 = vpop.f32.mrf.mxu3 }
 0x32b   : > { %2414 = vrot.lane.b32.xlu0 %v5157_v31, %s3712_s11  ;;  %2684 = vmatpush.bf16.msra.mxu1 %v2946_v6  ;;  %v1762_v39 = vadd.f32 %v4998_v9, %v1761_v30  ;;  %v1796_v9 = vmax.f32 %v1759_v54, 0.0 }
 0x32c   : > { %v2473_v60 = vpop.permute.xlu2 %2472  ;;  %v2200_v4 = vpop.permute.xlu1 %2199  ;;  %3013 = vmatpush.bf16.msrb.mxu3 %v2946_v6 }
 0x32d   : > { %2245 = vst.msk [vmem:[#allocation3 + $0x10] sm:$0xff] %vm6174_vm12, %v2200_v4  ;;  %v2198_v49 = vpop.permute.xlu0 %2197  ;;  %vm1847_vm12 = vmand %vm1827_vm4, %vm1837_vm3  ;;  %v1797_v61 = vmax.f32 %v1762_v39, 0.0  ;;  %vm6186_vm3 = vcmask 162944  }
 0x32e   : > { %2244 = vst.msk [vmem:[#allocation3 + $0x8] sm:$0xff] %vm6175_vm9, %v2198_v49  ;;  %vm6181_vm9 = vcmask 195744   ;;  %vm1876_vm13 = vmand %vm1847_vm12, %vm1849_vm8  ;;  %v5602_v40 = vsel %vm1847_vm12, %v1796_v9, 0.0  ;;  %v1811_v9 = vadd.s32 9, %v4988_v42 }
 0x32f   : > { %2314 = vst.msk [vmem:[#allocation3 + $0x8] sm:$0xff] %vm6177_vm14, %v2268_v37  ;;  %2685 = vmatpush.bf16.msra.mxu1 %v2945_v5  ;;  %vm6182_vm14 = vmmov %vm6181_vm9  ;;  %v5600_v10 = vsel %vm1876_vm13, %v1795_v21, 0.0  ;;  %v2261_v17 = vrot.slane %v5602_v40, 1  ;;  %v2330_v4 = vrot.slane %v5602_v40, 2 }
 0x330   : > { %3014 = vmatpush.bf16.msrb.mxu3 %v2945_v5  ;;  %v2260_v16 = vrot.slane %v5600_v10, 1  ;;  %v2329_v49 = vrot.slane %v5600_v10, 2  ;;  %vm6185_vm4 = vmmov %vm6181_vm9 }
 0x332   : > { %2219 = vrot.lane.b32.xlu2 %v5300_v28, %s3709_s8  ;;  %2553 = vrot.lane.b32.xlu1 %v5423_v0, %s3714_s13  ;;  %v5619_v34 = vsel %vm422_vm0, %v2260_v16, %v2261_v17  ;;  %v5639_v50 = vsel %vm614_vm1, %v2329_v49, %v2330_v4 }
 0x333   : > { %2551 = vrot.lane.b32.xlu0 %v5391_v59, %s3714_s13 }
 0x334   : > { %v2270_v38 = vpop.permute.xlu2 %2269  ;;  %v2266_v7 = vpop.permute.xlu1 %2265 }
 0x335   : > { %2315 = vst.msk [vmem:[#allocation3 + $0x10] sm:$0xff] %vm6178_vm15, %v2270_v38  ;;  %v2204_v20 = vpop.permute.xlu0 %2203  ;;  %vm1911_vm15 = vmand %vm1847_vm12, %vm1884_vm7 }
 0x336   : > { %2313 = vst.msk [vmem:[#allocation3] sm:$0xff] %vm6179_vm5, %v2266_v7  ;;  %vm6183_vm5 = vcmask 228544   ;;  %v1941_v26 = vsel %vm1911_vm15, %v1797_v61, 0.0  ;;  %vm6187_vm12 = vmmov %vm6185_vm4  ;;  %vm6191_vm15 = vcmask 130144  }
 0x337   : > { %2247 = vst.msk [vmem:[#allocation3 + $0x20] sm:$0xff] %vm6180_vm6, %v2204_v20  ;;  %v2263_v41 = vrot.slane %v1941_v26, 1  ;;  %vm6184_vm6 = vmmov %vm6183_vm5 }
 0x338   : > { %vm6189_vm13 = vmmov %vm6183_vm5 }
 0x339   : > { %v5616_v1 = vsel %vm422_vm0, %v2261_v17, %v2263_v41 }
 0x33a   : > { %2291 = vrot.lane.b32.xlu2 %v5356_v53, %s3710_s9  ;;  %2289 = vrot.lane.b32.xlu1 %v5333_v8, %s3710_s9 }
 0x33b   : > { %2221 = vrot.lane.b32.xlu0 %v5321_v58, %s3709_s8 }
 0x33c   : > { %v2341_v23 = vpop.permute.xlu2 %2340  ;;  %v2337_v29 = vpop.permute.xlu1 %2336 }
 0x33d   : > { %2383 = vst.msk [vmem:[#allocation3 + $0x8] sm:$0xff] %vm6181_vm9, %v2337_v29  ;;  %v2335_v18 = vpop.permute.xlu0 %2334  ;;  %vm6188_vm9 = vcmask 293888  }
 0x33e   : > { %2382 = vst.msk [vmem:[#allocation3] sm:$0xff] %vm6182_vm14, %v2335_v18  ;;  %vm6190_vm14 = vmmov %vm6183_vm5 }
 0x33f   : > { %2448 = vst.msk [vmem:[#allocation3] sm:$0xff] %vm6183_vm5, %v2401_v19  ;;  %vm6192_vm5 = vmmov %vm6186_vm3 }
 0x342   : > { %2424 = vrot.lane.b32.xlu2 %v5600_v10, %s3712_s11  ;;  %2360 = vrot.lane.b32.xlu1 %v5430_v32, %s3711_s10 }
 0x343   : > { %2358 = vrot.lane.b32.xlu0 %v5437_v11, %s3711_s10 }
 0x344   : > { %v2475_v43 = vpop.permute.xlu2 %2474  ;;  %v2471_v37 = vpop.permute.xlu1 %2470 }
 0x345   : > { %2518 = vst.msk [vmem:[#allocation3] sm:$0xff] %vm1409_vm10, %v2471_v37  ;;  %v2403_v19 = vpop.permute.xlu0 %2402 }
 0x346   : > { %2449 = vst.msk [vmem:[#allocation3 + $0x8] sm:$0xff] %vm6184_vm6, %v2403_v19  ;;  %vm6193_vm6 = vmmov %vm6191_vm15 }
 0x347   : > { %2519 = vst.msk [vmem:[#allocation3 + $0x8] sm:$0xff] %vm1409_vm10, %v2473_v60  ;;  %v2332_v60 = vrot.slane %v1941_v26, 2 }
 0x349   : > { %v5632_v48 = vsel %vm614_vm1, %v2330_v4, %v2332_v60 }
 0x34a   : > { %2496 = vrot.lane.b32.xlu2 %v5616_v1, %s3713_s12  ;;  %2494 = vrot.lane.b32.xlu1 %v5619_v34, %s3713_s12 }
 0x34b   : > { %2426 = vrot.lane.b32.xlu0 %v5602_v40, %s3712_s11 }
 0x34c   : > { %v2546_v46 = vpop.permute.xlu2 %2545  ;;  %v2542_v44 = vpop.permute.xlu1 %2541 }
 0x34d   : > { %2588 = vst.msk [vmem:[#allocation3 + $0x8] sm:$0xff] %vm1537_vm11, %v2542_v44  ;;  %v2540_v45 = vpop.permute.xlu0 %2539 }
 0x34e   : > { %2587 = vst.msk [vmem:[#allocation3] sm:$0xff] %vm1537_vm11, %v2540_v45 }
 0x352   : > { %2211 = vrot.lane.b32.xlu2 %v5139_v22, %s3709_s8  ;;  %2565 = vrot.lane.b32.xlu1 %v5632_v48, %s3714_s13 }
 0x353   : > { %2563 = vrot.lane.b32.xlu0 %v5639_v50, %s3714_s13 }
 0x354   : > { %v2276_v6 = vpop.permute.xlu2 %2275  ;;  %v2339_v5 = vpop.permute.xlu1 %2338  ;;  %v2604_v12 = vld [vmem:[#allocation3 + $0x8] sm:$0xff] }
 0x355   : > { %2384 = vst.msk [vmem:[#allocation3 + $0x10] sm:$0xff] %vm6185_vm4, %v2339_v5  ;;  %v2272_v38 = vpop.permute.xlu0 %2271  ;;  %v2603_v7 = vld [vmem:[#allocation3] sm:$0xff]  ;;  %vm6194_vm4 = vmmov %vm6186_vm3 }
 0x356   : > { %2316 = vst.msk [vmem:[#allocation3 + $0x18] sm:$0xff] %vm6186_vm3, %v2272_v38  ;;  %v2619_v20 = vpack.c.bf16 %v2604_v12, %v2603_v7  ;;  %vm6195_vm3 = vmmov %vm6188_vm9 }
 0x357   : > { %2385 = vst.msk [vmem:[#allocation3 + $0x18] sm:$0xff] %vm6187_vm12, %v2341_v23 }
 0x358   : > { %2931 = vmatmul.msk.bf16.vlgmr.msra.gmra.mxu1 %vm6188_vm9, %v2619_v20  ;;  %vm6196_vm9 = vmmov %vm6187_vm12 }
 0x35a   : > { %2283 = vrot.lane.b32.xlu2 %v5196_v51, %s3710_s9  ;;  %2281 = vrot.lane.b32.xlu1 %v5170_v14, %s3710_s9  ;;  %v1763_v51 = vpop.f32.mrf.mxu3 }
 0x35b   : > { %2213 = vrot.lane.b32.xlu0 %v5157_v31, %s3709_s8 }
 0x35c   : > { %v2409_v22 = vpop.permute.xlu2 %2408  ;;  %v2407_v30 = vpop.permute.xlu1 %2406 }
 0x35d   : > { %2451 = vst.msk [vmem:[#allocation3 + $0x18] sm:$0xff] %vm6189_vm13, %v2407_v30  ;;  %v2405_v36 = vpop.permute.xlu0 %2404 }
 0x35e   : > { %2450 = vst.msk [vmem:[#allocation3 + $0x10] sm:$0xff] %vm6190_vm14, %v2405_v36  ;;  %vm1828_vm14 = vcmp.ge.s32.totalorder %v1811_v9, 0 }
 0x35f   : > { %2520 = vst.msk [vmem:[#allocation3 + $0x10] sm:$0xff] %vm1409_vm10, %v2475_v43 }
 0x362   : > { %2416 = vrot.lane.b32.xlu2 %v5222_v3, %s3712_s11  ;;  %2352 = vrot.lane.b32.xlu1 %v5423_v0, %s3711_s10  ;;  %v1766_v21 = vpop.f32.mrf.mxu3 }
 0x363   : > { %2350 = vrot.lane.b32.xlu0 %v5391_v59, %s3711_s10 }
 0x364   : > { %v2481_v14 = vpop.permute.xlu2 %2480  ;;  %v2544_v31 = vpop.permute.xlu1 %2543 }
 0x365   : > { %2589 = vst.msk [vmem:[#allocation3 + $0x10] sm:$0xff] %vm1537_vm11, %v2544_v31  ;;  %v2477_v54 = vpop.permute.xlu0 %2476 }
 0x366   : > { %2521 = vst.msk [vmem:[#allocation3 + $0x18] sm:$0xff] %vm1409_vm10, %v2477_v54 }
 0x367   : > { %2590 = vst.msk [vmem:[#allocation3 + $0x18] sm:$0xff] %vm1537_vm11, %v2546_v46 }
 0x36a   : > { %2488 = vrot.lane.b32.xlu2 %v5281_v15, %s3713_s12  ;;  %2486 = vrot.lane.b32.xlu1 %v5256_v47, %s3713_s12  ;;  %v1768_v37 = vpop.f32.mrf.mxu3 }
 0x36b   : > { %2418 = vrot.lane.b32.xlu0 %v5240_v62, %s3712_s11 }
 0x36c   : > { %v2208_v59 = vpop.permute.xlu2 %2207  ;;  %v2274_v0 = vpop.permute.xlu1 %2273  ;;  %v2605_v39 = vld [vmem:[#allocation3 + $0x10] sm:$0xff] }
 0x36d   : > { %2249 = vst.msk [vmem:[#allocation3 + $0x30] sm:$0xff] %vm6191_vm15, %v2208_v59  ;;  %v2206_v23 = vpop.permute.xlu0 %2205  ;;  %vm1838_vm15 = vcmp.lt.s32.totalorder %v1811_v9, 16 }
 0x36e   : > { %2317 = vst.msk [vmem:[#allocation3 + $0x20] sm:$0xff] %vm6192_vm5, %v2274_v0  ;;  %v2606_v29 = vld [vmem:[#allocation3 + $0x18] sm:$0xff]  ;;  %vm1848_vm5 = vmand %vm1828_vm14, %vm1838_vm15 }
 0x36f   : > { %2248 = vst.msk [vmem:[#allocation3 + $0x28] sm:$0xff] %vm6193_vm6, %v2206_v23  ;;  %v2620_v18 = vpack.c.bf16 %v2606_v29, %v2605_v39  ;;  %vm1879_vm6 = vmand %vm1848_vm5, %vm1849_vm8  ;;  %vm6198_vm8 = vcmask 130144  }
 0x370   : > { %2318 = vst.msk [vmem:[#allocation3 + $0x28] sm:$0xff] %vm6194_vm4, %v2276_v6  ;;  %vm6197_vm4 = vmmov %vm6189_vm13 }
 0x371   : > { %2932 = vmatmul.msk.bf16.gmra.mxu1 %vm6195_vm3, %v2620_v18  ;;  %vm1914_vm3 = vmand %vm1848_vm5, %vm1884_vm7  ;;  %vm6199_vm7 = vcmask 162944  }
 0x372   : > { %2223 = vrot.lane.b32.xlu2 %v5600_v10, %s3709_s8  ;;  %2557 = vrot.lane.b32.xlu1 %v5413_v13, %s3714_s13  ;;  %v3666_v10 = vld [vmem:[%s5901_s2] ss:$0 sm:$0xff]  ;;  %vm6205_vm15 = vmmov %vm6197_vm4 }
 0x373   : > { %2555 = vrot.lane.b32.xlu0 %v5416_v27, %s3714_s13  ;;  %v1764_v16 = vadd.f32 %v3666_v10, %v1763_v51  ;;  %v1767_v17 = vadd.f32 %v3666_v10, %v1766_v21  ;;  %v1769_v41 = vadd.f32 %v3666_v10, %v1768_v37 }
 0x374   : > { %v2280_v61 = vpop.permute.xlu2 %2279  ;;  %v2345_v26 = vpop.permute.xlu1 %2344 }
 0x375   : > { %2387 = vst.msk [vmem:[#allocation3 + $0x28] sm:$0xff] %vm6187_vm12, %v2345_v26  ;;  %v2343_v43 = vpop.permute.xlu0 %2342  ;;  %v1798_v46 = vmax.f32 %v1764_v16, 0.0  ;;  %v1799_v4 = vmax.f32 %v1767_v17, 0.0  ;;  %v1800_v60 = vmax.f32 %v1769_v41, 0.0  ;;  %vm6201_vm12 = vmmov %vm6199_vm7 }
 0x376   : > { %2386 = vst.msk [vmem:[#allocation3 + $0x20] sm:$0xff] %vm6196_vm9, %v2343_v43  ;;  %vm6202_vm9 = vcmask 293888  }
 0x377   : > { %2452 = vst.msk [vmem:[#allocation3 + $0x20] sm:$0xff] %vm6189_vm13, %v2409_v22  ;;  %vm6203_vm13 = vcmask 195744  }
 0x378   : > { %vm6204_vm14 = vmmov %vm6203_vm13 }
 0x37a   : > { %2295 = vrot.lane.b32.xlu2 %v5616_v1, %s3710_s9  ;;  %2293 = vrot.lane.b32.xlu1 %v5619_v34, %s3710_s9  ;;  %v1942_v1 = vsel %vm1879_vm6, %v1798_v46, 0.0  ;;  %v1944_v34 = vsel %vm1914_vm3, %v1800_v60, 0.0  ;;  %vm6208_vm6 = vmmov %vm6199_vm7  ;;  %v5779_v46 = vld [vmem:[%s5903_s4] ss:$0 sm:$0xff] }
 0x37b   : > { %2225 = vrot.lane.b32.xlu0 %v5602_v40, %s3709_s8  ;;  %v1943_v40 = vsel %vm1848_vm5, %v1799_v4, 0.0  ;;  %v2465_v49 = vrot.slane %v1942_v1, 1  ;;  %v2468_v5 = vrot.slane %v1944_v34, 1  ;;  %v2537_v20 = vrot.slane %v1944_v34, 2  ;;  %vm6210_vm3 = vmmov %vm6208_vm6 }
 0x37c   : > { %v2413_v42 = vpop.permute.xlu2 %2412  ;;  %v2479_v19 = vpop.permute.xlu1 %2478  ;;  %v2466_v6 = vrot.slane %v1943_v40, 1  ;;  %v2534_v36 = vrot.slane %v1942_v1, 2 }
 0x37d   : > { %2522 = vst.msk [vmem:[#allocation3 + $0x20] sm:$0xff] %vm1409_vm10, %v2479_v19  ;;  %v2411_v44 = vpop.permute.xlu0 %2410 }
 0x37e   : > { %2453 = vst.msk [vmem:[#allocation3 + $0x28] sm:$0xff] %vm6197_vm4, %v2411_v44  ;;  %v2469_v12 = vsel %vm422_vm0, %v2466_v6, %v2468_v5  ;;  %v2467_v38 = vsel %vm422_vm0, %v2465_v49, %v2466_v6  ;;  %vm6200_vm0 = vmmov %vm6198_vm8 }
 0x37f   : > { %2523 = vst.msk [vmem:[#allocation3 + $0x28] sm:$0xff] %vm1409_vm10, %v2481_v14  ;;  %v2535_v14 = vrot.slane %v1943_v40, 2  ;;  %vm6207_vm5 = vmmov %vm6200_vm0 }
 0x381   : > { %v2538_v51 = vsel %vm614_vm1, %v2535_v14, %v2537_v20  ;;  %v2536_v54 = vsel %vm614_vm1, %v2534_v36, %v2535_v14  ;;  %vm6206_vm1 = vmmov %vm6197_vm4 }
 0x382   : > { %2428 = vrot.lane.b32.xlu2 %v1942_v1, %s3712_s11  ;;  %2364 = vrot.lane.b32.xlu1 %v5632_v48, %s3711_s10  ;;  %vm6209_vm4 = vmmov %vm6200_vm0 }
 0x383   : > { %2362 = vrot.lane.b32.xlu0 %v5639_v50, %s3711_s10 }
 0x384   : > { %v2485_v24 = vpop.permute.xlu2 %2484  ;;  %v2550_v45 = vpop.permute.xlu1 %2549 }
 0x385   : > { %2592 = vst.msk [vmem:[#allocation3 + $0x28] sm:$0xff] %vm1537_vm11, %v2550_v45  ;;  %v2548_v56 = vpop.permute.xlu0 %2547 }
 0x386   : > { %2591 = vst.msk [vmem:[#allocation3 + $0x20] sm:$0xff] %vm1537_vm11, %v2548_v56 }
 0x38a   : > { %2500 = vrot.lane.b32.xlu2 %v2469_v12, %s3713_s12  ;;  %2498 = vrot.lane.b32.xlu1 %v2467_v38, %s3713_s12 }
 0x38b   : > { %2430 = vrot.lane.b32.xlu0 %v1943_v40, %s3712_s11 }
 0x38c   : > { %v2220_v48 = vpop.permute.xlu2 %2219  ;;  %v2278_v50 = vpop.permute.xlu1 %2277  ;;  %v2608_v7 = vld [vmem:[#allocation3 + $0x28] sm:$0xff] }
 0x38d   : > { %2255 = vst.msk [vmem:[#allocation3 + $0x60] sm:$0xff] %vm6198_vm8, %v2220_v48  ;;  %v2210_v22 = vpop.permute.xlu0 %2209  ;;  %v2607_v30 = vld [vmem:[#allocation3 + $0x20] sm:$0xff]  ;;  %vm6211_vm8 = vmmov %vm6202_vm9 }
 0x38e   : > { %2319 = vst.msk [vmem:[#allocation3 + $0x30] sm:$0xff] %vm6199_vm7, %v2278_v50  ;;  %v2621_v31 = vpack.c.bf16 %v2608_v7, %v2607_v30  ;;  %vm6212_vm7 = vmmov %vm6203_vm13 }
 0x38f   : > { %2250 = vst.msk [vmem:[#allocation3 + $0x38] sm:$0xff] %vm6200_vm0, %v2210_v22  ;;  %vm6213_vm0 = vmmov %vm6212_vm7 }
 0x390   : > { %2320 = vst.msk [vmem:[#allocation3 + $0x38] sm:$0xff] %vm6201_vm12, %v2280_v61  ;;  %2933 = vmatmul.msk.bf16.gmra.mxu1 %vm6202_vm9, %v2621_v31  ;;  %vm6214_vm12 = vmmov %vm6206_vm1 }
 0x391   : > { %vm6215_vm9 = vmmov %vm6206_vm1 }
 0x392   : > { %2215 = vrot.lane.b32.xlu2 %v5222_v3, %s3709_s8  ;;  %2569 = vrot.lane.b32.xlu1 %v2538_v51, %s3714_s13 }
 0x393   : > { %2567 = vrot.lane.b32.xlu0 %v2536_v54, %s3714_s13 }
 0x394   : > { %v2292_v59 = vpop.permute.xlu2 %2291  ;;  %v2349_v0 = vpop.permute.xlu1 %2348 }
 0x395   : > { %2389 = vst.msk [vmem:[#allocation3 + $0x38] sm:$0xff] %vm6203_vm13, %v2349_v0  ;;  %v2347_v39 = vpop.permute.xlu0 %2346  ;;  %vm6216_vm13 = vmmov %vm6209_vm4 }
 0x396   : > { %2388 = vst.msk [vmem:[#allocation3 + $0x30] sm:$0xff] %vm6204_vm14, %v2347_v39  ;;  %vm6217_vm14 = vmmov %vm6210_vm3 }
 0x397   : > { %2454 = vst.msk [vmem:[#allocation3 + $0x30] sm:$0xff] %vm6205_vm15, %v2413_v42  ;;  %vm6218_vm15 = vmmov %vm6209_vm4 }
 0x39a   : > { %2287 = vrot.lane.b32.xlu2 %v5281_v15, %s3710_s9  ;;  %2285 = vrot.lane.b32.xlu1 %v5256_v47, %s3710_s9  ;;  %s2891_s9 = sshll.u32 %s6262_s19, 5 }
 0x39b   : > { %2217 = vrot.lane.b32.xlu0 %v5240_v62, %s3709_s8  ;;  %s2890_s8 = sshll.u32 %s6264_s27, 1 }
 0x39c   : > { %v2425_v3 = vpop.permute.xlu2 %2424  ;;  %v2483_v23 = vpop.permute.xlu1 %2482 }
 0x39d   : > { %2524 = vst.msk [vmem:[#allocation3 + $0x30] sm:$0xff] %vm1409_vm10, %v2483_v23  ;;  %v2415_v29 = vpop.permute.xlu0 %2414 }
 0x39e   : > { %2455 = vst.msk [vmem:[#allocation3 + $0x38] sm:$0xff] %vm6206_vm1, %v2415_v29  ;;  %vm6219_vm1 = vmmov %vm6210_vm3 }
 0x39f   : > { %2525 = vst.msk [vmem:[#allocation3 + $0x38] sm:$0xff] %vm1409_vm10, %v2485_v24 }
 0x3a2   : > { %2420 = vrot.lane.b32.xlu2 %v5300_v28, %s3712_s11  ;;  %2356 = vrot.lane.b32.xlu1 %v5413_v13, %s3711_s10 }
 0x3a3   : > { %2354 = vrot.lane.b32.xlu0 %v5416_v27, %s3711_s10 }
 0x3a4   : > { %v2497_v47 = vpop.permute.xlu2 %2496  ;;  %v2554_v62 = vpop.permute.xlu1 %2553 }
 0x3a5   : > { %2594 = vst.msk [vmem:[#allocation3 + $0x38] sm:$0xff] %vm1537_vm11, %v2554_v62  ;;  %v2552_v15 = vpop.permute.xlu0 %2551 }
 0x3a6   : > { %2593 = vst.msk [vmem:[#allocation3 + $0x30] sm:$0xff] %vm1537_vm11, %v2552_v15 }
 0x3aa   : > { %2492 = vrot.lane.b32.xlu2 %v5356_v53, %s3713_s12  ;;  %2490 = vrot.lane.b32.xlu1 %v5333_v8, %s3713_s12  ;;  %s246_s12 = sadd.s32 %s2891_s9, %s2890_s8 }
 0x3ab   : > { %2422 = vrot.lane.b32.xlu0 %v5321_v58, %s3712_s11 }
 0x3ac   : > { %v2212_v28 = vpop.permute.xlu2 %2211  ;;  %v2290_v13 = vpop.permute.xlu1 %2289  ;;  %v2610_v21 = vld [vmem:[#allocation3 + $0x38] sm:$0xff] }
 0x3ad   : > { %2251 = vst.msk [vmem:[#allocation3 + $0x40] sm:$0xff] %vm6207_vm5, %v2212_v28  ;;  %v2222_v27 = vpop.permute.xlu0 %2221  ;;  %v2609_v18 = vld [vmem:[#allocation3 + $0x30] sm:$0xff]  ;;  %vm6220_vm5 = vmmov %vm6211_vm8 }
 0x3ae   : > { %2325 = vst.msk [vmem:[#allocation3 + $0x60] sm:$0xff] %vm6208_vm6, %v2290_v13  ;;  %v2622_v9 = vpack.c.bf16 %v2610_v21, %v2609_v18  ;;  %vm6221_vm6 = vmmov %vm6213_vm0 }
 0x3af   : > { %2256 = vst.msk [vmem:[#allocation3 + $0x68] sm:$0xff] %vm6209_vm4, %v2222_v27  ;;  %vm6222_vm4 = vmmov %vm6213_vm0 }
 0x3b0   : > { %2326 = vst.msk [vmem:[#allocation3 + $0x68] sm:$0xff] %vm6210_vm3, %v2292_v59  ;;  %2934 = vmatmul.msk.bf16.gmra.mxu1 %vm6211_vm8, %v2622_v9  ;;  %vm6223_vm3 = vmmov %vm6215_vm9 }
 0x3b1   : > { %vm6224_vm8 = vmmov %vm6223_vm3 }
 0x3b2   : > { %2561 = vrot.lane.b32.xlu1 %v5430_v32, %s3714_s13 }
 0x3b3   : > { %2559 = vrot.lane.b32.xlu0 %v5437_v11, %s3714_s13  ;;  %s2892_s13 = sshll.u32 %s246_s12, 3 }
 0x3b4   : > { %v2284_v58 = vpop.permute.xlu2 %2283  ;;  %v2361_v8 = vpop.permute.xlu1 %2360  ;;  %s5789_s27 = scalar_lea.vmem %s5904_s5, %s2892_s13 }
 0x3b5   : > { %2395 = vst.msk [vmem:[#allocation3 + $0x68] sm:$0xff] %vm6212_vm7, %v2361_v8  ;;  %v2359_v53 = vpop.permute.xlu0 %2358  ;;  %vm6225_vm7 = vmmov %vm6216_vm13 }
 0x3b6   : > { %2394 = vst.msk [vmem:[#allocation3 + $0x60] sm:$0xff] %vm6213_vm0, %v2359_v53  ;;  %vm6226_vm0 = vmmov %vm6219_vm1 }
 0x3b7   : > { %2460 = vst.msk [vmem:[#allocation3 + $0x60] sm:$0xff] %vm6214_vm12, %v2425_v3  ;;  %vm6227_vm12 = vmmov %vm6225_vm7 }
 0x3bc   : > { %v2417_v61 = vpop.permute.xlu2 %2416  ;;  %v2495_v26 = vpop.permute.xlu1 %2494 }
 0x3bd   : > { %2530 = vst.msk [vmem:[#allocation3 + $0x60] sm:$0xff] %vm1409_vm10, %v2495_v26  ;;  %v2427_v43 = vpop.permute.xlu0 %2426 }
 0x3be   : > { %2461 = vst.msk [vmem:[#allocation3 + $0x68] sm:$0xff] %vm6215_vm9, %v2427_v43  ;;  %vm6228_vm9 = vmmov %vm6226_vm0 }
 0x3bf   : > { %2531 = vst.msk [vmem:[#allocation3 + $0x68] sm:$0xff] %vm1409_vm10, %v2497_v47 }
 0x3c4   : > { %v2489_v32 = vpop.permute.xlu2 %2488  ;;  %v2566_v11 = vpop.permute.xlu1 %2565 }
 0x3c5   : > { %2600 = vst.msk [vmem:[#allocation3 + $0x68] sm:$0xff] %vm1537_vm11, %v2566_v11  ;;  %v2564_v37 = vpop.permute.xlu0 %2563 }
 0x3c6   : > { %2599 = vst.msk [vmem:[#allocation3 + $0x60] sm:$0xff] %vm1537_vm11, %v2564_v37 }
 0x3cc   : > { %v2224_v10 = vpop.permute.xlu2 %2223  ;;  %v2282_v16 = vpop.permute.xlu1 %2281  ;;  %v2616_v17 = vld [vmem:[#allocation3 + $0x68] sm:$0xff] }
 0x3cd   : > { %2257 = vst.msk [vmem:[#allocation3 + $0x70] sm:$0xff] %vm6216_vm13, %v2224_v10  ;;  %v2214_v41 = vpop.permute.xlu0 %2213  ;;  %v2615_v42 = vld [vmem:[#allocation3 + $0x60] sm:$0xff]  ;;  %vm6229_vm13 = vmmov %vm6220_vm5 }
 0x3ce   : > { %2321 = vst.msk [vmem:[#allocation3 + $0x40] sm:$0xff] %vm6217_vm14, %v2282_v16  ;;  %v2625_v19 = vpack.c.bf16 %v2616_v17, %v2615_v42  ;;  %vm6230_vm14 = vmmov %vm6222_vm4 }
 0x3cf   : > { %2252 = vst.msk [vmem:[#allocation3 + $0x48] sm:$0xff] %vm6218_vm15, %v2214_v41  ;;  %vm6231_vm15 = vmmov %vm6222_vm4 }
 0x3d0   : > { %2322 = vst.msk [vmem:[#allocation3 + $0x48] sm:$0xff] %vm6219_vm1, %v2284_v58  ;;  %2937 = vmatmul.msk.bf16.vlgmr.msrb.gmra.mxu3 %vm6220_vm5, %v2625_v19  ;;  %vm6232_vm1 = vmmov %vm6223_vm3 }
 0x3d1   : > { %vm6233_vm5 = vmmov %vm6232_vm1 }
 0x3d4   : > { %v2296_v44 = vpop.permute.xlu2 %2295  ;;  %v2353_v4 = vpop.permute.xlu1 %2352 }
 0x3d5   : > { %2391 = vst.msk [vmem:[#allocation3 + $0x48] sm:$0xff] %vm6221_vm6, %v2353_v4  ;;  %v2351_v60 = vpop.permute.xlu0 %2350  ;;  %v2687_v1 = vpop.f32.mrf.mxu1  ;;  %vm6234_vm6 = vmmov %vm6226_vm0 }
 0x3d6   : > { %2390 = vst.msk [vmem:[#allocation3 + $0x40] sm:$0xff] %vm6222_vm4, %v2351_v60  ;;  %v2688_v40 = vadd.f32 %v5779_v46, %v2687_v1  ;;  %vm6235_vm4 = vmmov %vm6225_vm7 }
 0x3d7   : > { %2456 = vst.msk [vmem:[#allocation3 + $0x40] sm:$0xff] %vm6223_vm3, %v2417_v61  ;;  %vm6236_vm3 = vmmov %vm6226_vm0 }
 0x3d8   : > { %v2743_v34 = vadd.f32 %v2688_v40, %v6080_v33 }
 0x3da   : > { %v2759_v24 = vmax.f32 %v2743_v34, 0.0 }
 0x3dc   : > { %2775 = vst.msk [vmem:[%s5789_s27] sm:$0xff] %vm351_vm2, %v2759_v24  ;;  %v2429_v45 = vpop.permute.xlu2 %2428  ;;  %v2487_v49 = vpop.permute.xlu1 %2486 }
 0x3dd   : > { %2526 = vst.msk [vmem:[#allocation3 + $0x40] sm:$0xff] %vm1409_vm10, %v2487_v49  ;;  %v2419_v6 = vpop.permute.xlu0 %2418  ;;  %v2689_v5 = vpop.f32.mrf.mxu1 }
 0x3de   : > { %2457 = vst.msk [vmem:[#allocation3 + $0x48] sm:$0xff] %vm6224_vm8, %v2419_v6  ;;  %v2690_v33 = vadd.f32 %v5779_v46, %v2689_v5  ;;  %vm6237_vm8 = vmmov %vm6229_vm13 }
 0x3df   : > { %2527 = vst.msk [vmem:[#allocation3 + $0x48] sm:$0xff] %vm1409_vm10, %v2489_v32 }
 0x3e0   : > { %v2744_v56 = vadd.f32 %v2690_v33, %v6090_v2  ;;  %v6243_v33 = vld [vmem:[#allocation54_spill] sm:$0xff] }
 0x3e2   : > { %v2760_v12 = vmax.f32 %v2744_v56, 0.0 }
 0x3e4   : > { %2776 = vst.msk [vmem:[%s5789_s27 + $0x8] sm:$0xff] %vm351_vm2, %v2760_v12  ;;  %v2501_v38 = vpop.permute.xlu2 %2500  ;;  %v2558_v48 = vpop.permute.xlu1 %2557 }
 0x3e5   : > { %2596 = vst.msk [vmem:[#allocation3 + $0x48] sm:$0xff] %vm1537_vm11, %v2558_v48  ;;  %v2556_v50 = vpop.permute.xlu0 %2555  ;;  %v6244_v48 = vld [vmem:[#allocation55_spill] sm:$0xff] }
 0x3e6   : > { %2595 = vst.msk [vmem:[#allocation3 + $0x40] sm:$0xff] %vm1537_vm11, %v2556_v50 }
 0x3ec   : > { %v2216_v7 = vpop.permute.xlu2 %2215  ;;  %v2294_v20 = vpop.permute.xlu1 %2293  ;;  %v2612_v22 = vld [vmem:[#allocation3 + $0x48] sm:$0xff] }
 0x3ed   : > { %2253 = vst.msk [vmem:[#allocation3 + $0x50] sm:$0xff] %vm6225_vm7, %v2216_v7  ;;  %v2226_v30 = vpop.permute.xlu0 %2225  ;;  %v2611_v36 = vld [vmem:[#allocation3 + $0x40] sm:$0xff]  ;;  %vm6238_vm7 = vmmov %vm6230_vm14 }
 0x3ee   : > { %2327 = vst.msk [vmem:[#allocation3 + $0x70] sm:$0xff] %vm6226_vm0, %v2294_v20  ;;  %v2692_v2 = vpop.f32.mrf.mxu1  ;;  %v2623_v14 = vpack.c.bf16 %v2612_v22, %v2611_v36  ;;  %vm6239_vm0 = vmmov %vm6238_vm7  ;;  %v6245_v22 = vld [vmem:[#allocation48_spill] sm:$0xff] }
 0x3ef   : > { %2258 = vst.msk [vmem:[#allocation3 + $0x78] sm:$0xff] %vm6227_vm12, %v2226_v30  ;;  %v2693_v31 = vadd.f32 %v5779_v46, %v2692_v2  ;;  %vm6240_vm12 = vmmov %vm6232_vm1 }
 0x3f0   : > { %2328 = vst.msk [vmem:[#allocation3 + $0x78] sm:$0xff] %vm6228_vm9, %v2296_v44  ;;  %2935 = vmatmul.msk.bf16.gmra.mxu1 %vm6229_vm13, %v2623_v14  ;;  %vm6241_vm9 = vmmov %vm6232_vm1 }
 0x3f1   : > { %v2745_v51 = vadd.f32 %v2693_v31, %v6088_v63  ;;  %vm6242_vm13 = vmmov %vm6237_vm8  ;;  %v6246_v31 = vld [vmem:[#allocation49_spill] sm:$0xff] }
 0x3f3   : > { %v2761_v54 = vmax.f32 %v2745_v51, 0.0 }
 0x3f4   : > { %v2365_v59 = vpop.permute.xlu1 %2364  ;;  %v2288_v28 = vpop.permute.xlu2 %2287 }
 0x3f5   : > { %2777 = vst.msk [vmem:[%s5789_s27 + $0x10] sm:$0xff] %vm351_vm2, %v2761_v54  ;;  %v2363_v0 = vpop.permute.xlu0 %2362 }
 0x3f6   : > { %2397 = vst.msk [vmem:[#allocation3 + $0x78] sm:$0xff] %vm6230_vm14, %v2365_v59  ;;  %v2694_v39 = vpop.f32.mrf.mxu1 }
 0x3f7   : > { %2396 = vst.msk [vmem:[#allocation3 + $0x70] sm:$0xff] %vm6231_vm15, %v2363_v0  ;;  %v2695_v3 = vadd.f32 %v5779_v46, %v2694_v39  ;;  %v6247_v39 = vld [vmem:[#allocation51_spill] sm:$0xff] }
 0x3f8   : > { %2462 = vst.msk [vmem:[#allocation3 + $0x70] sm:$0xff] %vm6232_vm1, %v2429_v45 }
 0x3f9   : > { %v2746_v23 = vadd.f32 %v2695_v3, %v4280_v52 }
 0x3fb   : > { %v2762_v29 = vmax.f32 %v2746_v23, 0.0 }
 0x3fc   : > { %v2499_v47 = vpop.permute.xlu1 %2498  ;;  %v2421_v61 = vpop.permute.xlu2 %2420 }
 0x3fd   : > { %2778 = vst.msk [vmem:[%s5789_s27 + $0x18] sm:$0xff] %vm351_vm2, %v2762_v29  ;;  %v2431_v63 = vpop.permute.xlu0 %2430 }
 0x3fe   : > { %2532 = vst.msk [vmem:[#allocation3 + $0x70] sm:$0xff] %vm1409_vm10, %v2499_v47 }
 0x3ff   : > { %2463 = vst.msk [vmem:[#allocation3 + $0x78] sm:$0xff] %vm6233_vm5, %v2431_v63  ;;  %v6248_v63 = vld [vmem:[#allocation60_spill] sm:$0xff] }
 0x400   : > { %2533 = vst.msk [vmem:[#allocation3 + $0x78] sm:$0xff] %vm1409_vm10, %v2501_v38 }
 0x404   : > { %v2570_v62 = vpop.permute.xlu1 %2569  ;;  %v2493_v17 = vpop.permute.xlu2 %2492 }
 0x405   : > { %2602 = vst.msk [vmem:[#allocation3 + $0x78] sm:$0xff] %vm1537_vm11, %v2570_v62  ;;  %v2568_v15 = vpop.permute.xlu0 %2567 }
 0x406   : > { %2601 = vst.msk [vmem:[#allocation3 + $0x70] sm:$0xff] %vm1537_vm11, %v2568_v15 }
 0x40c   : > { %v2286_v52 = vpop.permute.xlu1 %2285  ;;  %v2618_v13 = vld [vmem:[#allocation3 + $0x78] sm:$0xff] }
 0x40d   : > { %2323 = vst.msk [vmem:[#allocation3 + $0x50] sm:$0xff] %vm6234_vm6, %v2286_v52  ;;  %v2218_v21 = vpop.permute.xlu0 %2217  ;;  %v2697_v27 = vpop.f32.mrf.mxu1  ;;  %v2617_v18 = vld [vmem:[#allocation3 + $0x70] sm:$0xff] }
 0x40e   : > { %2254 = vst.msk [vmem:[#allocation3 + $0x58] sm:$0xff] %vm6235_vm4, %v2218_v21  ;;  %v2698_v9 = vadd.f32 %v5779_v46, %v2697_v27  ;;  %v2626_v58 = vpack.c.bf16 %v2618_v13, %v2617_v18  ;;  %v6249_v13 = vld [vmem:[#allocation45_spill] sm:$0xff] }
 0x40f   : > { %2324 = vst.msk [vmem:[#allocation3 + $0x58] sm:$0xff] %vm6236_vm3, %v2288_v28 }
 0x410   : > { %v2747_v8 = vadd.f32 %v2698_v9, %v6085_v35  ;;  %2938 = vmatmul.msk.bf16.gmra.mxu3 %vm6237_vm8, %v2626_v58  ;;  %v6250_v58 = vld [vmem:[#allocation58_spill] sm:$0xff] }
 0x412   : > { %v2763_v53 = vmax.f32 %v2747_v8, 0.0 }
 0x414   : > { %2779 = vst.msk [vmem:[%s5789_s27 + $0x20] sm:$0xff] %vm351_vm2, %v2763_v53  ;;  %v2357_v26 = vpop.permute.xlu1 %2356 }
 0x415   : > { %2393 = vst.msk [vmem:[#allocation3 + $0x58] sm:$0xff] %vm6238_vm7, %v2357_v26  ;;  %v2355_v43 = vpop.permute.xlu0 %2354  ;;  %v2699_v32 = vpop.f32.mrf.mxu1 }
 0x416   : > { %2392 = vst.msk [vmem:[#allocation3 + $0x50] sm:$0xff] %vm6239_vm0, %v2355_v43  ;;  %v2700_v11 = vadd.f32 %v5779_v46, %v2699_v32 }
 0x417   : > { %2458 = vst.msk [vmem:[#allocation3 + $0x50] sm:$0xff] %vm6240_vm12, %v2421_v61 }
 0x418   : > { %v2748_v37 = vadd.f32 %v2700_v11, %v6093_v25 }
 0x41a   : > { %v2764_v35 = vmax.f32 %v2748_v37, 0.0 }
 0x41c   : > { %2780 = vst.msk [vmem:[%s5789_s27 + $0x28] sm:$0xff] %vm351_vm2, %v2764_v35  ;;  %v2491_v10 = vpop.permute.xlu1 %2490 }
 0x41d   : > { %2528 = vst.msk [vmem:[#allocation3 + $0x50] sm:$0xff] %vm1409_vm10, %v2491_v10  ;;  %v2423_v16 = vpop.permute.xlu0 %2422 }
 0x41e   : > { %2459 = vst.msk [vmem:[#allocation3 + $0x58] sm:$0xff] %vm6241_vm9, %v2423_v16 }
 0x41f   : > { %2529 = vst.msk [vmem:[#allocation3 + $0x58] sm:$0xff] %vm1409_vm10, %v2493_v17 }
 0x424   : > { %v2562_v41 = vpop.permute.xlu1 %2561 }
 0x425   : > { %2598 = vst.msk [vmem:[#allocation3 + $0x58] sm:$0xff] %vm1537_vm11, %v2562_v41  ;;  %v2560_v42 = vpop.permute.xlu0 %2559 }
 0x426   : > { %2597 = vst.msk [vmem:[#allocation3 + $0x50] sm:$0xff] %vm1537_vm11, %v2560_v42 }
 0x42c   : > { %v2614_v25 = vld [vmem:[#allocation3 + $0x58] sm:$0xff] }
 0x42d   : > { %v2702_v19 = vpop.f32.mrf.mxu1  ;;  %v2613_v44 = vld [vmem:[#allocation3 + $0x50] sm:$0xff] }
 0x42e   : > { %v2703_v4 = vadd.f32 %v5779_v46, %v2702_v19  ;;  %v2624_v60 = vpack.c.bf16 %v2614_v25, %v2613_v44 }
 0x430   : > { %v2749_v1 = vadd.f32 %v2703_v4, %v6089_v57  ;;  %2936 = vmatmul.msk.bf16.gmra.mxu1 %vm6242_vm13, %v2624_v60 }
 0x432   : > { %v2765_v40 = vmax.f32 %v2749_v1, 0.0 }
 0x434   : > { %2781 = vst.msk [vmem:[%s5789_s27 + $0x30] sm:$0xff] %vm351_vm2, %v2765_v40 }
 0x435   : > { %v2704_v34 = vpop.f32.mrf.mxu1 }
 0x436   : > { %v2705_v24 = vadd.f32 %v5779_v46, %v2704_v34 }
 0x438   : > { %v2750_v45 = vadd.f32 %v2705_v24, %v4315_v55 }
 0x43a   : > { %v2766_v49 = vmax.f32 %v2750_v45, 0.0 }
 0x43c   : > { %2782 = vst.msk [vmem:[%s5789_s27 + $0x38] sm:$0xff] %vm351_vm2, %v2766_v49 }
 0x453   : > { %v2717_v6 = vpop.f32.mrf.mxu3 }
 0x454   : > { %v2718_v5 = vadd.f32 %v5779_v46, %v2717_v6 }
 0x456   : > { %v2755_v57 = vadd.f32 %v2718_v5, %v6243_v33 }
 0x458   : > { %v2771_v56 = vmax.f32 %v2755_v57, 0.0 }
 0x45a   : > { %2787 = vst.msk [vmem:[%s5789_s27 + $0x60] sm:$0xff] %vm351_vm2, %v2771_v56 }
 0x45b   : > { %v2719_v12 = vpop.f32.mrf.mxu3 }
 0x45c   : > { %v2720_v38 = vadd.f32 %v5779_v46, %v2719_v12 }
 0x45e   : > { %v2756_v50 = vadd.f32 %v2720_v38, %v6244_v48 }
 0x460   : > { %v2772_v7 = vmax.f32 %v2756_v50, 0.0 }
 0x462   : > { %2788 = vst.msk [vmem:[%s5789_s27 + $0x68] sm:$0xff] %vm351_vm2, %v2772_v7 }
 0x46d   : > { %v2707_v55 = vpop.f32.mrf.mxu1 }
 0x46e   : > { %v2708_v20 = vadd.f32 %v5779_v46, %v2707_v55 }
 0x470   : > { %v2751_v30 = vadd.f32 %v2708_v20, %v6245_v22 }
 0x472   : > { %v2767_v36 = vmax.f32 %v2751_v30, 0.0 }
 0x474   : > { %2783 = vst.msk [vmem:[%s5789_s27 + $0x40] sm:$0xff] %vm351_vm2, %v2767_v36 }
 0x475   : > { %v2709_v2 = vpop.f32.mrf.mxu1 }
 0x476   : > { %v2710_v14 = vadd.f32 %v5779_v46, %v2709_v2 }
 0x478   : > { %v2752_v51 = vadd.f32 %v2710_v14, %v6246_v31 }
 0x47a   : > { %v2768_v54 = vmax.f32 %v2752_v51, 0.0 }
 0x47c   : > { %2784 = vst.msk [vmem:[%s5789_s27 + $0x48] sm:$0xff] %vm351_vm2, %v2768_v54 }
 0x493   : > { %v2722_v59 = vpop.f32.mrf.mxu3 }
 0x494   : > { %v2723_v0 = vadd.f32 %v5779_v46, %v2722_v59 }
 0x496   : > { %v2757_v3 = vadd.f32 %v2723_v0, %v6247_v39 }
 0x498   : > { %v2773_v23 = vmax.f32 %v2757_v3, 0.0 }
 0x49a   : > { %2789 = vst.msk [vmem:[%s5789_s27 + $0x70] sm:$0xff] %vm351_vm2, %v2773_v23 }
 0x49b   : > { %v2724_v29 = vpop.f32.mrf.mxu3 }
 0x49c   : > { %v2725_v47 = vadd.f32 %v5779_v46, %v2724_v29 }
 0x49e   : > { %v2758_v62 = vadd.f32 %v2725_v47, %v6248_v63 }
 0x4a0   : > { %v2774_v15 = vmax.f32 %v2758_v62, 0.0 }
 0x4a2   : > { %2790 = vst.msk [vmem:[%s5789_s27 + $0x78] sm:$0xff] %vm351_vm2, %v2774_v15 }
 0x4ad   : > { %v2712_v28 = vpop.f32.mrf.mxu1 }
 0x4ae   : > { %v2713_v52 = vadd.f32 %v5779_v46, %v2712_v28 }
 0x4b0   : > { %v2753_v21 = vadd.f32 %v2713_v52, %v6249_v13 }
 0x4b2   : > { %v2769_v27 = vmax.f32 %v2753_v21, 0.0 }
 0x4b4   : > { %2785 = vst.msk [vmem:[%s5789_s27 + $0x50] sm:$0xff] %vm351_vm2, %v2769_v27 }
 0x4b5   : > { %v2714_v18 = vpop.f32.mrf.mxu1 }
 0x4b6   : > { %v2715_v9 = vadd.f32 %v5779_v46, %v2714_v18 }
 0x4b8   : > { %v2754_v8 = vadd.f32 %v2715_v9, %v6250_v58 }
 0x4ba   : > { %v2770_v53 = vmax.f32 %v2754_v8, 0.0 }
 0x4bc   : > { %2786 = vst.msk [vmem:[%s5789_s27 + $0x58] sm:$0xff] %vm351_vm2, %v2770_v53 }
 0x4bd PF: > { %s15_s22 = sadd.s32 1, %s3705_s22   ;;  %s6251_s18 = smov %s3697_s20 }
 0x4be   : > { %p12_p7 = scmp.ge.s32.totalorder %s15_s22, 6   ;;  %s6252_s19 = smov %s3701_s21 }
 0x4bf   : > { %s6253_s20 = smov %s6256_s23  ;;  %s6254_s21 = smov %s6260_s24 }
 0x4c0   :  { %14 = sbr.rel (!%p12_p7) target bundleno = 3 (0x3), region = 71 }

</bundles_post_ra>
